<compile_context>
chip_gen: v5e
topology: v5e:2x2
jax: 0.10.0
libtpu: 0.0.40
codegen_flags: <defaults>
</compile_context>

<pallas_src>
import numpy as np

import jax
import jax.numpy as jnp
from jax import lax
from jax.experimental import pallas as pl
from jax.experimental.pallas import tpu as pltpu


# ----------------------------- fused kernel --------------------------------

def _convnet_kernel(x_ref,
                    w1_ref, b1_ref, sr1_ref, sw1_ref,
                    w2_ref, b2_ref, sr2_ref, sw2_ref,
                    wf1_ref, bf1_ref, wf2_ref, bf2_ref, wf3_ref, bf3_ref,
                    o_ref):
    """Whole ConvNet forward for one batch block of TB images.

    x_ref   : (TB*H, XW)            TB images stacked on sublanes; lanes =
                                    (w, cin), zero-padded to XW (128 mult.)
    w{1,2}  : (K*LW, Wout*Cout_p)   folded banded conv weights (LW = lane
                                    width of that layer's input activation)
    b{1,2}  : (1, Wout*Cout_p)      per-(wout, cout) bias, zero padded
    sr{1,2} : (rows_out, rows_src)  0/1 row selection (pool row compaction);
                                    sr2 orders rows r-major / image-minor
    sw{1,2} : (2, Wout*Cout_p, ZW)  0/1 even/odd lane-block selection
    wf1     : (HP2*ZW2, 128)        fc1, rows pre-permuted to torch's NCHW
                                    flatten order
    wf2/wf3 : (128, 128)            zero-padded fc2 / fc3 weights
    bf*     : (1, 128)              zero-padded fc biases
    o_ref   : (TB, 128)             logits (classes zero padded to 128)
    """
    f32, bf16 = jnp.float32, jnp.bfloat16

    def conv_relu(x, w_ref, b_ref):
        # Fold the K kernel-row shifts into one MXU dot: lane-concatenate the
        # K row-shifted slabs (each a 128-lane multiple -> aligned concat)
        # against the pre-folded banded weight.
        rows, lw = x.shape
        k = w_ref.shape[0] // lw
        l = rows - k + 1
        lhs = jnp.concatenate([x[i:i + l, :] for i in range(k)], axis=1)
        y = jnp.dot(lhs.astype(bf16), w_ref[...],
                    preferred_element_type=f32) + b_ref[...]
        return jnp.maximum(y, 0.0)

    def pool2x2(y, sr_ref, sw_ref):
        # rows: VPU pairwise max of adjacent rows, then ONE 0/1 selection
        # matmul that picks (and compacts) row 2r of every image.
        yh = jnp.maximum(y[:-1, :], y[1:, :]).astype(bf16)
        zr = jnp.dot(sr_ref[...], yh, preferred_element_type=f32).astype(bf16)
        # lanes: exact even/odd lane-block 0/1 selections + elementwise max
        # (output zero-padded to a 128-lane multiple for the next concat).
        return jnp.maximum(
            jnp.dot(zr, sw_ref[0], preferred_element_type=f32),
            jnp.dot(zr, sw_ref[1], preferred_element_type=f32))

    # conv1 + relu + pool   /   conv2 + relu + pool
    z1 = pool2x2(conv_relu(x_ref[...], w1_ref, b1_ref), sr1_ref, sw1_ref)
    z2 = pool2x2(conv_relu(z1, w2_ref, b2_ref), sr2_ref, sw2_ref)

    # fc head: z2 rows are (spatial row r)-major / image-minor, so one aligned
    # lane-concat yields the (TB, HP2*ZW2) feature matrix for a single dot.
    tb = o_ref.shape[0]
    hp2 = z2.shape[0] // tb
    feats = jnp.concatenate([z2[r * tb:(r + 1) * tb, :] for r in range(hp2)],
                            axis=1).astype(bf16)
    h = jnp.maximum(jnp.dot(feats, wf1_ref[...],
                            preferred_element_type=f32) + bf1_ref[...], 0.0)
    h = jnp.maximum(jnp.dot(h.astype(bf16), wf2_ref[...],
                            preferred_element_type=f32) + bf2_ref[...], 0.0)
    out = jnp.dot(h.astype(bf16), wf3_ref[...],
                  preferred_element_type=f32) + bf3_ref[...]
    o_ref[...] = out.astype(o_ref.dtype)


# ------------------------ host-side weight packing --------------------------

def _round_up(x, m):
    return -(-x // m) * m


def _folded_conv_weight(w_hwio, cin_stride, lane_pad, w_out, cout_pad):
    """(K,K,Cin,Cout) HWIO -> (K*lane_pad, w_out*cout_pad) folded banded weight.

    Row i*lane_pad + wcol*cin_stride + cin multiplies input pixel
    (row + i, wcol, cin) of the lane-concatenated, row-shifted LHS slab."""
    K, _, cin, cout = w_hwio.shape
    m = np.zeros((K * lane_pad, w_out * cout_pad), np.float32)
    for i in range(K):
        for j in range(K):
            for wo in range(w_out):
                wc = wo + j
                r0 = i * lane_pad + wc * cin_stride
                m[r0:r0 + cin, wo * cout_pad:wo * cout_pad + cout] = w_hwio[i, j]
    return m


def _flat_bias(b, w_out, cout_pad):
    m = np.zeros((1, w_out * cout_pad), np.float32)
    for wo in range(w_out):
        m[0, wo * cout_pad:wo * cout_pad + b.shape[0]] = b
    return m


def _row_select(tb, row_stride, hp, src_rows, *, r_major):
    """0/1 matrix picking, per image b and pooled row r, source row
    b*row_stride + 2r of the pairwise-row-maxed conv output."""
    s = np.zeros((tb * hp, src_rows), np.float32)
    for b in range(tb):
        for r in range(hp):
            o = r * tb + b if r_major else b * hp + r
            s[o, b * row_stride + 2 * r] = 1.0
    return s


def _lane_select(w_out, cp, out_lanes):
    """(2, w_out*cp, out_lanes): matrix j picks source column w=2q+j of each
    channel into destination column q (extra output lanes stay zero)."""
    s = np.zeros((2, w_out * cp, out_lanes), np.float32)
    for q in range(w_out // 2):
        for c in range(cp):
            s[0, (2 * q) * cp + c, q * cp + c] = 1.0
            s[1, (2 * q + 1) * cp + c, q * cp + c] = 1.0
    return s


def _pad2d(w, rows, cols):
    m = np.zeros((rows, cols), np.float32)
    m[:w.shape[0], :w.shape[1]] = w
    return m


def _pad_row(b, cols):
    m = np.zeros((1, cols), np.float32)
    m[0, :b.shape[0]] = b
    return m


def pack_params(params, *, img_size, kernel_size, in_channels, out_channels,
                output_classes, batch_block):
    """One-time host repack of torch-style params into the fused-kernel layout
    (folded banded conv weights, pool selection matrices, permuted/padded FC
    weights), all exact zero padding; MXU operands stored in bf16."""
    K = kernel_size
    CIN = in_channels
    C1, C2 = out_channels // 2, out_channels
    C1P, C2P = _round_up(C1, 8), _round_up(C2, 8)
    H = W = img_size
    TB = batch_block
    HO1 = WO1 = H - K + 1
    HP1, WP1 = HO1 // 2, WO1 // 2
    HO2 = WO2 = HP1 - K + 1
    HP2, WP2 = HO2 // 2, WO2 // 2
    H1 = params["fc1_w"].shape[1]
    H2 = params["fc2_w"].shape[1]
    H1P, H2P = _round_up(H1, 128), _round_up(H2, 128)
    OP = _round_up(output_classes, 128)

    XW = _round_up(W * CIN, 128)        # lane width of the input slab
    Z1W = _round_up(WP1 * C1P, 128)     # lane width of pool1 output
    Z2W = _round_up(WP2 * C2P, 128)     # lane width of pool2 output

    w1 = np.asarray(params["conv1_w"], np.float32)
    w2 = np.asarray(params["conv2_w"], np.float32)
    f1w = np.asarray(params["fc1_w"], np.float32)

    # fc1 rows permuted to (spatial row r, col w, padded channel c) so the
    # kernel's natural feature order matches torch's NCHW .view flatten.
    wf1 = np.zeros((HP2 * Z2W, H1P), np.float32)
    for c in range(C2):
        for r in range(HP2):
            for w in range(WP2):
                wf1[r * Z2W + w * C2P + c, :H1] = f1w[c * HP2 * WP2 + r * WP2 + w]

    packed = {
        "w1": _folded_conv_weight(w1, CIN, XW, WO1, C1P),
        "b1": _flat_bias(np.asarray(params["conv1_b"], np.float32), WO1, C1P),
        "sr1": _row_select(TB, H, HP1, TB * H - K, r_major=False),
        "sw1": _lane_select(WO1, C1P, Z1W),
        "w2": _folded_conv_weight(w2, C1P, Z1W, WO2, C2P),
        "b2": _flat_bias(np.asarray(params["conv2_b"], np.float32), WO2, C2P),
        "sr2": _row_select(TB, HP1, HP2, TB * HP1 - K, r_major=True),
        "sw2": _lane_select(WO2, C2P, Z2W),
        "wf1": wf1,
        "bf1": _pad_row(np.asarray(params["fc1_b"], np.float32), H1P),
        "wf2": _pad2d(np.asarray(params["fc2_w"], np.float32), H1P, H2P),
        "bf2": _pad_row(np.asarray(params["fc2_b"], np.float32), H2P),
        "wf3": _pad2d(np.asarray(params["fc3_w"], np.float32), H2P, OP),
        "bf3": _pad_row(np.asarray(params["fc3_b"], np.float32), OP),
    }
    bf16_keys = {"w1", "sr1", "sw1", "w2", "sr2", "sw2", "wf1", "wf2", "wf3"}
    return {k: jnp.asarray(v, jnp.bfloat16 if k in bf16_keys else jnp.float32)
            for k, v in packed.items()}


# ------------------------------ forward pass --------------------------------

_WEIGHT_KEYS = ("w1", "b1", "sr1", "sw1",
                "w2", "b2", "sr2", "sw2",
                "wf1", "bf1", "wf2", "bf2", "wf3", "bf3")


def convnet_forward(x_nchw, packed, *, num_classes, batch_block):
    """x_nchw: (N, Cin, H, W) float32.  packed: output of pack_params."""
    TB = batch_block
    assert TB % 8 == 0, "batch block must be a multiple of the sublane tile (8)"
    N, CIN, H, W = x_nchw.shape
    n_pad = _round_up(N, TB)
    x = x_nchw
    if n_pad != N:
        x = jnp.pad(x, ((0, n_pad - N), (0, 0), (0, 0), (0, 0)))
    x = jnp.transpose(x, (0, 2, 3, 1)).astype(jnp.float32)        # NHWC
    xw = _round_up(W * CIN, 128)
    x2d = x.reshape(n_pad * H, W * CIN)
    if xw != W * CIN:                                             # lane pad
        x2d = jnp.pad(x2d, ((0, 0), (0, xw - W * CIN)))

    weights = [packed[k] for k in _WEIGHT_KEYS]
    OP = packed["wf3"].shape[1]                                   # padded classes
    G = n_pad // TB

    def full_spec(a):
        nd = a.ndim
        return pl.BlockSpec(a.shape, lambda n: (0,) * nd)

    # Advisory cost estimate: per-step matmul flops * number of steps.
    K = packed["w1"].shape[0] // xw
    n1, z1w = packed["w1"].shape[1], packed["sw1"].shape[2]
    n2, z2w = packed["w2"].shape[1], packed["sw2"].shape[2]
    r1, r2 = packed["sr1"].shape[0], packed["sr2"].shape[0]
    l1 = TB * H - K + 1
    l2 = r1 - K + 1
    f1k = packed["wf1"].shape[0]
    h1p, h2p = packed["wf2"].shape[0], packed["wf3"].shape[0]
    per_step = 2 * (l1 * (K * xw) * n1 + r1 * (l1 - 1) * n1 + 2 * r1 * n1 * z1w
                    + l2 * (K * z1w) * n2 + r2 * (l2 - 1) * n2
                    + 2 * r2 * n2 * z2w
                    + TB * f1k * h1p + TB * h1p * h2p + TB * h2p * OP)
    weight_bytes = sum(int(np.prod(w.shape)) * w.dtype.itemsize
                       for w in weights)
    cost = pl.CostEstimate(
        flops=int(G * per_step), transcendentals=0,
        bytes_accessed=int(x2d.size * x2d.dtype.itemsize + weight_bytes
                           + n_pad * OP * 4))

    out = pl.pallas_call(
        _convnet_kernel,
        out_shape=jax.ShapeDtypeStruct((n_pad, OP), jnp.float32),
        grid=(G,),
        in_specs=[pl.BlockSpec((TB * H, xw), lambda n: (n, 0))]
                 + [full_spec(a) for a in weights],
        out_specs=pl.BlockSpec((TB, OP), lambda n: (n, 0)),
        compiler_params=pltpu.CompilerParams(
            dimension_semantics=("parallel",)),
        cost_estimate=cost,
    )(x2d, *weights)

    return out[:N, :num_classes]


# ------------------------------- init / ref ---------------------------------

def init_params(key, in_channels, out_channels, output_classes, kernel_size,
                img_size):
    c1 = out_channels // 2
    s = (img_size - kernel_size) + 1
    s //= 2
    s = (s - kernel_size) + 1
    s //= 2
    in_features = s * s * out_channels

    ks = jax.random.split(key, 10)

    def u(k, shape, fan_in):
        bound = 1.0 / float(fan_in) ** 0.5
        return jax.random.uniform(k, shape, jnp.float32, -bound, bound)

    k2 = kernel_size * kernel_size
    params = dict(
        conv1_w=u(ks[0], (kernel_size, kernel_size, in_channels, c1),
                  k2 * in_channels),
        conv1_b=u(ks[1], (c1,), k2 * in_channels),
        conv2_w=u(ks[2], (kernel_size, kernel_size, c1, out_channels), k2 * c1),
        conv2_b=u(ks[3], (out_channels,), k2 * c1),
        fc1_w=u(ks[4], (in_features, 120), in_features),
        fc1_b=u(ks[5], (120,), in_features),
        fc2_w=u(ks[6], (120, 84), 120),
        fc2_b=u(ks[7], (84,), 120),
        fc3_w=u(ks[8], (84, output_classes), 84),
        fc3_b=u(ks[9], (output_classes,), 84),
    )
    return params, in_features


def convnet_reference(x_nchw, params):
    """Pure-JAX reference (lax.conv / reduce_window) for the correctness check."""
    x = jnp.transpose(x_nchw, (0, 2, 3, 1))
    dn = ("NHWC", "HWIO", "NHWC")
    y = lax.conv_general_dilated(x, params["conv1_w"], (1, 1), "VALID",
                                 dimension_numbers=dn) + params["conv1_b"]
    y = jax.nn.relu(y)
    y = lax.reduce_window(y, -jnp.inf, lax.max, (1, 2, 2, 1), (1, 2, 2, 1),
                          "VALID")
    y = lax.conv_general_dilated(y, params["conv2_w"], (1, 1), "VALID",
                                 dimension_numbers=dn) + params["conv2_b"]
    y = jax.nn.relu(y)
    y = lax.reduce_window(y, -jnp.inf, lax.max, (1, 2, 2, 1), (1, 2, 2, 1),
                          "VALID")
    feat = jnp.transpose(y, (0, 3, 1, 2)).reshape(x.shape[0], -1)
    h = jax.nn.relu(feat @ params["fc1_w"] + params["fc1_b"])
    h = jax.nn.relu(h @ params["fc2_w"] + params["fc2_b"])
    return h @ params["fc3_w"] + params["fc3_b"]


if __name__ == "__main__":
    # Small, ConvNet-consistent shapes: img_size=24, in_channels=3,
    # out_channels=8, kernel=5, padding=0, stride=1 -> in_features = 3*3*8 = 72.
    # Batch 16 with an 8-image batch block -> grid of 2 "parallel" steps.
    N, CIN, COUT, CLASSES, K, IMG = 16, 3, 8, 10, 5, 24
    TB = 8

    key = jax.random.PRNGKey(0)
    kp, kx = jax.random.split(key)
    params, in_features = init_params(kp, CIN, COUT, CLASSES, K, IMG)
    assert in_features == 72

    packed = pack_params(params, img_size=IMG, kernel_size=K, in_channels=CIN,
                         out_channels=COUT, output_classes=CLASSES,
                         batch_block=TB)

    x = jax.random.normal(kx, (N, CIN, IMG, IMG), jnp.float32)

    fwd = jax.jit(convnet_forward, static_argnames=("num_classes",
                                                    "batch_block"))
    out = fwd(x, packed, num_classes=CLASSES, batch_block=TB)
    out = jax.block_until_ready(out)
    assert out.shape == (N, CLASSES), out.shape

    ref = convnet_reference(x, params)
    max_err = float(jnp.max(jnp.abs(out - ref)))
    # Tolerance covers the bf16 MXU operands (weights + activation casts);
    # all pooling/padding/permutation plumbing is exact.
    assert jnp.allclose(out, ref, atol=3e-2, rtol=3e-2), f"max_err={max_err}"

    print("KERNEL_OK")
</pallas_src>

<mosaic_0001>
module attributes {stable_mosaic.version = 11 : i64} {
  func.func @_convnet_kernel(%arg0: i32, %arg1: memref<192x128xf32, #tpu.memory_space<vmem>>, %arg2: memref<640x160xbf16, #tpu.memory_space<vmem>>, %arg3: memref<1x160xf32, #tpu.memory_space<vmem>>, %arg4: memref<80x187xbf16, #tpu.memory_space<vmem>>, %arg5: memref<2x160x128xbf16, #tpu.memory_space<vmem>>, %arg6: memref<640x48xbf16, #tpu.memory_space<vmem>>, %arg7: memref<1x48xf32, #tpu.memory_space<vmem>>, %arg8: memref<24x75xbf16, #tpu.memory_space<vmem>>, %arg9: memref<2x48x128xbf16, #tpu.memory_space<vmem>>, %arg10: memref<384x128xbf16, #tpu.memory_space<vmem>>, %arg11: memref<1x128xf32, #tpu.memory_space<vmem>>, %arg12: memref<128x128xbf16, #tpu.memory_space<vmem>>, %arg13: memref<1x128xf32, #tpu.memory_space<vmem>>, %arg14: memref<128x128xbf16, #tpu.memory_space<vmem>>, %arg15: memref<1x128xf32, #tpu.memory_space<vmem>>, %arg16: memref<8x128xf32, #tpu.memory_space<vmem>>) attributes {dimension_semantics = [#tpu.dimension_semantics<parallel>], iteration_bounds = array<i64: 2>, scalar_prefetch = 0 : i64, scratch_operands = 0 : i64, tpu.core_type = #tpu.core_type<tc>, window_params = [{transform_indices = @transform_0, window_bounds = array<i64: 192, 128>}, {pipeline_mode = #tpu.pipeline_mode<synchronous>, transform_indices = @transform_1, window_bounds = array<i64: 640, 160>}, {pipeline_mode = #tpu.pipeline_mode<synchronous>, transform_indices = @transform_2, window_bounds = array<i64: 1, 160>}, {pipeline_mode = #tpu.pipeline_mode<synchronous>, transform_indices = @transform_3, window_bounds = array<i64: 80, 187>}, {pipeline_mode = #tpu.pipeline_mode<synchronous>, transform_indices = @transform_4, window_bounds = array<i64: 2, 160, 128>}, {pipeline_mode = #tpu.pipeline_mode<synchronous>, transform_indices = @transform_5, window_bounds = array<i64: 640, 48>}, {pipeline_mode = #tpu.pipeline_mode<synchronous>, transform_indices = @transform_6, window_bounds = array<i64: 1, 48>}, {pipeline_mode = #tpu.pipeline_mode<synchronous>, transform_indices = @transform_7, window_bounds = array<i64: 24, 75>}, {pipeline_mode = #tpu.pipeline_mode<synchronous>, transform_indices = @transform_8, window_bounds = array<i64: 2, 48, 128>}, {pipeline_mode = #tpu.pipeline_mode<synchronous>, transform_indices = @transform_9, window_bounds = array<i64: 384, 128>}, {pipeline_mode = #tpu.pipeline_mode<synchronous>, transform_indices = @transform_10, window_bounds = array<i64: 1, 128>}, {pipeline_mode = #tpu.pipeline_mode<synchronous>, transform_indices = @transform_11, window_bounds = array<i64: 128, 128>}, {pipeline_mode = #tpu.pipeline_mode<synchronous>, transform_indices = @transform_12, window_bounds = array<i64: 1, 128>}, {pipeline_mode = #tpu.pipeline_mode<synchronous>, transform_indices = @transform_13, window_bounds = array<i64: 128, 128>}, {pipeline_mode = #tpu.pipeline_mode<synchronous>, transform_indices = @transform_14, window_bounds = array<i64: 1, 128>}, {transform_indices = @transform_15, window_bounds = array<i64: 8, 128>}]} {
    %c0 = arith.constant 0 : index
    %c0_0 = arith.constant 0 : index
    %0 = vector.load %arg1[%c0, %c0_0] : memref<192x128xf32, #tpu.memory_space<vmem>>, vector<192x128xf32>
    %1 = vector.extract_strided_slice %0 {offsets = [0, 0], sizes = [188, 128], strides = [1, 1]} : vector<192x128xf32> to vector<188x128xf32>
    %2 = vector.extract_strided_slice %0 {offsets = [1, 0], sizes = [188, 128], strides = [1, 1]} : vector<192x128xf32> to vector<188x128xf32>
    %3 = vector.extract_strided_slice %0 {offsets = [2, 0], sizes = [188, 128], strides = [1, 1]} : vector<192x128xf32> to vector<188x128xf32>
    %4 = vector.extract_strided_slice %0 {offsets = [3, 0], sizes = [188, 128], strides = [1, 1]} : vector<192x128xf32> to vector<188x128xf32>
    %5 = vector.extract_strided_slice %0 {offsets = [4, 0], sizes = [188, 128], strides = [1, 1]} : vector<192x128xf32> to vector<188x128xf32>
    %6 = tpu.concatenate %1, %2, %3, %4, %5 in 1 : vector<188x128xf32>, vector<188x128xf32>, vector<188x128xf32>, vector<188x128xf32>, vector<188x128xf32> -> vector<188x640xf32>
    %7 = arith.truncf %6 : vector<188x640xf32> to vector<188x640xbf16>
    %c0_1 = arith.constant 0 : index
    %c0_2 = arith.constant 0 : index
    %8 = vector.load %arg2[%c0_1, %c0_2] : memref<640x160xbf16, #tpu.memory_space<vmem>>, vector<640x160xbf16>
    %cst = arith.constant dense<0.000000e+00> : vector<188x160xf32>
    %9 = tpu.matmul %7, %8, %cst {dimension_numbers = #tpu.dot_dimension_numbers<[1], [0], [0], [1], [0, 0, 1, 1], [], []>} : vector<188x640xbf16>, vector<640x160xbf16>, vector<188x160xf32> -> vector<188x160xf32>
    %c0_3 = arith.constant 0 : index
    %c0_4 = arith.constant 0 : index
    %10 = vector.load %arg3[%c0_3, %c0_4] : memref<1x160xf32, #tpu.memory_space<vmem>>, vector<1x160xf32>
    %11 = vector.broadcast %10 : vector<1x160xf32> to vector<188x160xf32>
    %12 = arith.addf %9, %11 : vector<188x160xf32>
    %cst_5 = arith.constant 0.000000e+00 : f32
    %13 = vector.broadcast %cst_5 : f32 to vector<188x160xf32>
    %14 = arith.maximumf %12, %13 : vector<188x160xf32>
    %15 = vector.extract_strided_slice %14 {offsets = [0, 0], sizes = [187, 160], strides = [1, 1]} : vector<188x160xf32> to vector<187x160xf32>
    %16 = vector.extract_strided_slice %14 {offsets = [1, 0], sizes = [187, 160], strides = [1, 1]} : vector<188x160xf32> to vector<187x160xf32>
    %17 = arith.maximumf %15, %16 : vector<187x160xf32>
    %18 = arith.truncf %17 : vector<187x160xf32> to vector<187x160xbf16>
    %c0_6 = arith.constant 0 : index
    %c0_7 = arith.constant 0 : index
    %19 = vector.load %arg4[%c0_6, %c0_7] : memref<80x187xbf16, #tpu.memory_space<vmem>>, vector<80x187xbf16>
    %cst_8 = arith.constant dense<0.000000e+00> : vector<80x160xf32>
    %20 = tpu.matmul %19, %18, %cst_8 {dimension_numbers = #tpu.dot_dimension_numbers<[1], [0], [0], [1], [0, 0, 1, 1], [], []>} : vector<80x187xbf16>, vector<187x160xbf16>, vector<80x160xf32> -> vector<80x160xf32>
    %21 = arith.truncf %20 : vector<80x160xf32> to vector<80x160xbf16>
    %c0_9 = arith.constant 0 : index
    %c0_10 = arith.constant 0 : index
    %c0_11 = arith.constant 0 : index
    %22 = vector.load %arg5[%c0_9, %c0_10, %c0_11] : memref<2x160x128xbf16, #tpu.memory_space<vmem>>, vector<1x160x128xbf16>
    %23 = vector.shape_cast %22 : vector<1x160x128xbf16> to vector<160x128xbf16>
    %cst_12 = arith.constant dense<0.000000e+00> : vector<80x128xf32>
    %24 = tpu.matmul %21, %23, %cst_12 {dimension_numbers = #tpu.dot_dimension_numbers<[1], [0], [0], [1], [0, 0, 1, 1], [], []>} : vector<80x160xbf16>, vector<160x128xbf16>, vector<80x128xf32> -> vector<80x128xf32>
    %c1 = arith.constant 1 : index
    %c0_13 = arith.constant 0 : index
    %c0_14 = arith.constant 0 : index
    %25 = vector.load %arg5[%c1, %c0_13, %c0_14] : memref<2x160x128xbf16, #tpu.memory_space<vmem>>, vector<1x160x128xbf16>
    %26 = vector.shape_cast %25 : vector<1x160x128xbf16> to vector<160x128xbf16>
    %cst_15 = arith.constant dense<0.000000e+00> : vector<80x128xf32>
    %27 = tpu.matmul %21, %26, %cst_15 {dimension_numbers = #tpu.dot_dimension_numbers<[1], [0], [0], [1], [0, 0, 1, 1], [], []>} : vector<80x160xbf16>, vector<160x128xbf16>, vector<80x128xf32> -> vector<80x128xf32>
    %28 = arith.maximumf %24, %27 : vector<80x128xf32>
    %29 = vector.extract_strided_slice %28 {offsets = [0, 0], sizes = [76, 128], strides = [1, 1]} : vector<80x128xf32> to vector<76x128xf32>
    %30 = vector.extract_strided_slice %28 {offsets = [1, 0], sizes = [76, 128], strides = [1, 1]} : vector<80x128xf32> to vector<76x128xf32>
    %31 = vector.extract_strided_slice %28 {offsets = [2, 0], sizes = [76, 128], strides = [1, 1]} : vector<80x128xf32> to vector<76x128xf32>
    %32 = vector.extract_strided_slice %28 {offsets = [3, 0], sizes = [76, 128], strides = [1, 1]} : vector<80x128xf32> to vector<76x128xf32>
    %33 = vector.extract_strided_slice %28 {offsets = [4, 0], sizes = [76, 128], strides = [1, 1]} : vector<80x128xf32> to vector<76x128xf32>
    %34 = tpu.concatenate %29, %30, %31, %32, %33 in 1 : vector<76x128xf32>, vector<76x128xf32>, vector<76x128xf32>, vector<76x128xf32>, vector<76x128xf32> -> vector<76x640xf32>
    %35 = arith.truncf %34 : vector<76x640xf32> to vector<76x640xbf16>
    %c0_16 = arith.constant 0 : index
    %c0_17 = arith.constant 0 : index
    %36 = vector.load %arg6[%c0_16, %c0_17] : memref<640x48xbf16, #tpu.memory_space<vmem>>, vector<640x48xbf16>
    %cst_18 = arith.constant dense<0.000000e+00> : vector<76x48xf32>
    %37 = tpu.matmul %35, %36, %cst_18 {dimension_numbers = #tpu.dot_dimension_numbers<[1], [0], [0], [1], [0, 0, 1, 1], [], []>} : vector<76x640xbf16>, vector<640x48xbf16>, vector<76x48xf32> -> vector<76x48xf32>
    %c0_19 = arith.constant 0 : index
    %c0_20 = arith.constant 0 : index
    %38 = vector.load %arg7[%c0_19, %c0_20] : memref<1x48xf32, #tpu.memory_space<vmem>>, vector<1x48xf32>
    %39 = vector.broadcast %38 : vector<1x48xf32> to vector<76x48xf32>
    %40 = arith.addf %37, %39 : vector<76x48xf32>
    %cst_21 = arith.constant 0.000000e+00 : f32
    %41 = vector.broadcast %cst_21 : f32 to vector<76x48xf32>
    %42 = arith.maximumf %40, %41 : vector<76x48xf32>
    %43 = vector.extract_strided_slice %42 {offsets = [0, 0], sizes = [75, 48], strides = [1, 1]} : vector<76x48xf32> to vector<75x48xf32>
    %44 = vector.extract_strided_slice %42 {offsets = [1, 0], sizes = [75, 48], strides = [1, 1]} : vector<76x48xf32> to vector<75x48xf32>
    %45 = arith.maximumf %43, %44 : vector<75x48xf32>
    %46 = arith.truncf %45 : vector<75x48xf32> to vector<75x48xbf16>
    %c0_22 = arith.constant 0 : index
    %c0_23 = arith.constant 0 : index
    %47 = vector.load %arg8[%c0_22, %c0_23] : memref<24x75xbf16, #tpu.memory_space<vmem>>, vector<24x75xbf16>
    %cst_24 = arith.constant dense<0.000000e+00> : vector<24x48xf32>
    %48 = tpu.matmul %47, %46, %cst_24 {dimension_numbers = #tpu.dot_dimension_numbers<[1], [0], [0], [1], [0, 0, 1, 1], [], []>} : vector<24x75xbf16>, vector<75x48xbf16>, vector<24x48xf32> -> vector<24x48xf32>
    %49 = arith.truncf %48 : vector<24x48xf32> to vector<24x48xbf16>
    %c0_25 = arith.constant 0 : index
    %c0_26 = arith.constant 0 : index
    %c0_27 = arith.constant 0 : index
    %50 = vector.load %arg9[%c0_25, %c0_26, %c0_27] : memref<2x48x128xbf16, #tpu.memory_space<vmem>>, vector<1x48x128xbf16>
    %51 = vector.shape_cast %50 : vector<1x48x128xbf16> to vector<48x128xbf16>
    %cst_28 = arith.constant dense<0.000000e+00> : vector<24x128xf32>
    %52 = tpu.matmul %49, %51, %cst_28 {dimension_numbers = #tpu.dot_dimension_numbers<[1], [0], [0], [1], [0, 0, 1, 1], [], []>} : vector<24x48xbf16>, vector<48x128xbf16>, vector<24x128xf32> -> vector<24x128xf32>
    %c1_29 = arith.constant 1 : index
    %c0_30 = arith.constant 0 : index
    %c0_31 = arith.constant 0 : index
    %53 = vector.load %arg9[%c1_29, %c0_30, %c0_31] : memref<2x48x128xbf16, #tpu.memory_space<vmem>>, vector<1x48x128xbf16>
    %54 = vector.shape_cast %53 : vector<1x48x128xbf16> to vector<48x128xbf16>
    %cst_32 = arith.constant dense<0.000000e+00> : vector<24x128xf32>
    %55 = tpu.matmul %49, %54, %cst_32 {dimension_numbers = #tpu.dot_dimension_numbers<[1], [0], [0], [1], [0, 0, 1, 1], [], []>} : vector<24x48xbf16>, vector<48x128xbf16>, vector<24x128xf32> -> vector<24x128xf32>
    %56 = arith.maximumf %52, %55 : vector<24x128xf32>
    %57 = vector.extract_strided_slice %56 {offsets = [0, 0], sizes = [8, 128], strides = [1, 1]} : vector<24x128xf32> to vector<8x128xf32>
    %58 = vector.extract_strided_slice %56 {offsets = [8, 0], sizes = [8, 128], strides = [1, 1]} : vector<24x128xf32> to vector<8x128xf32>
    %59 = vector.extract_strided_slice %56 {offsets = [16, 0], sizes = [8, 128], strides = [1, 1]} : vector<24x128xf32> to vector<8x128xf32>
    %60 = tpu.concatenate %57, %58, %59 in 1 : vector<8x128xf32>, vector<8x128xf32>, vector<8x128xf32> -> vector<8x384xf32>
    %61 = arith.truncf %60 : vector<8x384xf32> to vector<8x384xbf16>
    %c0_33 = arith.constant 0 : index
    %c0_34 = arith.constant 0 : index
    %62 = vector.load %arg10[%c0_33, %c0_34] : memref<384x128xbf16, #tpu.memory_space<vmem>>, vector<384x128xbf16>
    %cst_35 = arith.constant dense<0.000000e+00> : vector<8x128xf32>
    %63 = tpu.matmul %61, %62, %cst_35 {dimension_numbers = #tpu.dot_dimension_numbers<[1], [0], [0], [1], [0, 0, 1, 1], [], []>} : vector<8x384xbf16>, vector<384x128xbf16>, vector<8x128xf32> -> vector<8x128xf32>
    %c0_36 = arith.constant 0 : index
    %c0_37 = arith.constant 0 : index
    %64 = vector.load %arg11[%c0_36, %c0_37] : memref<1x128xf32, #tpu.memory_space<vmem>>, vector<1x128xf32>
    %65 = vector.broadcast %64 : vector<1x128xf32> to vector<8x128xf32>
    %66 = arith.addf %63, %65 : vector<8x128xf32>
    %cst_38 = arith.constant 0.000000e+00 : f32
    %67 = vector.broadcast %cst_38 : f32 to vector<8x128xf32>
    %68 = arith.maximumf %66, %67 : vector<8x128xf32>
    %69 = arith.truncf %68 : vector<8x128xf32> to vector<8x128xbf16>
    %c0_39 = arith.constant 0 : index
    %c0_40 = arith.constant 0 : index
    %70 = vector.load %arg12[%c0_39, %c0_40] : memref<128x128xbf16, #tpu.memory_space<vmem>>, vector<128x128xbf16>
    %cst_41 = arith.constant dense<0.000000e+00> : vector<8x128xf32>
    %71 = tpu.matmul %69, %70, %cst_41 {dimension_numbers = #tpu.dot_dimension_numbers<[1], [0], [0], [1], [0, 0, 1, 1], [], []>} : vector<8x128xbf16>, vector<128x128xbf16>, vector<8x128xf32> -> vector<8x128xf32>
    %c0_42 = arith.constant 0 : index
    %c0_43 = arith.constant 0 : index
    %72 = vector.load %arg13[%c0_42, %c0_43] : memref<1x128xf32, #tpu.memory_space<vmem>>, vector<1x128xf32>
    %73 = vector.broadcast %72 : vector<1x128xf32> to vector<8x128xf32>
    %74 = arith.addf %71, %73 : vector<8x128xf32>
    %cst_44 = arith.constant 0.000000e+00 : f32
    %75 = vector.broadcast %cst_44 : f32 to vector<8x128xf32>
    %76 = arith.maximumf %74, %75 : vector<8x128xf32>
    %77 = arith.truncf %76 : vector<8x128xf32> to vector<8x128xbf16>
    %c0_45 = arith.constant 0 : index
    %c0_46 = arith.constant 0 : index
    %78 = vector.load %arg14[%c0_45, %c0_46] : memref<128x128xbf16, #tpu.memory_space<vmem>>, vector<128x128xbf16>
    %cst_47 = arith.constant dense<0.000000e+00> : vector<8x128xf32>
    %79 = tpu.matmul %77, %78, %cst_47 {dimension_numbers = #tpu.dot_dimension_numbers<[1], [0], [0], [1], [0, 0, 1, 1], [], []>} : vector<8x128xbf16>, vector<128x128xbf16>, vector<8x128xf32> -> vector<8x128xf32>
    %c0_48 = arith.constant 0 : index
    %c0_49 = arith.constant 0 : index
    %80 = vector.load %arg15[%c0_48, %c0_49] : memref<1x128xf32, #tpu.memory_space<vmem>>, vector<1x128xf32>
    %81 = vector.broadcast %80 : vector<1x128xf32> to vector<8x128xf32>
    %82 = arith.addf %79, %81 : vector<8x128xf32>
    %c0_50 = arith.constant 0 : index
    %c0_51 = arith.constant 0 : index
    %83 = vector.load %arg16[%c0_50, %c0_51] : memref<8x128xf32, #tpu.memory_space<vmem>>, vector<8x128xf32>
    tpu.vector_store %arg16[%c0_50, %c0_51], %82 {strides = array<i32>} : memref<8x128xf32, #tpu.memory_space<vmem>>, vector<8x128xf32>,
    return
  }
  func.func @transform_0(%arg0: i32) -> (i32, i32) {
    %c0_i32 = arith.constant 0 : i32
    %c0_i32_0 = arith.constant 0 : i32
    return %arg0, %c0_i32 : i32, i32
  }
  func.func @transform_1(%arg0: i32) -> (i32, i32) {
    %c0_i32 = arith.constant 0 : i32
    %c0_i32_0 = arith.constant 0 : i32
    %c0_i32_1 = arith.constant 0 : i32
    return %c0_i32, %c0_i32_0 : i32, i32
  }
  func.func @transform_2(%arg0: i32) -> (i32, i32) {
    %c0_i32 = arith.constant 0 : i32
    %c0_i32_0 = arith.constant 0 : i32
    %c0_i32_1 = arith.constant 0 : i32
    return %c0_i32, %c0_i32_0 : i32, i32
  }
  func.func @transform_3(%arg0: i32) -> (i32, i32) {
    %c0_i32 = arith.constant 0 : i32
    %c0_i32_0 = arith.constant 0 : i32
    %c0_i32_1 = arith.constant 0 : i32
    return %c0_i32, %c0_i32_0 : i32, i32
  }
  func.func @transform_4(%arg0: i32) -> (i32, i32, i32) {
    %c0_i32 = arith.constant 0 : i32
    %c0_i32_0 = arith.constant 0 : i32
    %c0_i32_1 = arith.constant 0 : i32
    %c0_i32_2 = arith.constant 0 : i32
    return %c0_i32, %c0_i32_0, %c0_i32_1 : i32, i32, i32
  }
  func.func @transform_5(%arg0: i32) -> (i32, i32) {
    %c0_i32 = arith.constant 0 : i32
    %c0_i32_0 = arith.constant 0 : i32
    %c0_i32_1 = arith.constant 0 : i32
    return %c0_i32, %c0_i32_0 : i32, i32
  }
  func.func @transform_6(%arg0: i32) -> (i32, i32) {
    %c0_i32 = arith.constant 0 : i32
    %c0_i32_0 = arith.constant 0 : i32
    %c0_i32_1 = arith.constant 0 : i32
    return %c0_i32, %c0_i32_0 : i32, i32
  }
  func.func @transform_7(%arg0: i32) -> (i32, i32) {
    %c0_i32 = arith.constant 0 : i32
    %c0_i32_0 = arith.constant 0 : i32
    %c0_i32_1 = arith.constant 0 : i32
    return %c0_i32, %c0_i32_0 : i32, i32
  }
  func.func @transform_8(%arg0: i32) -> (i32, i32, i32) {
    %c0_i32 = arith.constant 0 : i32
    %c0_i32_0 = arith.constant 0 : i32
    %c0_i32_1 = arith.constant 0 : i32
    %c0_i32_2 = arith.constant 0 : i32
    return %c0_i32, %c0_i32_0, %c0_i32_1 : i32, i32, i32
  }
  func.func @transform_9(%arg0: i32) -> (i32, i32) {
    %c0_i32 = arith.constant 0 : i32
    %c0_i32_0 = arith.constant 0 : i32
    %c0_i32_1 = arith.constant 0 : i32
    return %c0_i32, %c0_i32_0 : i32, i32
  }
  func.func @transform_10(%arg0: i32) -> (i32, i32) {
    %c0_i32 = arith.constant 0 : i32
    %c0_i32_0 = arith.constant 0 : i32
    %c0_i32_1 = arith.constant 0 : i32
    return %c0_i32, %c0_i32_0 : i32, i32
  }
  func.func @transform_11(%arg0: i32) -> (i32, i32) {
    %c0_i32 = arith.constant 0 : i32
    %c0_i32_0 = arith.constant 0 : i32
    %c0_i32_1 = arith.constant 0 : i32
    return %c0_i32, %c0_i32_0 : i32, i32
  }
  func.func @transform_12(%arg0: i32) -> (i32, i32) {
    %c0_i32 = arith.constant 0 : i32
    %c0_i32_0 = arith.constant 0 : i32
    %c0_i32_1 = arith.constant 0 : i32
    return %c0_i32, %c0_i32_0 : i32, i32
  }
  func.func @transform_13(%arg0: i32) -> (i32, i32) {
    %c0_i32 = arith.constant 0 : i32
    %c0_i32_0 = arith.constant 0 : i32
    %c0_i32_1 = arith.constant 0 : i32
    return %c0_i32, %c0_i32_0 : i32, i32
  }
  func.func @transform_14(%arg0: i32) -> (i32, i32) {
    %c0_i32 = arith.constant 0 : i32
    %c0_i32_0 = arith.constant 0 : i32
    %c0_i32_1 = arith.constant 0 : i32
    return %c0_i32, %c0_i32_0 : i32, i32
  }
  func.func @transform_15(%arg0: i32) -> (i32, i32) {
    %c0_i32 = arith.constant 0 : i32
    %c0_i32_0 = arith.constant 0 : i32
    return %arg0, %c0_i32 : i32, i32
  }
}

</mosaic_0001>

<bundles_post_ra>
// kernel: convnet_forward.1
= control target key start
LH: loop header
LB: loop body
LE: loop exit
PB: predicated region body
PF: predicated region fallthrough
CT: control target
= control target key end

     0   :  { %s7583_s0 = inlined_call_operand.vmem [shape: f32[384,128], index: 0, kind: input, shape index: {}]   ;;  %s7584_s1 = inlined_call_operand.vmem [shape: bf16[640,160], index: 1, kind: input, shape index: {}]   ;;  %s7585_s2 = inlined_call_operand.vmem [shape: f32[1,160], index: 2, kind: input, shape index: {}]   ;;  %s7586_s3 = inlined_call_operand.vmem [shape: bf16[80,187], index: 3, kind: input, shape index: {}]   ;;  %s7587_s4 = inlined_call_operand.vmem [shape: bf16[2,160,128], index: 4, kind: input, shape index: {}]   ;;  %s7588_s5 = inlined_call_operand.vmem [shape: bf16[640,48], index: 5, kind: input, shape index: {}]   ;;  %s7589_s6 = inlined_call_operand.vmem [shape: f32[1,48], index: 6, kind: input, shape index: {}]   ;;  %s7590_s7 = inlined_call_operand.vmem [shape: bf16[24,75], index: 7, kind: input, shape index: {}]   ;;  %s7591_s8 = inlined_call_operand.vmem [shape: bf16[2,48,128], index: 8, kind: input, shape index: {}]   ;;  %s7592_s9 = inlined_call_operand.vmem [shape: bf16[384,128], index: 9, kind: input, shape index: {}]   ;;  %s7593_s10 = inlined_call_operand.vmem [shape: f32[1,128], index: 10, kind: input, shape index: {}]   ;;  %s7594_s11 = inlined_call_operand.vmem [shape: bf16[128,128], index: 11, kind: input, shape index: {}]   ;;  %s7595_s12 = inlined_call_operand.vmem [shape: f32[1,128], index: 12, kind: input, shape index: {}]   ;;  %s7596_s13 = inlined_call_operand.vmem [shape: bf16[128,128], index: 13, kind: input, shape index: {}]   ;;  %s7597_s14 = inlined_call_operand.vmem [shape: f32[1,128], index: 14, kind: input, shape index: {}]   ;;  %s7598_s15 = inlined_call_operand.hbm [shape: f32[16,128], index: 15, kind: output, shape index: {}]  }
   0x1   :  { %7639 = sst [smem:[#allocation43_spill]] %s7583_s0 }
   0x2   :  { %7640 = sst [smem:[#allocation44_spill]] %s7584_s1 }
   0x3   :  { %20 = vsyncpa [#allocation3], 0 }
   0x4   :  { %22 = vsyncpa [#allocation3 + $0x1], 0  ;;  %s5487_s18 = smov 0   ;;  %s5489_s19 = smov 0  }
   0x5   :  { %s5491_s20 = smov 0   ;;  %s5493_s21 = smov 0  }
   0x6 LB: > { %7641 = sst [smem:[#allocation5_spill]] %s5392_s18  ;;  %s5508_s22 = sadd.s32 4294967295, %s5404_s21   ;;  %s5404_s21 = sphi %s5493_s21, %s7754_s21   ;;  %s5400_s20 = sphi %s5491_s20, %s7756_s20   ;;  %s5396_s19 = sphi %s5489_s19, %s7758_s19   ;;  %s5392_s18 = sphi %s5487_s18, %s7757_s18  }
   0x7   : > { %7642 = sst [smem:[#allocation6_spill]] %s5400_s20  ;;  %s4251_s23 = sadd.s32 4294967294, %s5404_s21  }
   0x8   : > { %s5512_s24 = sadd.s32 1, %s5404_s21   ;;  %s355_s25 = sadd.s32 1, %s5400_s20 }
   0x9   : > { %7643 = sst [smem:[#allocation7_spill]] %s5512_s24  ;;  %s352_s26 = ssub.s32 %s5404_s21, %s5512_s24 }
   0xa   : > { %p365_p0 = scmp.ne.s32.totalorder %s5400_s20, %s5396_s19  ;;  %p353_p1 = scmp.eq.s32.totalorder %s352_s26, 0 }
   0xb   : > { %p366_p2 = scmp.eq.s32.totalorder %s5508_s22, 1  ;;  %p371_p3 = scmp.ne.s32.totalorder %s5396_s19, %s5392_s18 }
   0xc   : > { %p372_p4 = scmp.eq.s32.totalorder %s4251_s23, 1  ;;  %p4254_p7 = scmp.ge.s32.totalorder %s5404_s21, 1 }
   0xd   : > { %s5523_s27 = scalar_select %p353_p1, %s5400_s20, %s355_s25  }
   0xe   : > { %p5525_p5 = por %p366_p2, %p365_p0  ;;  %p5529_p6 = por %p372_p4, %p371_p3 }
   0xf   : > { %7644 = sst [smem:[#allocation8_spill]] %s5523_s27  ;;  %p441_p8 = scmp.lt.s32.totalorder %s5404_s21, 3 }
  0x10   : > { %s7646_s29 = scalar_select %p5529_p6, 1, 0 }
  0x11   : > { %p442_p9 = pnand %p4254_p7, %p441_p8 }
  0x12   : > { %7647 = sst [smem:[#allocation9_spill]] %s7646_s29 }
  0x13   : > { %445 = sbr.rel (%p442_p9) target bundleno = 2092 (0x82c), region = 80 }
  0x18   : > { %s7648_s1 = sld [smem:[#allocation44_spill]]  ;;  %s489_s17 = smul.u32 24, %s5508_s22  ;;  %vm544_vm0 = vcmask 1046528   ;;  %vm616_vm1 = vcmask 1045504   ;;  %vm688_vm2 = vcmask 1044480   ;;  %vm760_vm3 = vcmask 1043456  }
  0x19   : > { %s7649_s0 = sld [smem:[#allocation43_spill]]  ;;  %vm2433_vm4 = vcmask 482304   ;;  %vm2683_vm5 = vcmask 261120   ;;  %vm3646_vm6 = vcmask 613376   ;;  %vm3700_vm7 = vcmask 392192   ;;  %s486_s29 = sand.u32 1, %s5396_s19  }
  0x1a   : > { %p490_p10 = scmp.lt.s32.totalorder %s489_s17, 47  ;;  %s4255_s26 = sshll.u32 %s486_s29, 3 }
  0x1b   : > { %s488_s20 = scalar_lea.vmem [#allocation2], %s4255_s26 }
  0x1c   : > { %s7760_s17 = smov (!%p490_p10, %s489_s17), 47  ;;  %s4189_s27 = sshll.u32 %s488_s20, 4  ;;  %s4190_s27 = int_to_ptr.vmem [resolvable:$true] %s4189_s27 }
  0x1d   : > { %s4256_s18 = sshll.u32 %s7760_s17, 3 }
  0x1e   : > { %v4315_v0 = vld [vmem:[%s7648_s1 + $0x70] sm:$0xf]  ;;  %v5116_v1 = vld [vmem:[%s7648_s1 + $0x74] sm:$0xf0]  ;;  %v4307_v11 = vld [vmem:[%s7648_s1 + $0x60] sm:$0xf] }
  0x1f   : > { %v4379_v2 = vld [vmem:[%s7648_s1 + $0xf0] sm:$0xf]  ;;  %v4316_v3 = vor.u32 %v5116_v1, %v4315_v0  ;;  %v5132_v4 = vld [vmem:[%s7648_s1 + $0xf4] sm:$0xf0]  ;;  %v5114_v13 = vld [vmem:[%s7648_s1 + $0x64] sm:$0xf0]  ;;  %s5731_s16 = scalar_lea.vmem %s7649_s0, %s4256_s18 }
  0x20   : > { %v4443_v5 = vld [vmem:[%s7648_s1 + $0x170] sm:$0xf]  ;;  %v5148_v6 = vld [vmem:[%s7648_s1 + $0x174] sm:$0xf0]  ;;  %v4380_v7 = vor.u32 %v5132_v4, %v4379_v2  ;;  %v4371_v14 = vld [vmem:[%s7648_s1 + $0xe0] sm:$0xf]  ;;  %v4308_v16 = vor.u32 %v5114_v13, %v4307_v11 }
  0x21   : > { %v4444_v8 = vor.u32 %v5148_v6, %v4443_v5  ;;  %v4507_v9 = vld [vmem:[%s7648_s1 + $0x1f0] sm:$0xf]  ;;  %v5164_v10 = vld [vmem:[%s7648_s1 + $0x1f4] sm:$0xf0]  ;;  %1378 = vmatpush.bf16.msra.mxu0 %v4316_v3  ;;  %v5130_v15 = vld [vmem:[%s7648_s1 + $0xe4] sm:$0xf0] }
  0x22   : > { %v4508_v12 = vor.u32 %v5164_v10, %v4507_v9  ;;  %1447 = vmatpush.bf16.msra.mxu1 %v4380_v7  ;;  %v4372_v17 = vor.u32 %v5130_v15, %v4371_v14  ;;  %v4435_v18 = vld [vmem:[%s7648_s1 + $0x160] sm:$0xf]  ;;  %v5146_v19 = vld [vmem:[%s7648_s1 + $0x164] sm:$0xf0]  ;;  %v4299_v23 = vld [vmem:[%s7648_s1 + $0x50] sm:$0xf] }
  0x23   : > { %1516 = vmatpush.bf16.msra.mxu2 %v4444_v8  ;;  %v4499_v20 = vld [vmem:[%s7648_s1 + $0x1e0] sm:$0xf]  ;;  %v4436_v21 = vor.u32 %v5146_v19, %v4435_v18  ;;  %v5162_v22 = vld [vmem:[%s7648_s1 + $0x1e4] sm:$0xf0]  ;;  %v5112_v24 = vld [vmem:[%s7648_s1 + $0x54] sm:$0xf0] }
  0x24   : > { %1585 = vmatpush.bf16.msra.mxu3 %v4508_v12  ;;  %v4500_v25 = vor.u32 %v5162_v22, %v4499_v20  ;;  %v4363_v26 = vld [vmem:[%s7648_s1 + $0xd0] sm:$0xf]  ;;  %v5128_v27 = vld [vmem:[%s7648_s1 + $0xd4] sm:$0xf0]  ;;  %v4300_v29 = vor.u32 %v5112_v24, %v4299_v23  ;;  %v4291_v35 = vld [vmem:[%s7648_s1 + $0x40] sm:$0xf] }
  0x25   : > { %v4427_v28 = vld [vmem:[%s7648_s1 + $0x150] sm:$0xf]  ;;  %1379 = vmatpush.bf16.msra.mxu0 %v4308_v16  ;;  %v5144_v30 = vld [vmem:[%s7648_s1 + $0x154] sm:$0xf0]  ;;  %v4364_v33 = vor.u32 %v5128_v27, %v4363_v26  ;;  %v5110_v36 = vld [vmem:[%s7648_s1 + $0x44] sm:$0xf0] }
  0x26   : > { %v4491_v31 = vld [vmem:[%s7648_s1 + $0x1d0] sm:$0xf]  ;;  %v5160_v32 = vld [vmem:[%s7648_s1 + $0x1d4] sm:$0xf0]  ;;  %1448 = vmatpush.bf16.msra.mxu1 %v4372_v17  ;;  %v4428_v34 = vor.u32 %v5144_v30, %v4427_v28  ;;  %v4355_v37 = vld [vmem:[%s7648_s1 + $0xc0] sm:$0xf]  ;;  %v4292_v44 = vor.u32 %v5110_v36, %v4291_v35 }
  0x27   : > { %1517 = vmatpush.bf16.msra.mxu2 %v4436_v21  ;;  %v4492_v38 = vor.u32 %v5160_v32, %v4491_v31  ;;  %v5126_v39 = vld [vmem:[%s7648_s1 + $0xc4] sm:$0xf0]  ;;  %v4419_v40 = vld [vmem:[%s7648_s1 + $0x140] sm:$0xf]  ;;  %v4283_v47 = vld [vmem:[%s7648_s1 + $0x30] sm:$0xf] }
  0x28   : > { %1586 = vmatpush.bf16.msra.mxu3 %v4500_v25  ;;  %v5142_v41 = vld [vmem:[%s7648_s1 + $0x144] sm:$0xf0]  ;;  %v4483_v42 = vld [vmem:[%s7648_s1 + $0x1c0] sm:$0xf]  ;;  %v4356_v45 = vor.u32 %v5126_v39, %v4355_v37  ;;  %v5108_v48 = vld [vmem:[%s7648_s1 + $0x34] sm:$0xf0] }
  0x29   : > { %v5158_v43 = vld [vmem:[%s7648_s1 + $0x1c4] sm:$0xf0]  ;;  %1380 = vmatpush.bf16.msra.mxu0 %v4300_v29  ;;  %v4420_v46 = vor.u32 %v5142_v41, %v4419_v40  ;;  %v4347_v49 = vld [vmem:[%s7648_s1 + $0xb0] sm:$0xf]  ;;  %v5124_v51 = vld [vmem:[%s7648_s1 + $0xb4] sm:$0xf0]  ;;  %v4284_v56 = vor.u32 %v5108_v48, %v4283_v47 }
  0x2a   : > { %1449 = vmatpush.bf16.msra.mxu1 %v4364_v33  ;;  %v4484_v50 = vor.u32 %v5158_v43, %v4483_v42  ;;  %v4411_v52 = vld [vmem:[%s7648_s1 + $0x130] sm:$0xf]  ;;  %v5140_v53 = vld [vmem:[%s7648_s1 + $0x134] sm:$0xf0]  ;;  %v4348_v57 = vor.u32 %v5124_v51, %v4347_v49  ;;  %v4275_v59 = vld [vmem:[%s7648_s1 + $0x20] sm:$0xf] }
  0x2b   : > { %1518 = vmatpush.bf16.msra.mxu2 %v4428_v34  ;;  %v4475_v54 = vld [vmem:[%s7648_s1 + $0x1b0] sm:$0xf]  ;;  %v5156_v55 = vld [vmem:[%s7648_s1 + $0x1b4] sm:$0xf0]  ;;  %v4412_v58 = vor.u32 %v5140_v53, %v4411_v52  ;;  %v5106_v60 = vld [vmem:[%s7648_s1 + $0x24] sm:$0xf0] }
  0x2c   : > { %1587 = vmatpush.bf16.msra.mxu3 %v4492_v38  ;;  %v4339_v61 = vld [vmem:[%s7648_s1 + $0xa0] sm:$0xf]  ;;  %v4476_v62 = vor.u32 %v5156_v55, %v4475_v54  ;;  %v5122_v63 = vld [vmem:[%s7648_s1 + $0xa4] sm:$0xf0]  ;;  %v4276_v4 = vor.u32 %v5106_v60, %v4275_v59  ;;  %v4267_v5 = vld [vmem:[%s7648_s1 + $0x10] sm:$0xf] }
  0x2d   : > { %1381 = vmatpush.bf16.msra.mxu0 %v4292_v44  ;;  %v4403_v0 = vld [vmem:[%s7648_s1 + $0x120] sm:$0xf]  ;;  %v5138_v1 = vld [vmem:[%s7648_s1 + $0x124] sm:$0xf0]  ;;  %v5104_v6 = vld [vmem:[%s7648_s1 + $0x14] sm:$0xf0]  ;;  %v4340_v8 = vor.u32 %v5122_v63, %v4339_v61 }
  0x2e   : > { %1450 = vmatpush.bf16.msra.mxu1 %v4356_v45  ;;  %v4467_v2 = vld [vmem:[%s7648_s1 + $0x1a0] sm:$0xf]  ;;  %v5154_v3 = vld [vmem:[%s7648_s1 + $0x1a4] sm:$0xf0]  ;;  %v4331_v7 = vld [vmem:[%s7648_s1 + $0x90] sm:$0xf]  ;;  %v4404_v9 = vor.u32 %v5138_v1, %v4403_v0  ;;  %v4268_v16 = vor.u32 %v5104_v6, %v4267_v5 }
  0x2f   : > { %1519 = vmatpush.bf16.msra.mxu2 %v4420_v46  ;;  %v5120_v10 = vld [vmem:[%s7648_s1 + $0x94] sm:$0xf0]  ;;  %v4395_v11 = vld [vmem:[%s7648_s1 + $0x110] sm:$0xf]  ;;  %v4468_v13 = vor.u32 %v5154_v3, %v4467_v2  ;;  %v4259_v17 = vld [vmem:[%s7648_s1] sm:$0xf] }
  0x30   : > { %1588 = vmatpush.bf16.msra.mxu3 %v4484_v50  ;;  %v5136_v12 = vld [vmem:[%s7648_s1 + $0x114] sm:$0xf0]  ;;  %v4459_v14 = vld [vmem:[%s7648_s1 + $0x190] sm:$0xf]  ;;  %v4332_v18 = vor.u32 %v5120_v10, %v4331_v7  ;;  %v5102_v20 = vld [vmem:[%s7648_s1 + $0x4] sm:$0xf0] }
  0x31   : > { %1382 = vmatpush.bf16.msra.mxu0 %v4284_v56  ;;  %v5152_v15 = vld [vmem:[%s7648_s1 + $0x194] sm:$0xf0]  ;;  %v4396_v19 = vor.u32 %v5136_v12, %v4395_v11  ;;  %v4323_v21 = vld [vmem:[%s7648_s1 + $0x80] sm:$0xf]  ;;  %v5118_v22 = vld [vmem:[%s7648_s1 + $0x84] sm:$0xf0]  ;;  %v4260_v28 = vor.u32 %v5102_v20, %v4259_v17 }
  0x32   : > { %1451 = vmatpush.bf16.msra.mxu1 %v4348_v57  ;;  %v4460_v23 = vor.u32 %v5152_v15, %v4459_v14  ;;  %v4387_v24 = vld [vmem:[%s7648_s1 + $0x100] sm:$0xf]  ;;  %v5134_v25 = vld [vmem:[%s7648_s1 + $0x104] sm:$0xf0]  ;;  %v4324_v29 = vor.u32 %v5118_v22, %v4323_v21  ;;  %v5740_v34 = vld [vmem:[%s5731_s16 + $0x10] sm:$0xff]  ;;  %s5098_s18 = sshll.u32 %s5508_s22, 3 }
  0x33   : > { %1520 = vmatpush.bf16.msra.mxu2 %v4412_v58  ;;  %v4451_v26 = vld [vmem:[%s7648_s1 + $0x180] sm:$0xf]  ;;  %v5150_v27 = vld [vmem:[%s7648_s1 + $0x184] sm:$0xf0]  ;;  %v4388_v30 = vor.u32 %v5134_v25, %v4387_v24  ;;  %v548_v38 = vrot.slane %v5740_v34, 1  ;;  %v620_v41 = vrot.slane %v5740_v34, 2  ;;  %s4187_s17 = scalar_lea.hbm %s7598_s15, %s5098_s18 }
  0x34   : > { %1589 = vmatpush.bf16.msra.mxu3 %v4476_v62  ;;  %v4452_v31 = vor.u32 %v5150_v27, %v4451_v26  ;;  %v5734_v32 = vld [vmem:[%s5731_s16] sm:$0xff]  ;;  %v5737_v33 = vld [vmem:[%s5731_s16 + $0x8] sm:$0xff]  ;;  %v692_v46 = vrot.slane %v5740_v34, 3  ;;  %v5772_v54 = vld [vmem:[%s5731_s16 + $0x18] sm:$0xff]  ;;  %s4191_s24 = sshll.u32 %s4187_s17, 4  ;;  %s4177_s0 = scalar_lea.sflag [#allocation3], %s486_s29  ;;  %s4192_s24 = int_to_ptr.hbm [resolvable:$true] %s4191_s24 }
  0x35   : > { %1383 = vmatpush.bf16.msra.mxu0 %v4276_v4  ;;  %v5744_v35 = vpack.c.bf16 %v5737_v33, %v5734_v32  ;;  %v545_v36 = vrot.slane %v5734_v32, 1  ;;  %v546_v37 = vrot.slane %v5737_v33, 1  ;;  %v617_v39 = vrot.slane %v5734_v32, 2  ;;  %v5775_v55 = vld [vmem:[%s5731_s16 + $0x20] sm:$0xff]  ;;  %v5835_v26 = vld [vmem:[%s5731_s16 + $0x38] sm:$0xff]  ;;  %s5356_s22 = sshra.s32 %s4192_s24, 4  ;;  %s5357_s22 = int_to_ptr.hbm [resolvable:$true] %s5356_s22 }
  0x36   : > { %1452 = vmatpush.bf16.msra.mxu1 %v4340_v8  ;;  %v618_v40 = vrot.slane %v5737_v33, 2  ;;  %v689_v42 = vrot.slane %v5734_v32, 3  ;;  %v690_v45 = vrot.slane %v5737_v33, 3  ;;  %v550_v56 = vrot.slane %v5772_v54, 1  ;;  %v5804_v8 = vld [vmem:[%s5731_s16 + $0x28] sm:$0xff]  ;;  %p5363_p0 = scmp.lt.s32.totalorder %s5357_s22, %s7598_s15 }
  0x37   : > { %1521 = vmatpush.bf16.msra.mxu2 %v4404_v9  ;;  %v547_v43 = vsel %vm544_vm0, %v545_v36, %v546_v37  ;;  %v549_v44 = vsel %vm544_vm0, %v546_v37, %v548_v38  ;;  %v552_v57 = vrot.slane %v5775_v55, 1  ;;  %v622_v58 = vrot.slane %v5772_v54, 2  ;;  %v5807_v9 = vld [vmem:[%s5731_s16 + $0x30] sm:$0xff]  ;;  %v4317_v36 = vld [vmem:[%s7648_s1 + $0x78] sm:$0xf0] }
  0x38   : > { %1590 = vmatpush.bf16.msra.mxu3 %v4468_v13  ;;  %v5757_v47 = vpack.c.bf16 %v549_v44, %v547_v43  ;;  %v619_v48 = vsel %vm616_vm1, %v617_v39, %v618_v40  ;;  %v621_v49 = vsel %vm616_vm1, %v618_v40, %v620_v41  ;;  %v691_v51 = vsel %vm688_vm2, %v689_v42, %v690_v45  ;;  %v4571_v27 = vld [vmem:[%s7648_s1 + $0x270] sm:$0xf] }
  0x39   : > { %1384 = vmatpush.bf16.msra.mxu0 %v4268_v16  ;;  %v5762_v50 = vpack.c.bf16 %v621_v49, %v619_v48  ;;  %v693_v52 = vsel %vm688_vm2, %v690_v45, %v692_v46  ;;  %v624_v59 = vrot.slane %v5775_v55, 2  ;;  %v694_v60 = vrot.slane %v5772_v54, 3 }
  0x3a   : > { %1453 = vmatpush.bf16.msra.mxu1 %v4332_v18  ;;  %v5767_v53 = vpack.c.bf16 %v693_v52, %v691_v51  ;;  %v696_v61 = vrot.slane %v5775_v55, 3  ;;  %v551_v62 = vsel %vm544_vm0, %v548_v38, %v550_v56  ;;  %v553_v63 = vsel %vm544_vm0, %v550_v56, %v552_v57 }
  0x3b   : > { %1522 = vmatpush.bf16.msra.mxu2 %v4396_v19  ;;  %v623_v0 = vsel %vm616_vm1, %v620_v41, %v622_v58  ;;  %v625_v1 = vsel %vm616_vm1, %v622_v58, %v624_v59  ;;  %v5789_v2 = vpack.c.bf16 %v5772_v54, %v5740_v34  ;;  %v695_v3 = vsel %vm688_vm2, %v692_v46, %v694_v60 }
  0x3c   : > { %1591 = vmatpush.bf16.msra.mxu3 %v4460_v23  ;;  %7650 = vst [vmem:[#allocation10_spill] sm:$0xff] %v5767_v53  ;;  %v697_v4 = vsel %vm688_vm2, %v694_v60, %v696_v61  ;;  %v5793_v5 = vpack.c.bf16 %v553_v63, %v551_v62  ;;  %v5795_v6 = vpack.c.bf16 %v625_v1, %v623_v0  ;;  %v554_v10 = vrot.slane %v5804_v8, 1  ;;  %v5882_v60 = vld [vmem:[%s5731_s16 + $0x50] sm:$0xff]  ;;  %v5178_v62 = vld [vmem:[%s7648_s1 + $0x264] sm:$0xf0] }
  0x3d   : > { %1385 = vmatpush.bf16.msra.mxu0 %v4260_v28  ;;  %v5797_v7 = vpack.c.bf16 %v697_v4, %v695_v3  ;;  %v556_v11 = vrot.slane %v5807_v9, 1  ;;  %v626_v12 = vrot.slane %v5804_v8, 2  ;;  %v628_v13 = vrot.slane %v5807_v9, 2  ;;  %v5180_v28 = vld [vmem:[%s7648_s1 + $0x274] sm:$0xf0] }
  0x3e   : > { %1454 = vmatpush.bf16.msra.mxu1 %v4324_v29  ;;  %v698_v14 = vrot.slane %v5804_v8, 3  ;;  %v700_v15 = vrot.slane %v5807_v9, 3  ;;  %v555_v16 = vsel %vm544_vm0, %v552_v57, %v554_v10  ;;  %v5821_v20 = vpack.c.bf16 %v5804_v8, %v5775_v55  ;;  %v5845_v29 = vld [vmem:[%s5731_s16 + $0x40] sm:$0xff]  ;;  %v4309_v1 = vld [vmem:[%s7648_s1 + $0x68] sm:$0xf0] }
  0x3f   : > { %1523 = vmatpush.bf16.msra.mxu2 %v4388_v30  ;;  %7651 = vst [vmem:[#allocation11_spill] sm:$0xff] %v5797_v7  ;;  %v557_v17 = vsel %vm544_vm0, %v554_v10, %v556_v11  ;;  %v627_v18 = vsel %vm616_vm1, %v624_v59, %v626_v12  ;;  %v629_v19 = vsel %vm616_vm1, %v626_v12, %v628_v13  ;;  %v558_v38 = vrot.slane %v5835_v26, 1  ;;  %v5879_v59 = vld [vmem:[%s5731_s16 + $0x48] sm:$0xff]  ;;  %v5113_v63 = vld [vmem:[%s7648_s1 + $0x64] sm:$0xf] }
  0x40   : > { %1592 = vmatpush.bf16.msra.mxu3 %v4452_v31  ;;  %1386 = vmatmul.bf16.vlgmr.msra.gmra.mxu0 %v5744_v35  ;;  %v699_v21 = vsel %vm688_vm2, %v696_v61, %v698_v14  ;;  %v701_v22 = vsel %vm688_vm2, %v698_v14, %v700_v15  ;;  %v5825_v23 = vpack.c.bf16 %v557_v17, %v555_v16  ;;  %v5115_v31 = vld [vmem:[%s7648_s1 + $0x74] sm:$0xf]  ;;  %v560_v39 = vrot.slane %v5845_v29, 1  ;;  %v4563_v61 = vld [vmem:[%s7648_s1 + $0x260] sm:$0xf] }
  0x41   : > { %1455 = vmatmul.bf16.vlgmr.msra.gmra.mxu1 %v5757_v47  ;;  %v5827_v24 = vpack.c.bf16 %v629_v19, %v627_v18  ;;  %v5829_v25 = vpack.c.bf16 %v701_v22, %v699_v21  ;;  %v4572_v30 = vor.u32 %v5180_v28, %v4571_v27  ;;  %v4320_v37 = vor.u32 %v5115_v31, %v4317_v36  ;;  %v5924_v31 = vld [vmem:[%s5731_s16 + $0x58] sm:$0xff]  ;;  %v5927_v36 = vld [vmem:[%s5731_s16 + $0x60] sm:$0xff] }
  0x42   : > { %1524 = vmatmul.bf16.vlgmr.msra.gmra.mxu2 %v5762_v50  ;;  %v630_v40 = vrot.slane %v5835_v26, 2  ;;  %v632_v41 = vrot.slane %v5845_v29, 2  ;;  %v702_v42 = vrot.slane %v5835_v26, 3  ;;  %v704_v43 = vrot.slane %v5845_v29, 3 }
  0x43   : > { %1593 = vmatmul.bf16.vlgmr.msra.gmra.mxu3 %v5767_v53  ;;  %7652 = vst [vmem:[#allocation12_spill] sm:$0xff] %v5829_v25  ;;  %1654 = vmatpush.bf16.msrb.mxu0 %v4572_v30  ;;  %v559_v44 = vsel %vm544_vm0, %v556_v11, %v558_v38  ;;  %v561_v45 = vsel %vm544_vm0, %v558_v38, %v560_v39  ;;  %v562_v4 = vrot.slane %v5879_v59, 1  ;;  %v564_v10 = vrot.slane %v5882_v60, 1 }
  0x44   : > { %1723 = vmatpush.bf16.msrb.mxu1 %v4320_v37  ;;  %v631_v46 = vsel %vm616_vm1, %v628_v13, %v630_v40  ;;  %v633_v48 = vsel %vm616_vm1, %v630_v40, %v632_v41  ;;  %v5865_v49 = vpack.c.bf16 %v5835_v26, %v5807_v9  ;;  %v703_v51 = vsel %vm688_vm2, %v700_v15, %v702_v42 }
  0x45   : > { %v705_v52 = vsel %vm688_vm2, %v702_v42, %v704_v43  ;;  %v5869_v56 = vpack.c.bf16 %v561_v45, %v559_v44  ;;  %v5871_v57 = vpack.c.bf16 %v633_v48, %v631_v46  ;;  %v4564_v0 = vor.u32 %v5178_v62, %v4563_v61 }
  0x46   : > { %v5873_v58 = vpack.c.bf16 %v705_v52, %v703_v51  ;;  %v4312_v3 = vor.u32 %v5113_v63, %v4309_v1  ;;  %v634_v11 = vrot.slane %v5879_v59, 2  ;;  %v636_v12 = vrot.slane %v5882_v60, 2  ;;  %v4555_v1 = vld [vmem:[%s7648_s1 + $0x250] sm:$0xf] }
  0x47   : > { %1655 = vmatpush.bf16.msrb.mxu0 %v4564_v0  ;;  %v706_v13 = vrot.slane %v5879_v59, 3  ;;  %v708_v14 = vrot.slane %v5882_v60, 3  ;;  %v563_v15 = vsel %vm544_vm0, %v560_v39, %v562_v4  ;;  %v565_v16 = vsel %vm544_vm0, %v562_v4, %v564_v10  ;;  %v5955_v0 = vld [vmem:[%s5731_s16 + $0x68] sm:$0xff]  ;;  %v5965_v4 = vld [vmem:[%s5731_s16 + $0x70] sm:$0xff] }
  0x48   : > { %7653 = vst [vmem:[#allocation13_spill] sm:$0xff] %v5873_v58  ;;  %1724 = vmatpush.bf16.msrb.mxu1 %v4312_v3  ;;  %v635_v17 = vsel %vm616_vm1, %v632_v41, %v634_v11  ;;  %v637_v18 = vsel %vm616_vm1, %v634_v11, %v636_v12  ;;  %v5909_v19 = vpack.c.bf16 %v5879_v59, %v5845_v29  ;;  %v566_v37 = vrot.slane %v5924_v31, 1  ;;  %v5176_v3 = vld [vmem:[%s7648_s1 + $0x254] sm:$0xf0]  ;;  %v5111_v11 = vld [vmem:[%s7648_s1 + $0x54] sm:$0xf] }
  0x49   : > { %v707_v21 = vsel %vm688_vm2, %v704_v43, %v706_v13  ;;  %v709_v22 = vsel %vm688_vm2, %v706_v13, %v708_v14  ;;  %v5913_v27 = vpack.c.bf16 %v565_v16, %v563_v15  ;;  %v5915_v28 = vpack.c.bf16 %v637_v18, %v635_v17 }
  0x4a   : > { %v5917_v30 = vpack.c.bf16 %v709_v22, %v707_v21  ;;  %v568_v38 = vrot.slane %v5927_v36, 1  ;;  %v638_v39 = vrot.slane %v5924_v31, 2  ;;  %v640_v40 = vrot.slane %v5927_v36, 2 }
  0x4b   : > { %v710_v41 = vrot.slane %v5924_v31, 3  ;;  %v712_v42 = vrot.slane %v5927_v36, 3  ;;  %v567_v43 = vsel %vm544_vm0, %v564_v10, %v566_v37  ;;  %v5941_v48 = vpack.c.bf16 %v5924_v31, %v5882_v60 }
  0x4c   : > { %7654 = vst [vmem:[#allocation14_spill] sm:$0xff] %v5917_v30  ;;  %v569_v44 = vsel %vm544_vm0, %v566_v37, %v568_v38  ;;  %v639_v45 = vsel %vm616_vm1, %v636_v12, %v638_v39  ;;  %v641_v46 = vsel %vm616_vm1, %v638_v39, %v640_v40  ;;  %v4556_v10 = vor.u32 %v5176_v3, %v4555_v1  ;;  %v4301_v12 = vld [vmem:[%s7648_s1 + $0x58] sm:$0xf0] }
  0x4d   : > { %v711_v51 = vsel %vm688_vm2, %v708_v14, %v710_v41  ;;  %v713_v52 = vsel %vm688_vm2, %v710_v41, %v712_v42  ;;  %v5945_v61 = vpack.c.bf16 %v569_v44, %v567_v43  ;;  %v5947_v62 = vpack.c.bf16 %v641_v46, %v639_v45 }
  0x4e   : > { %v5949_v63 = vpack.c.bf16 %v713_v52, %v711_v51  ;;  %v4304_v13 = vor.u32 %v5111_v11, %v4301_v12  ;;  %1656 = vmatpush.bf16.msrb.mxu0 %v4556_v10  ;;  %v570_v14 = vrot.slane %v5955_v0, 1  ;;  %v572_v15 = vrot.slane %v5965_v4, 1 }
  0x4f   : > { %v642_v16 = vrot.slane %v5955_v0, 2  ;;  %v644_v17 = vrot.slane %v5965_v4, 2  ;;  %v714_v18 = vrot.slane %v5955_v0, 3  ;;  %v716_v21 = vrot.slane %v5965_v4, 3 }
  0x50   : > { %1391 = vmatmul.bf16.gmra.mxu0 %v5789_v2  ;;  %7655 = vst [vmem:[#allocation15_spill] sm:$0xff] %v5949_v63  ;;  %1725 = vmatpush.bf16.msrb.mxu1 %v4304_v13  ;;  %v571_v22 = vsel %vm544_vm0, %v568_v38, %v570_v14  ;;  %v573_v37 = vsel %vm544_vm0, %v570_v14, %v572_v15  ;;  %v6000_v38 = vld [vmem:[%s5731_s16 + $0x78] sm:$0xff]  ;;  %v4547_v13 = vld [vmem:[%s7648_s1 + $0x240] sm:$0xf]  ;;  %v5174_v14 = vld [vmem:[%s7648_s1 + $0x244] sm:$0xf0] }
  0x51   : > { %1460 = vmatmul.bf16.gmra.mxu1 %v5793_v5  ;;  %v643_v39 = vsel %vm616_vm1, %v640_v40, %v642_v16  ;;  %v645_v41 = vsel %vm616_vm1, %v642_v16, %v644_v17  ;;  %v5985_v43 = vpack.c.bf16 %v5955_v0, %v5927_v36  ;;  %v715_v44 = vsel %vm688_vm2, %v712_v42, %v714_v18  ;;  %v6003_v40 = vld [vmem:[%s5731_s16 + $0x80] sm:$0xff] }
  0x52   : > { %1529 = vmatmul.bf16.gmra.mxu2 %v5795_v6  ;;  %v717_v45 = vsel %vm688_vm2, %v714_v18, %v716_v21  ;;  %v5989_v46 = vpack.c.bf16 %v573_v37, %v571_v22  ;;  %v5991_v51 = vpack.c.bf16 %v645_v41, %v643_v39  ;;  %v574_v42 = vrot.slane %v6000_v38, 1 }
  0x53   : > { %1598 = vmatmul.bf16.gmra.mxu3 %v5797_v7  ;;  %v5993_v52 = vpack.c.bf16 %v717_v45, %v715_v44  ;;  %v576_v1 = vrot.slane %v6003_v40, 1  ;;  %v646_v3 = vrot.slane %v6000_v38, 2  ;;  %v648_v10 = vrot.slane %v6003_v40, 2 }
  0x54   : > { %v718_v11 = vrot.slane %v6000_v38, 3  ;;  %v720_v12 = vrot.slane %v6003_v40, 3  ;;  %v4548_v16 = vor.u32 %v5174_v14, %v4547_v13  ;;  %v575_v18 = vsel %vm544_vm0, %v572_v15, %v574_v42 }
  0x55   : > { %7656 = vst [vmem:[#allocation16_spill] sm:$0xff] %v5993_v52  ;;  %v577_v22 = vsel %vm544_vm0, %v574_v42, %v576_v1  ;;  %v647_v37 = vsel %vm616_vm1, %v644_v17, %v646_v3  ;;  %v649_v39 = vsel %vm616_vm1, %v646_v3, %v648_v10  ;;  %v6023_v41 = vpack.c.bf16 %v6000_v38, %v5965_v4  ;;  %v5109_v17 = vld [vmem:[%s7648_s1 + $0x44] sm:$0xf]  ;;  %v4293_v42 = vld [vmem:[%s7648_s1 + $0x48] sm:$0xf0] }
  0x56   : > { %1657 = vmatpush.bf16.msrb.mxu0 %v4548_v16  ;;  %v719_v44 = vsel %vm688_vm2, %v716_v21, %v718_v11  ;;  %v721_v45 = vsel %vm688_vm2, %v718_v11, %v720_v12  ;;  %v6027_v13 = vpack.c.bf16 %v577_v22, %v575_v18  ;;  %v6029_v15 = vpack.c.bf16 %v649_v39, %v647_v37  ;;  %v6044_v21 = vld [vmem:[%s5731_s16 + $0x88] sm:$0xff]  ;;  %v6047_v11 = vld [vmem:[%s5731_s16 + $0x90] sm:$0xff]  ;;  %v6054_v22 = vld [vmem:[%s7585_s2] sm:$0x3] }
  0x57   : > { %v6037_v3 = vpack.c.bf16 %v721_v45, %v719_v44  ;;  %v4296_v14 = vor.u32 %v5109_v17, %v4293_v42  ;;  %7660 = vst [vmem:[#allocation20_spill] sm:$0xff] %v6044_v21  ;;  %v578_v16 = vrot.slane %v6044_v21, 1  ;;  %v7609_v18 = vrot.slane %v6047_v11, 1 }
  0x58   : > { %7657 = vst [vmem:[#allocation17_spill] sm:$0xff] %v6027_v13  ;;  %v650_v37 = vrot.slane %v6044_v21, 2  ;;  %v7611_v39 = vrot.slane %v6047_v11, 2  ;;  %v722_v44 = vrot.slane %v6044_v21, 3  ;;  %v6061_v17 = vperm.slane %v6054_v22, 0 }
  0x59   : > { %7658 = vst [vmem:[#allocation18_spill] sm:$0xff] %v6029_v15  ;;  %1726 = vmatpush.bf16.msrb.mxu1 %v4296_v14  ;;  %v579_v42 = vsel %vm544_vm0, %v576_v1, %v578_v16  ;;  %v581_v14 = vsel %vm544_vm0, %v578_v16, %v7609_v18  ;;  %v6073_v45 = vpack.c.bf16 %v6044_v21, %v6003_v40  ;;  %v7664_v1 = vrot.slane %v6047_v11, 3  ;;  %v5127_v21 = vld [vmem:[%s7648_s1 + $0xd4] sm:$0xf] }
  0x5a   : > { %7659 = vst [vmem:[#allocation19_spill] sm:$0xff] %v6037_v3  ;;  %v6079_v16 = vpack.c.bf16 %v581_v14, %v579_v42  ;;  %v6095_v42 = vld [vmem:[%s5731_s16 + $0x98] sm:$0xff] }
  0x5b   : > { %7661 = vst [vmem:[#allocation21_spill] sm:$0xff] %v6047_v11  ;;  %v4445_v14 = vld [vmem:[%s7648_s1 + $0x178] sm:$0xf0]  ;;  %v582_v53 = vrot.slane %v6095_v42, 1 }
  0x5c   : > { %7662 = vst [vmem:[#allocation22_spill] sm:$0xff] %v6054_v22 }
  0x5d   : > { %7663 = vst [vmem:[#allocation23_spill] sm:$0xff] %v6073_v45 }
  0x5e   : > { %7665 = vst [vmem:[#allocation24_spill] sm:$0xff] %v6079_v16 }
  0x5f   : > { %7668 = vst [vmem:[#allocation27_spill] sm:$0xff] %v6095_v42 }
  0x60   : > { %1396 = vmatmul.bf16.gmra.mxu0 %v5821_v20 }
  0x61   : > { %1465 = vmatmul.bf16.gmra.mxu1 %v5825_v23 }
  0x62   : > { %1534 = vmatmul.bf16.gmra.mxu2 %v5827_v24 }
  0x63   : > { %1603 = vmatmul.bf16.gmra.mxu3 %v5829_v25 }
  0x70   : > { %1401 = vmatmul.bf16.gmra.mxu0 %v5865_v49 }
  0x71   : > { %1470 = vmatmul.bf16.gmra.mxu1 %v5869_v56 }
  0x72   : > { %1539 = vmatmul.bf16.gmra.mxu2 %v5871_v57 }
  0x73   : > { %1608 = vmatmul.bf16.gmra.mxu3 %v5873_v58 }
  0x80   : > { %1406 = vmatmul.bf16.gmra.mxu0 %v5909_v19 }
  0x81   : > { %1475 = vmatmul.bf16.gmra.mxu1 %v5913_v27 }
  0x82   : > { %1544 = vmatmul.bf16.gmra.mxu2 %v5915_v28 }
  0x83   : > { %1613 = vmatmul.bf16.gmra.mxu3 %v5917_v30  ;;  %v725_v30 = vsel %vm688_vm2, %v722_v44, %v7664_v1 }
  0x90   : > { %1411 = vmatmul.bf16.gmra.mxu0 %v5941_v48 }
  0x91   : > { %1480 = vmatmul.bf16.gmra.mxu1 %v5945_v61 }
  0x92   : > { %1549 = vmatmul.bf16.gmra.mxu2 %v5947_v62 }
  0x93   : > { %1618 = vmatmul.bf16.gmra.mxu3 %v5949_v63  ;;  %v723_v63 = vsel %vm688_vm2, %v720_v12, %v722_v44  ;;  %v5131_v12 = vld [vmem:[%s7648_s1 + $0xf4] sm:$0xf]  ;;  %v4381_v44 = vld [vmem:[%s7648_s1 + $0xf8] sm:$0xf0] }
  0xa0   : > { %1416 = vmatmul.bf16.gmra.mxu0 %v5985_v43 }
  0xa1   : > { %1485 = vmatmul.bf16.gmra.mxu1 %v5989_v46 }
  0xa2   : > { %1554 = vmatmul.bf16.gmra.mxu2 %v5991_v51 }
  0xa3   : > { %1623 = vmatmul.bf16.gmra.mxu3 %v5993_v52  ;;  %v653_v52 = vsel %vm616_vm1, %v650_v37, %v7611_v39 }
  0xb0   : > { %1421 = vmatmul.bf16.gmra.mxu0 %v6023_v41 }
  0xb1   : > { %1490 = vmatmul.bf16.gmra.mxu1 %v6027_v13 }
  0xb2   : > { %1559 = vmatmul.bf16.gmra.mxu2 %v6029_v15  ;;  %v4421_v15 = vld [vmem:[%s7648_s1 + $0x148] sm:$0xf0] }
  0xb3   : > { %1628 = vmatmul.bf16.gmra.mxu3 %v6037_v3  ;;  %v651_v3 = vsel %vm616_vm1, %v648_v10, %v650_v37  ;;  %v6084_v37 = vpack.c.bf16 %v725_v30, %v723_v63  ;;  %v4539_v30 = vld [vmem:[%s7648_s1 + $0x230] sm:$0xf]  ;;  %v5172_v63 = vld [vmem:[%s7648_s1 + $0x234] sm:$0xf0] }
  0xb4   : > { %v6082_v25 = vpack.c.bf16 %v653_v52, %v651_v3  ;;  %v4384_v52 = vor.u32 %v5131_v12, %v4381_v44  ;;  %v5147_v3 = vld [vmem:[%s7648_s1 + $0x174] sm:$0xf]  ;;  %v4373_v12 = vld [vmem:[%s7648_s1 + $0xe8] sm:$0xf0] }
  0xb5   : > { %7667 = vst [vmem:[#allocation26_spill] sm:$0xff] %v6084_v37  ;;  %v4448_v1 = vor.u32 %v5147_v3, %v4445_v14 }
  0xb6   : > { %7666 = vst [vmem:[#allocation25_spill] sm:$0xff] %v6082_v25  ;;  %1792 = vmatpush.bf16.msrb.mxu2 %v4384_v52 }
  0xb7   : > { %1861 = vmatpush.bf16.msrb.mxu3 %v4448_v1 }
  0xbd   : > { %v1387_v58 = vpop.f32.mrf.mxu0 }
  0xbe   : > { %v1388_v10 = vadd.f32 %v1387_v58, %v6061_v17  ;;  %v1456_v18 = vpop.f32.mrf.mxu1  ;;  %v6098_v58 = vld [vmem:[%s5731_s16 + $0xa0] sm:$0xff] }
  0xbf   : > { %7669 = vst [vmem:[#allocation28_spill] sm:$0xff] %v6098_v58  ;;  %v7621_v1 = vrot.slane %v6098_v58, 3 }
  0xc0   : > { %v1457_v39 = vadd.f32 %v1456_v18, %v1388_v10  ;;  %1426 = vmatmul.bf16.gmra.mxu0 %v6073_v45  ;;  %v4540_v18 = vor.u32 %v5172_v63, %v4539_v30  ;;  %v5129_v10 = vld [vmem:[%s7648_s1 + $0xe4] sm:$0xf] }
  0xc1   : > { %1495 = vmatmul.bf16.gmra.mxu1 %v6079_v16  ;;  %v4376_v52 = vor.u32 %v5129_v10, %v4373_v12  ;;  %v4285_v16 = vld [vmem:[%s7648_s1 + $0x38] sm:$0xf0]  ;;  %v5145_v30 = vld [vmem:[%s7648_s1 + $0x164] sm:$0xf]  ;;  %v4437_v12 = vld [vmem:[%s7648_s1 + $0x168] sm:$0xf0] }
  0xc2   : > { %1564 = vmatmul.bf16.gmra.mxu2 %v6082_v25  ;;  %1658 = vmatpush.bf16.msrb.mxu0 %v4540_v18  ;;  %v5107_v25 = vld [vmem:[%s7648_s1 + $0x34] sm:$0xf]  ;;  %v654_v18 = vrot.slane %v6095_v42, 2  ;;  %v4440_v22 = vor.u32 %v5145_v30, %v4437_v12 }
  0xc3   : > { %1633 = vmatmul.bf16.gmra.mxu3 %v6084_v37  ;;  %v4288_v10 = vor.u32 %v5107_v25, %v4285_v16  ;;  %1793 = vmatpush.bf16.msrb.mxu2 %v4376_v52  ;;  %v7671_v16 = vrot.slane %v6047_v11, 1  ;;  %v5143_v30 = vld [vmem:[%s7648_s1 + $0x154] sm:$0xf] }
  0xc4   : > { %1862 = vmatpush.bf16.msrb.mxu3 %v4440_v22  ;;  %v7676_v22 = vrot.slane %v6047_v11, 3 }
  0xc5   : > { %v1525_v44 = vpop.f32.mrf.mxu2  ;;  %v1389_v7 = vpop.f32.mrf.mxu0  ;;  %1727 = vmatpush.bf16.msrb.mxu1 %v4288_v10  ;;  %v583_v52 = vsel %vm544_vm0, %v7671_v16, %v582_v53 }
  0xc6   : > { %v1526_v63 = vadd.f32 %v1525_v44, %v1457_v39  ;;  %v1390_v37 = vadd.f32 %v1389_v7, %v6061_v17  ;;  %v1458_v3 = vpop.f32.mrf.mxu1  ;;  %v1594_v14 = vpop.f32.mrf.mxu3  ;;  %v726_v7 = vrot.slane %v6095_v42, 3  ;;  %v4365_v39 = vld [vmem:[%s7648_s1 + $0xd8] sm:$0xf0] }
  0xc7   : > { %v4368_v25 = vor.u32 %v5127_v21, %v4365_v39  ;;  %v7674_v39 = vrot.slane %v6098_v58, 2 }
  0xc8   : > { %v1459_v44 = vadd.f32 %v1458_v3, %v1390_v37  ;;  %v6138_v45 = vadd.f32 %v1594_v14, %v1526_v63  ;;  %v7672_v37 = vrot.slane %v6098_v58, 1  ;;  %v4429_v3 = vld [vmem:[%s7648_s1 + $0x158] sm:$0xf0]  ;;  %v7673_v14 = vrot.slane %v6047_v11, 2 }
  0xc9   : > { %v657_v10 = vsel %vm616_vm1, %v654_v18, %v7674_v39  ;;  %1794 = vmatpush.bf16.msrb.mxu2 %v4368_v25  ;;  %v4432_v12 = vor.u32 %v5143_v30, %v4429_v3  ;;  %v727_v16 = vsel %vm688_vm2, %v7676_v22, %v726_v7 }
  0xca   : > { %7670 = vst [vmem:[#allocation29_spill] sm:$0xff] %v6138_v45  ;;  %v585_v63 = vsel %vm544_vm0, %v582_v53, %v7672_v37  ;;  %v655_v21 = vsel %vm616_vm1, %v7673_v14, %v654_v18  ;;  %v6167_v53 = vpack.c.bf16 %v6095_v42, %v6047_v11  ;;  %v729_v37 = vsel %vm688_vm2, %v726_v7, %v7621_v1  ;;  %v5125_v14 = vld [vmem:[%s7648_s1 + $0xc4] sm:$0xf]  ;;  %v4357_v18 = vld [vmem:[%s7648_s1 + $0xc8] sm:$0xf0] }
  0xcb   : > { %v6181_v3 = vpack.c.bf16 %v585_v63, %v583_v52  ;;  %v4360_v39 = vor.u32 %v5125_v14, %v4357_v18  ;;  %v6184_v1 = vpack.c.bf16 %v657_v10, %v655_v21  ;;  %1863 = vmatpush.bf16.msrb.mxu3 %v4432_v12  ;;  %v5141_v11 = vld [vmem:[%s7648_s1 + $0x144] sm:$0xf]  ;;  %v6192_v52 = vpack.c.bf16 %v729_v37, %v727_v16  ;;  %v6195_v63 = vld [vmem:[%s5731_s16 + $0xa8] sm:$0xff]  ;;  %v6201_v21 = vld [vmem:[%s5731_s16 + $0xb0] sm:$0xff] }
  0xcc   : > { %7675 = vst [vmem:[#allocation30_spill] sm:$0xff] %v6167_v53  ;;  %v5123_v10 = vld [vmem:[%s7648_s1 + $0xb4] sm:$0xf]  ;;  %v4349_v12 = vld [vmem:[%s7648_s1 + $0xb8] sm:$0xf0]  ;;  %v658_v37 = vrot.slane %v6195_v63, 2 }
  0xcd   : > { %v1527_v25 = vpop.f32.mrf.mxu2  ;;  %v1392_v30 = vpop.f32.mrf.mxu0  ;;  %7677 = vst [vmem:[#allocation31_spill] sm:$0xff] %v6181_v3  ;;  %1795 = vmatpush.bf16.msrb.mxu2 %v4360_v39  ;;  %v4352_v16 = vor.u32 %v5123_v10, %v4349_v12  ;;  %v4531_v39 = vld [vmem:[%s7648_s1 + $0x220] sm:$0xf] }
  0xce   : > { %v1528_v22 = vadd.f32 %v1527_v25, %v1459_v44  ;;  %v1393_v42 = vadd.f32 %v1392_v30, %v6061_v17  ;;  %v1461_v45 = vpop.f32.mrf.mxu1  ;;  %v1596_v7 = vpop.f32.mrf.mxu3  ;;  %7678 = vst [vmem:[#allocation32_spill] sm:$0xff] %v6184_v1  ;;  %v4424_v44 = vor.u32 %v5141_v11, %v4421_v15  ;;  %v586_v15 = vrot.slane %v6195_v63, 1  ;;  %v5139_v11 = vld [vmem:[%s7648_s1 + $0x134] sm:$0xf] }
  0xcf   : > { %7679 = vst [vmem:[#allocation33_spill] sm:$0xff] %v6192_v52 }
  0xd0   : > { %7680 = vst [vmem:[#allocation34_spill] sm:$0xff] %v6195_v63  ;;  %v1462_v14 = vadd.f32 %v1461_v45, %v1393_v42  ;;  %v6197_v18 = vadd.f32 %v1596_v7, %v1528_v22  ;;  %1431 = vmatmul.bf16.gmra.mxu0 %v6167_v53  ;;  %1864 = vmatpush.bf16.msrb.mxu3 %v4424_v44  ;;  %v4413_v45 = vld [vmem:[%s7648_s1 + $0x138] sm:$0xf0]  ;;  %v5170_v22 = vld [vmem:[%s7648_s1 + $0x224] sm:$0xf0] }
  0xd1   : > { %1500 = vmatmul.bf16.gmra.mxu1 %v6181_v3  ;;  %1796 = vmatpush.bf16.msrb.mxu2 %v4352_v16  ;;  %v4416_v30 = vor.u32 %v5139_v11, %v4413_v45  ;;  %v5105_v7 = vld [vmem:[%s7648_s1 + $0x24] sm:$0xf]  ;;  %v4532_v12 = vor.u32 %v5170_v22, %v4531_v39  ;;  %v4277_v16 = vld [vmem:[%s7648_s1 + $0x28] sm:$0xf0] }
  0xd2   : > { %7681 = vst [vmem:[#allocation35_spill] sm:$0xff] %v6197_v18  ;;  %1569 = vmatmul.bf16.gmra.mxu2 %v6184_v1  ;;  %v5121_v11 = vld [vmem:[%s7648_s1 + $0xa4] sm:$0xf]  ;;  %v4341_v45 = vld [vmem:[%s7648_s1 + $0xa8] sm:$0xf0]  ;;  %v4280_v3 = vor.u32 %v5105_v7, %v4277_v16  ;;  %v730_v18 = vrot.slane %v6195_v63, 3 }
  0xd3   : > { %1638 = vmatmul.bf16.gmra.mxu3 %v6192_v52  ;;  %v4344_v39 = vor.u32 %v5121_v11, %v4341_v45  ;;  %v5137_v22 = vld [vmem:[%s7648_s1 + $0x124] sm:$0xf]  ;;  %v4405_v53 = vld [vmem:[%s7648_s1 + $0x128] sm:$0xf0]  ;;  %1659 = vmatpush.bf16.msrb.mxu0 %v4532_v12  ;;  %v5168_v7 = vld [vmem:[%s7648_s1 + $0x214] sm:$0xf0] }
  0xd4   : > { %1865 = vmatpush.bf16.msrb.mxu3 %v4416_v30  ;;  %1728 = vmatpush.bf16.msrb.mxu1 %v4280_v3  ;;  %v4523_v30 = vld [vmem:[%s7648_s1 + $0x210] sm:$0xf]  ;;  %v5103_v16 = vld [vmem:[%s7648_s1 + $0x14] sm:$0xf]  ;;  %v7683_v12 = vrot.slane %v6098_v58, 1  ;;  %v7685_v45 = vrot.slane %v6098_v58, 2 }
  0xd5   : > { %v1530_v44 = vpop.f32.mrf.mxu2  ;;  %v1394_v10 = vpop.f32.mrf.mxu0  ;;  %1797 = vmatpush.bf16.msrb.mxu2 %v4344_v39  ;;  %v4333_v11 = vld [vmem:[%s7648_s1 + $0x98] sm:$0xf0] }
  0xd6   : > { %v1531_v25 = vadd.f32 %v1530_v44, %v1462_v14  ;;  %v1395_v42 = vadd.f32 %v1394_v10, %v6061_v17  ;;  %v1463_v52 = vpop.f32.mrf.mxu1  ;;  %v1599_v1 = vpop.f32.mrf.mxu3  ;;  %v4408_v14 = vor.u32 %v5137_v22, %v4405_v53  ;;  %v587_v53 = vsel %vm544_vm0, %v7683_v12, %v586_v15  ;;  %v5135_v12 = vld [vmem:[%s7648_s1 + $0x114] sm:$0xf] }
  0xd7   : > { %v659_v39 = vsel %vm616_vm1, %v7685_v45, %v658_v37  ;;  %v7686_v22 = vrot.slane %v6201_v21, 2  ;;  %v6289_v45 = vpack.c.bf16 %v6195_v63, %v6098_v58 }
  0xd8   : > { %v1464_v44 = vadd.f32 %v1463_v52, %v1395_v42  ;;  %v6249_v10 = vadd.f32 %v1599_v1, %v1531_v25  ;;  %v7684_v1 = vrot.slane %v6201_v21, 1  ;;  %v4524_v52 = vor.u32 %v5168_v7, %v4523_v30  ;;  %v4269_v42 = vld [vmem:[%s7648_s1 + $0x18] sm:$0xf0]  ;;  %v5119_v25 = vld [vmem:[%s7648_s1 + $0x94] sm:$0xf]  ;;  %1866 = vmatpush.bf16.msrb.mxu3 %v4408_v14 }
  0xd9   : > { %v4272_v30 = vor.u32 %v5103_v16, %v4269_v42  ;;  %v4336_v7 = vor.u32 %v5119_v25, %v4333_v11  ;;  %v7688_v14 = vrot.slane %v6201_v21, 3  ;;  %v4515_v42 = vld [vmem:[%s7648_s1 + $0x200] sm:$0xf]  ;;  %v5101_v25 = vld [vmem:[%s7648_s1 + $0x4] sm:$0xf] }
  0xda   : > { %7682 = vst [vmem:[#allocation36_spill] sm:$0xff] %v6249_v10  ;;  %v589_v3 = vsel %vm544_vm0, %v586_v15, %v7684_v1  ;;  %v661_v15 = vsel %vm616_vm1, %v658_v37, %v7686_v22  ;;  %v4397_v1 = vld [vmem:[%s7648_s1 + $0x118] sm:$0xf0]  ;;  %1660 = vmatpush.bf16.msrb.mxu0 %v4524_v52  ;;  %v7687_v10 = vrot.slane %v6098_v58, 3  ;;  %v5166_v52 = vld [vmem:[%s7648_s1 + $0x204] sm:$0xf0] }
  0xdb   : > { %v4400_v13 = vor.u32 %v5135_v12, %v4397_v1  ;;  %v733_v16 = vsel %vm688_vm2, %v730_v18, %v7688_v14  ;;  %1729 = vmatpush.bf16.msrb.mxu1 %v4272_v30  ;;  %1798 = vmatpush.bf16.msrb.mxu2 %v4336_v7  ;;  %v6306_v22 = vpack.c.bf16 %v589_v3, %v587_v53  ;;  %v4261_v30 = vld [vmem:[%s7648_s1 + $0x8] sm:$0xf0]  ;;  %v5117_v7 = vld [vmem:[%s7648_s1 + $0x84] sm:$0xf] }
  0xdc   : > { %v731_v37 = vsel %vm688_vm2, %v7687_v10, %v730_v18  ;;  %v6308_v12 = vpack.c.bf16 %v661_v15, %v659_v39  ;;  %v4516_v18 = vor.u32 %v5166_v52, %v4515_v42  ;;  %v4325_v1 = vld [vmem:[%s7648_s1 + $0x88] sm:$0xf0]  ;;  %v4264_v39 = vor.u32 %v5101_v25, %v4261_v30  ;;  %v5133_v42 = vld [vmem:[%s7648_s1 + $0x104] sm:$0xf] }
  0xdd   : > { %v1532_v11 = vpop.f32.mrf.mxu2  ;;  %v1397_v10 = vpop.f32.mrf.mxu0  ;;  %7689 = vst [vmem:[#allocation37_spill] sm:$0xff] %v6306_v22  ;;  %1867 = vmatpush.bf16.msrb.mxu3 %v4400_v13  ;;  %v4328_v15 = vor.u32 %v5117_v7, %v4325_v1  ;;  %v4389_v52 = vld [vmem:[%s7648_s1 + $0x108] sm:$0xf0]  ;;  %v6326_v58 = vpack.c.bf16 %v733_v16, %v731_v37  ;;  %v6335_v13 = vld [vmem:[%s5731_s16 + $0xb8] sm:$0xff]  ;;  %s5362_s16 = scalar_lea.hbm %s7598_s15, 16 }
  0xde   : > { %7690 = vst [vmem:[#allocation38_spill] sm:$0xff] %v6308_v12  ;;  %v1533_v14 = vadd.f32 %v1532_v11, %v1464_v44  ;;  %v1398_v63 = vadd.f32 %v1397_v10, %v6061_v17  ;;  %v1466_v53 = vpop.f32.mrf.mxu1  ;;  %v1601_v3 = vpop.f32.mrf.mxu3  ;;  %1661 = vmatpush.bf16.msrb.mxu0 %v4516_v18  ;;  %v4392_v44 = vor.u32 %v5133_v42, %v4389_v52  ;;  %v590_v7 = vrot.slane %v6335_v13, 1 }
  0xdf   : > { %7691 = vst [vmem:[#allocation39_spill] sm:$0xff] %v6326_v58  ;;  %1730 = vmatpush.bf16.msrb.mxu1 %v4264_v39  ;;  %1799 = vmatpush.bf16.msrb.mxu2 %v4328_v15  ;;  %v662_v1 = vrot.slane %v6335_v13, 2  ;;  %v7693_v39 = vrot.slane %v6201_v21, 1  ;;  %v7694_v42 = vrot.slane %v6201_v21, 2 }
  0xe0   : > { %v1467_v11 = vadd.f32 %v1466_v53, %v1398_v63  ;;  %v6328_v10 = vadd.f32 %v1601_v3, %v1533_v14  ;;  %1436 = vmatmul.bf16.gmra.mxu0 %v6289_v45  ;;  %7692 = vst [vmem:[#allocation40_spill] sm:$0xff] %v6335_v13  ;;  %v734_v3 = vrot.slane %v6335_v13, 3 }
  0xe1   : > { %1505 = vmatmul.bf16.gmra.mxu1 %v6306_v22  ;;  %1868 = vmatpush.bf16.msrb.mxu3 %v4392_v44  ;;  %v591_v15 = vsel %vm544_vm0, %v7693_v39, %v590_v7  ;;  %v663_v52 = vsel %vm616_vm1, %v7694_v42, %v662_v1  ;;  %v6351_v44 = vpack.c.bf16 %v6335_v13, %v6201_v21 }
  0xe2   : > { %1574 = vmatmul.bf16.gmra.mxu2 %v6308_v12  ;;  %v6359_v12 = vpack.c.bf16 %v662_v1, %v663_v52  ;;  %v762_v1 = vrot.slane %v5737_v33, 4 }
  0xe3   : > { %1643 = vmatmul.bf16.gmra.mxu3 %v6326_v58 }
  0xe4   : > { %7696 = vst [vmem:[#allocation41_spill] sm:$0xff] %v6359_v12 }
  0xe5   : > { %v1535_v37 = vpop.f32.mrf.mxu2  ;;  %v1399_v16 = vpop.f32.mrf.mxu0 }
  0xe6   : > { %v1536_v25 = vadd.f32 %v1535_v37, %v1467_v11  ;;  %v1400_v63 = vadd.f32 %v1399_v16, %v6061_v17  ;;  %v1468_v18 = vpop.f32.mrf.mxu1  ;;  %v1604_v30 = vpop.f32.mrf.mxu3  ;;  %v7695_v11 = vrot.slane %v6201_v21, 3 }
  0xe8   : > { %v1469_v14 = vadd.f32 %v1468_v18, %v1400_v63  ;;  %v6340_v53 = vadd.f32 %v1604_v30, %v1536_v25  ;;  %v735_v37 = vsel %vm688_vm2, %v7695_v11, %v734_v3  ;;  %v6356_v63 = vpack.c.bf16 %v590_v7, %v591_v15 }
  0xe9   : > { %v6361_v42 = vpack.c.bf16 %v734_v3, %v735_v37  ;;  %v761_v15 = vrot.slane %v5734_v32, 4  ;;  %v764_v3 = vrot.slane %v5740_v34, 4 }
  0xeb   : > { %7697 = vst [vmem:[#allocation42_spill] sm:$0xff] %v6361_v42 }
  0xed   : > { %v1537_v16 = vpop.f32.mrf.mxu2  ;;  %v1402_v25 = vpop.f32.mrf.mxu0 }
  0xee   : > { %v1538_v18 = vadd.f32 %v1537_v16, %v1469_v14  ;;  %v1403_v30 = vadd.f32 %v1402_v25, %v6061_v17  ;;  %v1471_v39 = vpop.f32.mrf.mxu1  ;;  %v1606_v58 = vpop.f32.mrf.mxu3 }
  0xf0   : > { %v1472_v22 = vadd.f32 %v1471_v39, %v1403_v30  ;;  %v6363_v13 = vadd.f32 %v1606_v58, %v1538_v18  ;;  %1441 = vmatmul.bf16.gmra.mxu0 %v6351_v44  ;;  %v763_v18 = vsel %vm760_vm3, %v761_v15, %v762_v1  ;;  %v765_v30 = vsel %vm760_vm3, %v762_v1, %v764_v3 }
  0xf1   : > { %1510 = vmatmul.bf16.gmra.mxu1 %v6356_v63  ;;  %v6377_v39 = vpack.c.bf16 %v765_v30, %v763_v18 }
  0xf2   : > { %1579 = vmatmul.bf16.gmra.mxu2 %v6359_v12 }
  0xf3   : > { %1648 = vmatmul.bf16.gmra.mxu3 %v6361_v42 }
  0xf5   : > { %v1540_v7 = vpop.f32.mrf.mxu2  ;;  %v1404_v14 = vpop.f32.mrf.mxu0 }
  0xf6   : > { %v1541_v52 = vadd.f32 %v1540_v7, %v1472_v22  ;;  %v1405_v58 = vadd.f32 %v1404_v14, %v6061_v17  ;;  %v1473_v11 = vpop.f32.mrf.mxu1  ;;  %v1609_v37 = vpop.f32.mrf.mxu3 }
  0xf8   : > { %v1474_v16 = vadd.f32 %v1473_v11, %v1405_v58  ;;  %v6373_v25 = vadd.f32 %v1609_v37, %v1541_v52  ;;  %v766_v52 = vrot.slane %v5772_v54, 4  ;;  %v768_v58 = vrot.slane %v5775_v55, 4 }
  0xfd   : > { %v1542_v32 = vpop.f32.mrf.mxu2  ;;  %v1407_v42 = vpop.f32.mrf.mxu0 }
  0xfe   : > { %v1543_v33 = vadd.f32 %v1542_v32, %v1474_v16  ;;  %v1408_v34 = vadd.f32 %v1407_v42, %v6061_v17  ;;  %v1476_v22 = vpop.f32.mrf.mxu1  ;;  %v1611_v7 = vpop.f32.mrf.mxu3 }
 0x100   : > { %v1477_v14 = vadd.f32 %v1476_v22, %v1408_v34  ;;  %v6380_v12 = vadd.f32 %v1611_v7, %v1543_v33  ;;  %1662 = vmatmul.bf16.vlgmr.msrb.gmra.mxu0 %v6377_v39 }
 0x101   : > { %1731 = vmatmul.bf16.vlgmr.msrb.gmra.mxu1 %v5744_v35  ;;  %v767_v35 = vsel %vm760_vm3, %v764_v3, %v766_v52 }
 0x102   : > { %1800 = vmatmul.bf16.vlgmr.msrb.gmra.mxu2 %v5757_v47  ;;  %v769_v47 = vsel %vm760_vm3, %v766_v52, %v768_v58  ;;  %v772_v52 = vrot.slane %v5807_v9, 4 }
 0x103   : > { %1869 = vmatmul.bf16.vlgmr.msrb.gmra.mxu3 %v5762_v50  ;;  %v6393_v32 = vpack.c.bf16 %v769_v47, %v767_v35 }
 0x105   : > { %v1545_v15 = vpop.f32.mrf.mxu2  ;;  %v1409_v1 = vpop.f32.mrf.mxu0 }
 0x106   : > { %v1546_v42 = vadd.f32 %v1545_v15, %v1477_v14  ;;  %v1410_v11 = vadd.f32 %v1409_v1, %v6061_v17  ;;  %v1478_v37 = vpop.f32.mrf.mxu1  ;;  %v1614_v16 = vpop.f32.mrf.mxu3  ;;  %v770_v1 = vrot.slane %v5804_v8, 4 }
 0x108   : > { %v1479_v18 = vadd.f32 %v1478_v37, %v1410_v11  ;;  %v6389_v30 = vadd.f32 %v1614_v16, %v1546_v42 }
 0x10d   : > { %v1547_v50 = vpop.f32.mrf.mxu2  ;;  %v1412_v33 = vpop.f32.mrf.mxu0 }
 0x10e   : > { %v1548_v34 = vadd.f32 %v1547_v50, %v1479_v18  ;;  %v1413_v54 = vadd.f32 %v1412_v33, %v6061_v17  ;;  %v1481_v55 = vpop.f32.mrf.mxu1  ;;  %v1616_v22 = vpop.f32.mrf.mxu3 }
 0x110   : > { %v1482_v7 = vadd.f32 %v1481_v55, %v1413_v54  ;;  %v6396_v14 = vadd.f32 %v1616_v22, %v1548_v34  ;;  %1667 = vmatmul.bf16.gmra.mxu0 %v6393_v32  ;;  %v4509_v22 = vld [vmem:[%s7648_s1 + $0x1f8] sm:$0xf0] }
 0x111   : > { %1736 = vmatmul.bf16.gmra.mxu1 %v5789_v2  ;;  %v771_v2 = vsel %vm760_vm3, %v768_v58, %v770_v1  ;;  %v5163_v58 = vld [vmem:[%s7648_s1 + $0x1f4] sm:$0xf] }
 0x112   : > { %1805 = vmatmul.bf16.gmra.mxu2 %v5793_v5  ;;  %v773_v5 = vsel %vm760_vm3, %v770_v1, %v772_v52  ;;  %v774_v1 = vrot.slane %v5835_v26, 4 }
 0x113   : > { %1874 = vmatmul.bf16.gmra.mxu3 %v5795_v6  ;;  %v6409_v47 = vpack.c.bf16 %v773_v5, %v771_v2 }
 0x114   : > { %v775_v26 = vsel %vm760_vm3, %v772_v52, %v774_v1 }
 0x115   : > { %v1550_v3 = vpop.f32.mrf.mxu2  ;;  %v1414_v15 = vpop.f32.mrf.mxu0 }
 0x116   : > { %v1551_v42 = vadd.f32 %v1550_v3, %v1482_v7  ;;  %v1415_v11 = vadd.f32 %v1414_v15, %v6061_v17  ;;  %v1483_v37 = vpop.f32.mrf.mxu1  ;;  %v1619_v16 = vpop.f32.mrf.mxu3  ;;  %v4512_v7 = vor.u32 %v5163_v58, %v4509_v22 }
 0x118   : > { %v1484_v18 = vadd.f32 %v1483_v37, %v1415_v11  ;;  %v6405_v35 = vadd.f32 %v1619_v16, %v1551_v42  ;;  %v776_v42 = vrot.slane %v5845_v29, 4  ;;  %1930 = vmatpush.bf16.msra.mxu0 %v4512_v7  ;;  %v5179_v16 = vld [vmem:[%s7648_s1 + $0x274] sm:$0xf] }
 0x11a   : > { %v777_v29 = vsel %vm760_vm3, %v774_v1, %v776_v42 }
 0x11d   : > { %v1552_v6 = vpop.f32.mrf.mxu2  ;;  %v1417_v50 = vpop.f32.mrf.mxu0 }
 0x11e   : > { %v1553_v33 = vadd.f32 %v1552_v6, %v1484_v18  ;;  %v1418_v8 = vadd.f32 %v1417_v50, %v6061_v17  ;;  %v1486_v9 = vpop.f32.mrf.mxu1  ;;  %v1621_v34 = vpop.f32.mrf.mxu3  ;;  %v6437_v6 = vpack.c.bf16 %v777_v29, %v775_v26 }
 0x120   : > { %v1487_v54 = vadd.f32 %v1486_v9, %v1418_v8  ;;  %v6412_v55 = vadd.f32 %v1621_v34, %v1553_v33  ;;  %1672 = vmatmul.bf16.gmra.mxu0 %v6409_v47 }
 0x121   : > { %1741 = vmatmul.bf16.gmra.mxu1 %v5821_v20 }
 0x122   : > { %1810 = vmatmul.bf16.gmra.mxu2 %v5825_v23 }
 0x123   : > { %1879 = vmatmul.bf16.gmra.mxu3 %v5827_v24  ;;  %v4573_v24 = vld [vmem:[%s7648_s1 + $0x278] sm:$0xf0] }
 0x124   : > { %v4576_v18 = vor.u32 %v5179_v16, %v4573_v24 }
 0x125   : > { %v1555_v3 = vpop.f32.mrf.mxu2  ;;  %v1419_v15 = vpop.f32.mrf.mxu0 }
 0x126   : > { %v1556_v20 = vadd.f32 %v1555_v3, %v1487_v54  ;;  %v1420_v23 = vadd.f32 %v1419_v15, %v6061_v17  ;;  %v1488_v11 = vpop.f32.mrf.mxu1  ;;  %v1624_v37 = vpop.f32.mrf.mxu3  ;;  %1999 = vmatpush.bf16.msra.mxu1 %v4576_v18  ;;  %v778_v3 = vrot.slane %v5879_v59, 4  ;;  %v780_v15 = vrot.slane %v5882_v60, 4 }
 0x128   : > { %v1489_v2 = vadd.f32 %v1488_v11, %v1420_v23  ;;  %v6433_v5 = vadd.f32 %v1624_v37, %v1556_v20  ;;  %v781_v59 = vsel %vm760_vm3, %v778_v3, %v780_v15 }
 0x12d   : > { %v1557_v50 = vpop.f32.mrf.mxu2  ;;  %v1422_v33 = vpop.f32.mrf.mxu0 }
 0x12e   : > { %v1558_v8 = vadd.f32 %v1557_v50, %v1489_v2  ;;  %v1423_v9 = vadd.f32 %v1422_v33, %v6061_v17  ;;  %v1491_v34 = vpop.f32.mrf.mxu1  ;;  %v1626_v54 = vpop.f32.mrf.mxu3 }
 0x130   : > { %v1492_v58 = vadd.f32 %v1491_v34, %v1423_v9  ;;  %v6440_v22 = vadd.f32 %v1626_v54, %v1558_v8  ;;  %1677 = vmatmul.bf16.gmra.mxu0 %v6437_v6  ;;  %v5177_v8 = vld [vmem:[%s7648_s1 + $0x264] sm:$0xf] }
 0x131   : > { %1746 = vmatmul.bf16.gmra.mxu1 %v5865_v49  ;;  %v5161_v49 = vld [vmem:[%s7648_s1 + $0x1e4] sm:$0xf] }
 0x132   : > { %1815 = vmatmul.bf16.gmra.mxu2 %v5869_v56  ;;  %v4501_v56 = vld [vmem:[%s7648_s1 + $0x1e8] sm:$0xf0] }
 0x133   : > { %1884 = vmatmul.bf16.gmra.mxu3 %v5871_v57  ;;  %v779_v57 = vsel %vm760_vm3, %v776_v42, %v778_v3  ;;  %v4504_v60 = vor.u32 %v5161_v49, %v4501_v56  ;;  %v4565_v42 = vld [vmem:[%s7648_s1 + $0x268] sm:$0xf0]  ;;  %v784_v3 = vrot.slane %v5927_v36, 4 }
 0x134   : > { %v6459_v24 = vpack.c.bf16 %v781_v59, %v779_v57  ;;  %v4568_v9 = vor.u32 %v5177_v8, %v4565_v42  ;;  %v786_v8 = vrot.slane %v5955_v0, 4  ;;  %v788_v42 = vrot.slane %v5965_v4, 4 }
 0x135   : > { %v1560_v52 = vpop.f32.mrf.mxu2  ;;  %v1424_v7 = vpop.f32.mrf.mxu0  ;;  %1931 = vmatpush.bf16.msra.mxu0 %v4504_v60 }
 0x136   : > { %v1561_v1 = vadd.f32 %v1560_v52, %v1492_v58  ;;  %v1425_v20 = vadd.f32 %v1424_v7, %v6061_v17  ;;  %v1493_v23 = vpop.f32.mrf.mxu1  ;;  %v1629_v11 = vpop.f32.mrf.mxu3  ;;  %2000 = vmatpush.bf16.msra.mxu1 %v4568_v9  ;;  %v782_v7 = vrot.slane %v5924_v31, 4  ;;  %v787_v0 = vsel %vm760_vm3, %v784_v3, %v786_v8 }
 0x137   : > { %v789_v4 = vsel %vm760_vm3, %v786_v8, %v788_v42 }
 0x138   : > { %v1494_v37 = vadd.f32 %v1493_v23, %v1425_v20  ;;  %v6449_v16 = vadd.f32 %v1629_v11, %v1561_v1 }
 0x13d   : > { %v1562_v18 = vpop.f32.mrf.mxu2  ;;  %v1427_v2 = vpop.f32.mrf.mxu0 }
 0x13e   : > { %v1563_v26 = vadd.f32 %v1562_v18, %v1494_v37  ;;  %v1428_v29 = vadd.f32 %v1427_v2, %v6061_v17  ;;  %v1496_v50 = vpop.f32.mrf.mxu1  ;;  %v1631_v33 = vpop.f32.mrf.mxu3 }
 0x140   : > { %v1497_v34 = vadd.f32 %v1496_v50, %v1428_v29  ;;  %v6468_v54 = vadd.f32 %v1631_v33, %v1563_v26  ;;  %1682 = vmatmul.bf16.gmra.mxu0 %v6459_v24  ;;  %v4493_v26 = vld [vmem:[%s7648_s1 + $0x1d8] sm:$0xf0] }
 0x141   : > { %1751 = vmatmul.bf16.gmra.mxu1 %v5909_v19  ;;  %v783_v19 = vsel %vm760_vm3, %v780_v15, %v782_v7  ;;  %v5159_v15 = vld [vmem:[%s7648_s1 + $0x1d4] sm:$0xf] }
 0x142   : > { %1820 = vmatmul.bf16.gmra.mxu2 %v5913_v27  ;;  %v785_v27 = vsel %vm760_vm3, %v782_v7, %v784_v3  ;;  %v4496_v29 = vor.u32 %v5159_v15, %v4493_v26 }
 0x143   : > { %1889 = vmatmul.bf16.gmra.mxu3 %v5915_v28  ;;  %v6481_v56 = vpack.c.bf16 %v785_v27, %v783_v19 }
 0x144   : > { %1932 = vmatpush.bf16.msra.mxu0 %v4496_v29 }
 0x145   : > { %v1565_v58 = vpop.f32.mrf.mxu2  ;;  %v1429_v52 = vpop.f32.mrf.mxu0 }
 0x146   : > { %v1566_v1 = vadd.f32 %v1565_v58, %v1497_v34  ;;  %v1430_v20 = vadd.f32 %v1429_v52, %v6061_v17  ;;  %v1498_v23 = vpop.f32.mrf.mxu1  ;;  %v1634_v11 = vpop.f32.mrf.mxu3  ;;  %v5175_v58 = vld [vmem:[%s7648_s1 + $0x254] sm:$0xf] }
 0x148   : > { %v1499_v37 = vadd.f32 %v1498_v23, %v1430_v20  ;;  %v6477_v49 = vadd.f32 %v1634_v11, %v1566_v1  ;;  %v6509_v20 = vpack.c.bf16 %v789_v4, %v787_v0 }
 0x14d   : > { %v1567_v28 = vpop.f32.mrf.mxu2  ;;  %v1432_v57 = vpop.f32.mrf.mxu0 }
 0x14e   : > { %v1568_v59 = vadd.f32 %v1567_v28, %v1499_v37  ;;  %v1433_v31 = vadd.f32 %v1432_v57, %v6061_v17  ;;  %v1501_v36 = vpop.f32.mrf.mxu1  ;;  %v1636_v60 = vpop.f32.mrf.mxu3 }
 0x150   : > { %v1502_v18 = vadd.f32 %v1501_v36, %v1433_v31  ;;  %v6484_v2 = vadd.f32 %v1636_v60, %v1568_v59  ;;  %1687 = vmatmul.bf16.gmra.mxu0 %v6481_v56  ;;  %v790_v36 = vrot.slane %v6000_v38, 4  ;;  %v792_v60 = vrot.slane %v6003_v40, 4  ;;  %v4485_v38 = vld [vmem:[%s7648_s1 + $0x1c8] sm:$0xf0] }
 0x151   : > { %1756 = vmatmul.bf16.gmra.mxu1 %v5941_v48 }
 0x152   : > { %1825 = vmatmul.bf16.gmra.mxu2 %v5945_v61 }
 0x153   : > { %1894 = vmatmul.bf16.gmra.mxu3 %v5947_v62  ;;  %v4557_v62 = vld [vmem:[%s7648_s1 + $0x258] sm:$0xf0] }
 0x154   : > { %v4560_v52 = vor.u32 %v5175_v58, %v4557_v62  ;;  %v5173_v62 = vld [vmem:[%s7648_s1 + $0x244] sm:$0xf] }
 0x155   : > { %v1570_v50 = vpop.f32.mrf.mxu2  ;;  %v1434_v33 = vpop.f32.mrf.mxu0 }
 0x156   : > { %v1571_v48 = vadd.f32 %v1570_v50, %v1502_v18  ;;  %v1435_v61 = vadd.f32 %v1434_v33, %v6061_v17  ;;  %v1503_v9 = vpop.f32.mrf.mxu1  ;;  %v1639_v34 = vpop.f32.mrf.mxu3  ;;  %2001 = vmatpush.bf16.msra.mxu1 %v4560_v52  ;;  %v4549_v52 = vld [vmem:[%s7648_s1 + $0x248] sm:$0xf0] }
 0x158   : > { %v1504_v7 = vadd.f32 %v1503_v9, %v1435_v61  ;;  %v6505_v1 = vadd.f32 %v1639_v34, %v1571_v48 }
 0x15d   : > { %v1572_v23 = vpop.f32.mrf.mxu2  ;;  %v1437_v11 = vpop.f32.mrf.mxu0 }
 0x15e   : > { %v1573_v37 = vadd.f32 %v1572_v23, %v1504_v7  ;;  %v1438_v19 = vadd.f32 %v1437_v11, %v6061_v17  ;;  %v1506_v27 = vpop.f32.mrf.mxu1  ;;  %v1641_v28 = vpop.f32.mrf.mxu3  ;;  %v4552_v7 = vor.u32 %v5173_v62, %v4549_v52  ;;  %v7698_v23 = vld [vmem:[#allocation17_spill] sm:$0xff]  ;;  %v7699_v11 = vld [vmem:[#allocation18_spill] sm:$0xff]  ;;  %v4477_v52 = vld [vmem:[%s7648_s1 + $0x1b8] sm:$0xf0] }
 0x15f   : > { %v5155_v62 = vld [vmem:[%s7648_s1 + $0x1b4] sm:$0xf] }
 0x160   : > { %v1507_v57 = vadd.f32 %v1506_v27, %v1438_v19  ;;  %v6512_v59 = vadd.f32 %v1641_v28, %v1573_v37  ;;  %1692 = vmatmul.bf16.gmra.mxu0 %v6509_v20  ;;  %2002 = vmatpush.bf16.msra.mxu1 %v4552_v7  ;;  %v7700_v27 = vld [vmem:[#allocation20_spill] sm:$0xff]  ;;  %v7706_v7 = vld [vmem:[#allocation25_spill] sm:$0xff] }
 0x161   : > { %1761 = vmatmul.bf16.gmra.mxu1 %v5985_v43  ;;  %v791_v43 = vsel %vm760_vm3, %v788_v42, %v790_v36  ;;  %v794_v28 = vrot.slane %v7700_v27, 4 }
 0x162   : > { %1830 = vmatmul.bf16.gmra.mxu2 %v5989_v46  ;;  %v793_v46 = vsel %vm760_vm3, %v790_v36, %v792_v60 }
 0x163   : > { %1899 = vmatmul.bf16.gmra.mxu3 %v5991_v51  ;;  %v5157_v51 = vld [vmem:[%s7648_s1 + $0x1c4] sm:$0xf]  ;;  %v6531_v8 = vpack.c.bf16 %v793_v46, %v791_v43 }
 0x164   : > { %v4488_v40 = vor.u32 %v5157_v51, %v4485_v38 }
 0x165   : > { %v1575_v3 = vpop.f32.mrf.mxu2  ;;  %v1439_v31 = vpop.f32.mrf.mxu0 }
 0x166   : > { %v1576_v18 = vadd.f32 %v1575_v3, %v1507_v57  ;;  %v1440_v15 = vadd.f32 %v1439_v31, %v6061_v17  ;;  %v1508_v26 = vpop.f32.mrf.mxu1  ;;  %v1644_v29 = vpop.f32.mrf.mxu3  ;;  %1933 = vmatpush.bf16.msra.mxu0 %v4488_v40  ;;  %v7701_v57 = vld [vmem:[#allocation21_spill] sm:$0xff] }
 0x167   : > { %v796_v3 = vrot.slane %v7701_v57, 4 }
 0x168   : > { %v1509_v50 = vadd.f32 %v1508_v26, %v1440_v15  ;;  %v6521_v33 = vadd.f32 %v1644_v29, %v1576_v18 }
 0x16d   : > { %v1577_v48 = vpop.f32.mrf.mxu2  ;;  %v1442_v61 = vpop.f32.mrf.mxu0 }
 0x16e   : > { %v1578_v9 = vadd.f32 %v1577_v48, %v1509_v50  ;;  %v1443_v34 = vadd.f32 %v1442_v61, %v6061_v17  ;;  %v1511_v42 = vpop.f32.mrf.mxu1  ;;  %v1646_v58 = vpop.f32.mrf.mxu3  ;;  %v797_v50 = vsel %vm760_vm3, %v794_v28, %v796_v3  ;;  %v7702_v48 = vld [vmem:[#allocation29_spill] sm:$0xff] }
 0x170   : > { %v1512_v0 = vadd.f32 %v1511_v42, %v1443_v34  ;;  %v6540_v4 = vadd.f32 %v1646_v58, %v1578_v9  ;;  %1697 = vmatmul.bf16.gmra.mxu0 %v6531_v8  ;;  %v7704_v58 = vld [vmem:[#allocation23_spill] sm:$0xff] }
 0x171   : > { %1766 = vmatmul.bf16.gmra.mxu1 %v6023_v41  ;;  %v795_v41 = vsel %vm760_vm3, %v792_v60, %v794_v28  ;;  %v7705_v60 = vld [vmem:[#allocation24_spill] sm:$0xff] }
 0x172   : > { %1835 = vmatmul.bf16.gmra.mxu2 %v7698_v23  ;;  %v6553_v43 = vpack.c.bf16 %v797_v50, %v795_v41  ;;  %v7708_v28 = vld [vmem:[#allocation28_spill] sm:$0xff]  ;;  %v5171_v50 = vld [vmem:[%s7648_s1 + $0x234] sm:$0xf] }
 0x173   : > { %1904 = vmatmul.bf16.gmra.mxu3 %v7699_v11  ;;  %v800_v57 = vrot.slane %v7708_v28, 4  ;;  %v7712_v28 = vld [vmem:[#allocation31_spill] sm:$0xff] }
 0x175   : > { %v1580_v37 = vpop.f32.mrf.mxu2  ;;  %v1444_v19 = vpop.f32.mrf.mxu0 }
 0x176   : > { %v1581_v31 = vadd.f32 %v1580_v37, %v1512_v0  ;;  %v1445_v36 = vadd.f32 %v1444_v19, %v6061_v17  ;;  %v1513_v18 = vpop.f32.mrf.mxu1  ;;  %v1649_v15 = vpop.f32.mrf.mxu3  ;;  %v7703_v17 = vld [vmem:[#allocation22_spill] sm:$0xff]  ;;  %v4480_v0 = vor.u32 %v5155_v62, %v4477_v52  ;;  %v7707_v19 = vld [vmem:[#allocation27_spill] sm:$0xff] }
 0x177   : > { %v6559_v42 = vperm.slane %v7703_v17, 1  ;;  %v798_v27 = vrot.slane %v7707_v19, 4  ;;  %v7711_v19 = vld [vmem:[#allocation30_spill] sm:$0xff] }
 0x178   : > { %v1514_v26 = vadd.f32 %v1513_v18, %v1445_v36  ;;  %v6549_v29 = vadd.f32 %v1649_v15, %v1581_v31  ;;  %1934 = vmatpush.bf16.msra.mxu0 %v4480_v0  ;;  %v7709_v18 = vld [vmem:[#allocation35_spill] sm:$0xff]  ;;  %v7710_v0 = vld [vmem:[#allocation36_spill] sm:$0xff] }
 0x17d   : > { %v1582_v46 = vpop.f32.mrf.mxu2  ;;  %v1663_v51 = vpop.f32.mrf.mxu0 }
 0x17e   : > { %v1583_v38 = vadd.f32 %v1582_v46, %v1514_v26  ;;  %v1651_v40 = vpop.f32.mrf.mxu3  ;;  %v1664_v61 = vadd.f32 %v1663_v51, %v7702_v48  ;;  %v1732_v9 = vpop.f32.mrf.mxu1  ;;  %v4541_v46 = vld [vmem:[%s7648_s1 + $0x238] sm:$0xf0]  ;;  %v799_v48 = vsel %vm760_vm3, %v796_v3, %v798_v27 }
 0x17f   : > { %v1733_v23 = vadd.f32 %v1732_v9, %v6559_v42  ;;  %v4544_v51 = vor.u32 %v5171_v50, %v4541_v46 }
 0x180   : > { %v6556_v34 = vadd.f32 %v1651_v40, %v1583_v38  ;;  %1702 = vmatmul.bf16.gmra.mxu0 %v6553_v43  ;;  %v2068_v31 = vmax.f32 %v1664_v61, 0.0  ;;  %v801_v61 = vsel %vm760_vm3, %v798_v27, %v800_v57 }
 0x181   : > { %1771 = vmatmul.bf16.gmra.mxu1 %v7704_v58  ;;  %v6587_v58 = vpack.c.bf16 %v801_v61, %v799_v48  ;;  %v7714_v48 = vld [vmem:[#allocation34_spill] sm:$0xff] }
 0x182   : > { %1840 = vmatmul.bf16.gmra.mxu2 %v7705_v60  ;;  %2003 = vmatpush.bf16.msra.mxu1 %v4544_v51  ;;  %v2164_v9 = vrot.slane %v2068_v31, 1  ;;  %v802_v61 = vrot.slane %v7714_v48, 4 }
 0x183   : > { %1909 = vmatmul.bf16.gmra.mxu3 %v7706_v7 }
 0x185   : > { %v1801_v11 = vpop.f32.mrf.mxu2  ;;  %v1665_v37 = vpop.f32.mrf.mxu0 }
 0x186   : > { %v1802_v36 = vadd.f32 %v1801_v11, %v1733_v23  ;;  %v1666_v15 = vadd.f32 %v1665_v37, %v7709_v18  ;;  %v6575_v26 = vpop.f32.mrf.mxu1  ;;  %v1870_v41 = vpop.f32.mrf.mxu3 }
 0x188   : > { %v2070_v38 = vmax.f32 %v1666_v15, 0.0  ;;  %v6583_v40 = vadd.f32 %v1870_v41, %v1802_v36  ;;  %v7713_v36 = vld [vmem:[#allocation32_spill] sm:$0xff]  ;;  %v4469_v15 = vld [vmem:[%s7648_s1 + $0x1a8] sm:$0xf0] }
 0x189   : > { %v5169_v41 = vld [vmem:[%s7648_s1 + $0x224] sm:$0xf] }
 0x18a   : > { %v2165_v17 = vrot.slane %v2070_v38, 1 }
 0x18c   : > { %v2166_v60 = vsel %vm544_vm0, %v2164_v9, %v2165_v17  ;;  %v804_v9 = vrot.slane %v6201_v21, 4 }
 0x18d   : > { %v6590_v62 = vpop.f32.mrf.mxu2  ;;  %v1668_v52 = vpop.f32.mrf.mxu0  ;;  %v6592_v7 = vmax.f32 %v2068_v31, %v2166_v60  ;;  %v5153_v31 = vld [vmem:[%s7648_s1 + $0x1a4] sm:$0xf] }
 0x18e   : > { %v1669_v23 = vadd.f32 %v1668_v52, %v7710_v0  ;;  %v1737_v11 = vpop.f32.mrf.mxu1  ;;  %v6595_v37 = vpop.f32.mrf.mxu3  ;;  %v4472_v60 = vor.u32 %v5153_v31, %v4469_v15  ;;  %v4533_v52 = vld [vmem:[%s7648_s1 + $0x228] sm:$0xf0]  ;;  %v805_v31 = vsel %vm760_vm3, %v802_v61, %v804_v9 }
 0x18f   : > { %v1738_v18 = vadd.f32 %v1737_v11, %v6559_v42 }
 0x190   : > { %v2072_v3 = vmax.f32 %v1669_v23, 0.0  ;;  %1707 = vmatmul.bf16.gmra.mxu0 %v6587_v58 }
 0x191   : > { %1776 = vmatmul.bf16.gmra.mxu1 %v7711_v19  ;;  %1935 = vmatpush.bf16.msra.mxu0 %v4472_v60 }
 0x192   : > { %v2170_v27 = vrot.slane %v2072_v3, 1  ;;  %1845 = vmatmul.bf16.gmra.mxu2 %v7712_v28 }
 0x193   : > { %1914 = vmatmul.bf16.gmra.mxu3 %v7713_v36 }
 0x194   : > { %v2171_v50 = vsel %vm544_vm0, %v2165_v17, %v2170_v27  ;;  %v4536_v17 = vor.u32 %v5169_v41, %v4533_v52  ;;  %v5167_v41 = vld [vmem:[%s7648_s1 + $0x214] sm:$0xf]  ;;  %v5165_v52 = vld [vmem:[%s7648_s1 + $0x204] sm:$0xf] }
 0x195   : > { %v1806_v46 = vpop.f32.mrf.mxu2  ;;  %v1670_v51 = vpop.f32.mrf.mxu0  ;;  %v6617_v0 = vmax.f32 %v2070_v38, %v2171_v50  ;;  %v5151_v38 = vld [vmem:[%s7648_s1 + $0x194] sm:$0xf]  ;;  %v4525_v50 = vld [vmem:[%s7648_s1 + $0x218] sm:$0xf0] }
 0x196   : > { %v1807_v23 = vadd.f32 %v1806_v46, %v1738_v18  ;;  %v1671_v11 = vadd.f32 %v1670_v51, %v6328_v10  ;;  %v6620_v19 = vpop.f32.mrf.mxu1  ;;  %v1875_v28 = vpop.f32.mrf.mxu3  ;;  %2004 = vmatpush.bf16.msra.mxu1 %v4536_v17  ;;  %v4461_v10 = vld [vmem:[%s7648_s1 + $0x198] sm:$0xf0]  ;;  %v803_v18 = vsel %vm760_vm3, %v800_v57, %v802_v61  ;;  %v4528_v51 = vor.u32 %v5167_v41, %v4525_v50  ;;  %v5149_v57 = vld [vmem:[%s7648_s1 + $0x184] sm:$0xf]  ;;  %v4453_v61 = vld [vmem:[%s7648_s1 + $0x188] sm:$0xf0] }
 0x197   : > { %v4464_v15 = vor.u32 %v5151_v38, %v4461_v10  ;;  %v6640_v60 = vpack.c.bf16 %v805_v31, %v803_v18  ;;  %v4456_v17 = vor.u32 %v5149_v57, %v4453_v61  ;;  %v4517_v38 = vld [vmem:[%s7648_s1 + $0x208] sm:$0xf0]  ;;  %v7717_v57 = vld [vmem:[#allocation38_spill] sm:$0xff]  ;;  %s5358_s1 = scalar_lea.hbm %s5357_s22, 8 }
 0x198   : > { %v2074_v48 = vmax.f32 %v1671_v11, 0.0  ;;  %v6624_v21 = vadd.f32 %v1875_v28, %v1807_v23  ;;  %v4520_v41 = vor.u32 %v5165_v52, %v4517_v38  ;;  %p5359_p11 = scmp.ne.s32.totalorder %s5357_s22, %s5358_s1  ;;  %p5364_p1 = scmp.lt.s32.totalorder %s5362_s16, %s5358_s1 }
 0x199   : > { %1936 = vmatpush.bf16.msra.mxu0 %v4464_v15  ;;  %7715 = vst [vmem:[#allocation17_spill] sm:$0xff] %v6640_v60 }
 0x19a   : > { %v2174_v46 = vrot.slane %v2074_v48, 1  ;;  %2005 = vmatpush.bf16.msra.mxu1 %v4528_v51  ;;  %v7716_v51 = vld [vmem:[#allocation37_spill] sm:$0xff]  ;;  %p5360_p12 = pnand %p5359_p11, %p5525_p5  ;;  %p5365_p2 = por %p5364_p1, %p5363_p0 }
 0x19c   : > { %v2175_v23 = vsel %vm544_vm0, %v2170_v27, %v2174_v46  ;;  %p5361_p13 = pneg %p5360_p12 }
 0x19d   : > { %v6652_v11 = vpop.f32.mrf.mxu2  ;;  %v1673_v28 = vpop.f32.mrf.mxu0  ;;  %v6657_v10 = vmax.f32 %v2072_v3, %v2175_v23  ;;  %1937 = vmatpush.bf16.msra.mxu0 %v4456_v17 }
 0x19e   : > { %v1674_v18 = vadd.f32 %v1673_v28, %v6340_v53  ;;  %v1742_v31 = vpop.f32.mrf.mxu1  ;;  %v6660_v15 = vpop.f32.mrf.mxu3  ;;  %2006 = vmatpush.bf16.msra.mxu1 %v4520_v41  ;;  %v7718_v28 = vld [vmem:[#allocation40_spill] sm:$0xff]  ;;  %p5366_p3 = pnand %p5365_p2, %p5361_p13 }
 0x19f   : > { %v1743_v3 = vadd.f32 %v1742_v31, %v6559_v42  ;;  %v806_v52 = vrot.slane %v7718_v28, 4 }
 0x1a0   : > { %v2076_v50 = vmax.f32 %v1674_v18, 0.0  ;;  %1712 = vmatmul.bf16.gmra.mxu0 %v6640_v60 }
 0x1a1   : > { %1781 = vmatmul.bf16.gmra.mxu1 %v6289_v45 }
 0x1a2   : > { %v2178_v27 = vrot.slane %v2076_v50, 1  ;;  %1850 = vmatmul.bf16.gmra.mxu2 %v7716_v51 }
 0x1a3   : > { %1919 = vmatmul.bf16.gmra.mxu3 %v7717_v57 }
 0x1a4   : > { %v2179_v53 = vsel %vm544_vm0, %v2174_v46, %v2178_v27  ;;  %v807_v46 = vsel %vm760_vm3, %v804_v9, %v806_v52 }
 0x1a5   : > { %v1811_v61 = vpop.f32.mrf.mxu2  ;;  %v1675_v23 = vpop.f32.mrf.mxu0  ;;  %v6669_v17 = vmax.f32 %v2074_v48, %v2179_v53  ;;  %v6679_v60 = vpack.c.bf16 %v806_v52, %v807_v46  ;;  %v7720_v52 = vld [vmem:[#allocation41_spill] sm:$0xff] }
 0x1a6   : > { %v1812_v38 = vadd.f32 %v1811_v61, %v1743_v3  ;;  %v1676_v18 = vadd.f32 %v1675_v23, %v6363_v13  ;;  %v6672_v41 = vpop.f32.mrf.mxu1  ;;  %v1880_v45 = vpop.f32.mrf.mxu3 }
 0x1a7   : > { %7719 = vst [vmem:[#allocation18_spill] sm:$0xff] %v6679_v60 }
 0x1a8   : > { %v2078_v57 = vmax.f32 %v1676_v18, 0.0  ;;  %v6676_v36 = vadd.f32 %v1880_v45, %v1812_v38 }
 0x1aa   : > { %v2182_v31 = vrot.slane %v2078_v57, 1 }
 0x1ac   : > { %v2183_v48 = vsel %vm544_vm0, %v2178_v27, %v2182_v31 }
 0x1ad   : > { %v6682_v53 = vpop.f32.mrf.mxu2  ;;  %v1678_v3 = vpop.f32.mrf.mxu0  ;;  %v6684_v13 = vmax.f32 %v2076_v50, %v2183_v48 }
 0x1ae   : > { %v1679_v61 = vadd.f32 %v1678_v3, %v6373_v25  ;;  %v1747_v23 = vpop.f32.mrf.mxu1  ;;  %v6687_v28 = vpop.f32.mrf.mxu3 }
 0x1af   : > { %v1748_v27 = vadd.f32 %v1747_v23, %v6559_v42 }
 0x1b0   : > { %v2080_v18 = vmax.f32 %v1679_v61, 0.0  ;;  %1717 = vmatmul.bf16.gmra.mxu0 %v6679_v60 }
 0x1b1   : > { %1786 = vmatmul.bf16.gmra.mxu1 %v6351_v44 }
 0x1b2   : > { %v2186_v9 = vrot.slane %v2080_v18, 1  ;;  %1855 = vmatmul.bf16.gmra.mxu2 %v6356_v63 }
 0x1b3   : > { %1924 = vmatmul.bf16.gmra.mxu3 %v7720_v52 }
 0x1b4   : > { %v2187_v50 = vsel %vm544_vm0, %v2182_v31, %v2186_v9 }
 0x1b5   : > { %v1816_v38 = vpop.f32.mrf.mxu2  ;;  %v1680_v45 = vpop.f32.mrf.mxu0  ;;  %v6695_v25 = vmax.f32 %v2078_v57, %v2187_v50 }
 0x1b6   : > { %v1817_v46 = vadd.f32 %v1816_v38, %v1748_v27  ;;  %v1681_v48 = vadd.f32 %v1680_v45, %v6380_v12  ;;  %v6698_v3 = vpop.f32.mrf.mxu1  ;;  %v1885_v61 = vpop.f32.mrf.mxu3  ;;  %v7725_v45 = vld [vmem:[#allocation10_spill] sm:$0xff] }
 0x1b7   : > { %7721 = vst [vmem:[#allocation20_spill] sm:$0xff] %v6698_v3 }
 0x1b8   : > { %v2082_v63 = vmax.f32 %v1681_v48, 0.0  ;;  %v6702_v51 = vadd.f32 %v1885_v61, %v1817_v46 }
 0x1ba   : > { %7722 = vst [vmem:[#allocation21_spill] sm:$0xff] %v6702_v51  ;;  %v2190_v52 = vrot.slane %v2082_v63, 1 }
 0x1bc   : > { %v2191_v23 = vsel %vm544_vm0, %v2186_v9, %v2190_v52 }
 0x1bd   : > { %v6705_v31 = vpop.f32.mrf.mxu2  ;;  %v1683_v60 = vpop.f32.mrf.mxu0  ;;  %v6707_v57 = vmax.f32 %v2080_v18, %v2191_v23 }
 0x1be   : > { %7723 = vst [vmem:[#allocation29_spill] sm:$0xff] %v6705_v31  ;;  %v1684_v27 = vadd.f32 %v1683_v60, %v6389_v30  ;;  %v1752_v12 = vpop.f32.mrf.mxu1  ;;  %v6710_v50 = vpop.f32.mrf.mxu3 }
 0x1bf   : > { %7724 = vst [vmem:[#allocation22_spill] sm:$0xff] %v6710_v50  ;;  %v1753_v48 = vadd.f32 %v1752_v12, %v6559_v42 }
 0x1c0   : > { %v2084_v38 = vmax.f32 %v1684_v27, 0.0  ;;  %1938 = vmatmul.bf16.vlgmr.msra.gmra.mxu0 %v7725_v45 }
 0x1c1   : > { %2007 = vmatmul.bf16.vlgmr.msra.gmra.mxu1 %v6377_v39 }
 0x1c2   : > { %v2194_v46 = vrot.slane %v2084_v38, 1 }
 0x1c4   : > { %v2195_v9 = vsel %vm544_vm0, %v2190_v52, %v2194_v46 }
 0x1c5   : > { %v1821_v61 = vpop.f32.mrf.mxu2  ;;  %v1685_v44 = vpop.f32.mrf.mxu0  ;;  %v6716_v31 = vmax.f32 %v2082_v63, %v2195_v9 }
 0x1c6   : > { %v1822_v18 = vadd.f32 %v1821_v61, %v1753_v48  ;;  %v1686_v30 = vadd.f32 %v1685_v44, %v6396_v14  ;;  %v1754_v60 = vpop.f32.mrf.mxu1  ;;  %v1890_v23 = vpop.f32.mrf.mxu3  ;;  %v7726_v61 = vld [vmem:[#allocation11_spill] sm:$0xff] }
 0x1c7   : > { %v1755_v12 = vadd.f32 %v1754_v60, %v6559_v42 }
 0x1c8   : > { %v2086_v45 = vmax.f32 %v1686_v30, 0.0  ;;  %v6721_v50 = vadd.f32 %v1890_v23, %v1822_v18 }
 0x1ca   : > { %v2198_v39 = vrot.slane %v2086_v45, 1 }
 0x1cc   : > { %v2199_v52 = vsel %vm544_vm0, %v2194_v46, %v2198_v39 }
 0x1cd   : > { %v1823_v51 = vpop.f32.mrf.mxu2  ;;  %v1688_v3 = vpop.f32.mrf.mxu0  ;;  %v6725_v63 = vmax.f32 %v2084_v38, %v2199_v52 }
 0x1ce   : > { %v6727_v48 = vadd.f32 %v1823_v51, %v1755_v12  ;;  %v1689_v14 = vadd.f32 %v1688_v3, %v6405_v35  ;;  %v6730_v44 = vpop.f32.mrf.mxu1 }
 0x1d0   : > { %v2088_v9 = vmax.f32 %v1689_v14, 0.0  ;;  %1943 = vmatmul.bf16.gmra.mxu0 %v7726_v61 }
 0x1d1   : > { %2012 = vmatmul.bf16.gmra.mxu1 %v6393_v32 }
 0x1d2   : > { %v2202_v18 = vrot.slane %v2088_v9, 1 }
 0x1d4   : > { %v2203_v30 = vsel %vm544_vm0, %v2198_v39, %v2202_v18 }
 0x1d5   : > { %v1690_v60 = vpop.f32.mrf.mxu0  ;;  %v6735_v46 = vmax.f32 %v2086_v45, %v2203_v30  ;;  %v7729_v45 = vld [vmem:[#allocation12_spill] sm:$0xff] }
 0x1d6   : > { %v1691_v38 = vadd.f32 %v1690_v60, %v6412_v55  ;;  %v6738_v23 = vpop.f32.mrf.mxu1 }
 0x1d7   : > { %7727 = vst [vmem:[#allocation23_spill] sm:$0xff] %v6738_v23  ;;  %v7730_v23 = vld [vmem:[#allocation13_spill] sm:$0xff] }
 0x1d8   : > { %v2090_v51 = vmax.f32 %v1691_v38, 0.0 }
 0x1da   : > { %v2206_v3 = vrot.slane %v2090_v51, 1 }
 0x1dc   : > { %v2207_v12 = vsel %vm544_vm0, %v2202_v18, %v2206_v3 }
 0x1dd   : > { %v1693_v52 = vpop.f32.mrf.mxu0  ;;  %v2326_v14 = vmax.f32 %v2088_v9, %v2207_v12 }
 0x1de   : > { %v1694_v32 = vadd.f32 %v1693_v52, %v6433_v5  ;;  %v6744_v61 = vpop.f32.mrf.mxu1 }
 0x1df   : > { %7728 = vst [vmem:[#allocation24_spill] sm:$0xff] %v6744_v61 }
 0x1e0   : > { %v2092_v39 = vmax.f32 %v1694_v32, 0.0  ;;  %1948 = vmatmul.bf16.gmra.mxu0 %v7729_v45 }
 0x1e1   : > { %2017 = vmatmul.bf16.gmra.mxu1 %v6409_v47 }
 0x1e2   : > { %v2210_v55 = vrot.slane %v2092_v39, 1 }
 0x1e4   : > { %v2211_v30 = vsel %vm544_vm0, %v2206_v3, %v2210_v55 }
 0x1e5   : > { %v1695_v60 = vpop.f32.mrf.mxu0  ;;  %v2328_v27 = vmax.f32 %v2090_v51, %v2211_v30 }
 0x1e6   : > { %v1696_v38 = vadd.f32 %v1695_v60, %v6440_v22  ;;  %v6750_v35 = vpop.f32.mrf.mxu1 }
 0x1e7   : > { %v2364_v18 = vpack.c.bf16 %v2328_v27, %v2326_v14 }
 0x1e8   : > { %v2094_v9 = vmax.f32 %v1696_v38, 0.0 }
 0x1ea   : > { %v2214_v12 = vrot.slane %v2094_v9, 1 }
 0x1ec   : > { %v2215_v5 = vsel %vm544_vm0, %v2210_v55, %v2214_v12 }
 0x1ed   : > { %v1698_v52 = vpop.f32.mrf.mxu0  ;;  %v2330_v32 = vmax.f32 %v2092_v39, %v2215_v5 }
 0x1ee   : > { %v1699_v45 = vadd.f32 %v1698_v52, %v6449_v16  ;;  %v6754_v61 = vpop.f32.mrf.mxu1 }
 0x1f0   : > { %v2096_v47 = vmax.f32 %v1699_v45, 0.0  ;;  %1953 = vmatmul.bf16.gmra.mxu0 %v7730_v23  ;;  %v7731_v45 = vld [vmem:[#allocation14_spill] sm:$0xff] }
 0x1f1   : > { %2022 = vmatmul.bf16.gmra.mxu1 %v6437_v6 }
 0x1f2   : > { %v2218_v51 = vrot.slane %v2096_v47, 1 }
 0x1f4   : > { %v2219_v22 = vsel %vm544_vm0, %v2214_v12, %v2218_v51 }
 0x1f5   : > { %v1700_v3 = vpop.f32.mrf.mxu0  ;;  %v2332_v27 = vmax.f32 %v2094_v9, %v2219_v22 }
 0x1f6   : > { %v1701_v14 = vadd.f32 %v1700_v3, %v6468_v54  ;;  %v6760_v30 = vpop.f32.mrf.mxu1 }
 0x1f7   : > { %v2366_v55 = vpack.c.bf16 %v2332_v27, %v2330_v32 }
 0x1f8   : > { %v2098_v39 = vmax.f32 %v1701_v14, 0.0 }
 0x1fa   : > { %v2222_v60 = vrot.slane %v2098_v39, 1 }
 0x1fc   : > { %v2223_v16 = vsel %vm544_vm0, %v2218_v51, %v2222_v60 }
 0x1fd   : > { %v1703_v38 = vpop.f32.mrf.mxu0  ;;  %v2334_v5 = vmax.f32 %v2096_v47, %v2223_v16 }
 0x1fe   : > { %v1704_v23 = vadd.f32 %v1703_v38, %v6477_v49  ;;  %v6764_v52 = vpop.f32.mrf.mxu1 }
 0x200   : > { %v2100_v6 = vmax.f32 %v1704_v23, 0.0  ;;  %1958 = vmatmul.bf16.gmra.mxu0 %v7731_v45  ;;  %v7733_v45 = vpack.c.bf16 %v6735_v46, %v6725_v63  ;;  %v7735_v63 = vpack.c.bf16 %v6695_v25, %v6684_v13  ;;  %v7738_v13 = vpack.c.bf16 %v6617_v0, %v6592_v7 }
 0x201   : > { %2027 = vmatmul.bf16.gmra.mxu1 %v6459_v24 }
 0x202   : > { %v2226_v9 = vrot.slane %v2100_v6, 1 }
 0x204   : > { %v2227_v54 = vsel %vm544_vm0, %v2222_v60, %v2226_v9  ;;  %v7732_v60 = vld [vmem:[#allocation15_spill] sm:$0xff] }
 0x205   : > { %v2336_v12 = vmax.f32 %v2098_v39, %v2227_v54  ;;  %v1705_v32 = vpop.f32.mrf.mxu0 }
 0x206   : > { %v1706_v22 = vadd.f32 %v1705_v32, %v6484_v2  ;;  %v6770_v3 = vpop.f32.mrf.mxu1 }
 0x207   : > { %v2368_v51 = vpack.c.bf16 %v2336_v12, %v2334_v5 }
 0x208   : > { %v2102_v47 = vmax.f32 %v1706_v22, 0.0 }
 0x209   : > { %2457 = vmatpush.bf16.msra.mxu2 %v2368_v51 }
 0x20a   : > { %v2230_v49 = vrot.slane %v2102_v47, 1 }
 0x20c   : > { %v2231_v27 = vsel %vm544_vm0, %v2226_v9, %v2230_v49 }
 0x20d   : > { %v1708_v14 = vpop.f32.mrf.mxu0  ;;  %2458 = vmatpush.bf16.msra.mxu2 %v2366_v55  ;;  %v6773_v16 = vmax.f32 %v2100_v6, %v2231_v27 }
 0x20e   : > { %v1709_v24 = vadd.f32 %v1708_v14, %v6505_v1  ;;  %v6776_v38 = vpop.f32.mrf.mxu1 }
 0x210   : > { %v2104_v39 = vmax.f32 %v1709_v24, 0.0  ;;  %1963 = vmatmul.bf16.gmra.mxu0 %v7732_v60 }
 0x211   : > { %2032 = vmatmul.bf16.gmra.mxu1 %v6481_v56  ;;  %2459 = vmatpush.bf16.msra.mxu2 %v2364_v18  ;;  %v7734_v56 = vpack.c.bf16 %v6716_v31, %v6707_v57  ;;  %v7737_v31 = vpack.c.bf16 %v6669_v17, %v6657_v10 }
 0x212   : > { %v2234_v2 = vrot.slane %v2104_v39, 1 }
 0x214   : > { %v2235_v5 = vsel %vm544_vm0, %v2230_v49, %v2234_v2 }
 0x215   : > { %v1710_v23 = vpop.f32.mrf.mxu0  ;;  %2460 = vmatpush.bf16.msra.mxu2 %v7733_v45  ;;  %v6784_v55 = vmax.f32 %v2102_v47, %v2235_v5  ;;  %v7736_v47 = vld [vmem:[#allocation16_spill] sm:$0xff]  ;;  %v7739_v45 = vld [vmem:[#allocation19_spill] sm:$0xff] }
 0x216   : > { %v1711_v1 = vadd.f32 %v1710_v23, %v6512_v59  ;;  %v6787_v6 = vpop.f32.mrf.mxu1 }
 0x217   : > { %v2370_v9 = vpack.c.bf16 %v6784_v55, %v6773_v16 }
 0x218   : > { %v2106_v54 = vmax.f32 %v1711_v1, 0.0 }
 0x219   : > { %2461 = vmatpush.bf16.msra.mxu2 %v7734_v56 }
 0x21a   : > { %v2238_v18 = vrot.slane %v2106_v54, 1 }
 0x21c   : > { %v2239_v12 = vsel %vm544_vm0, %v2234_v2, %v2238_v18 }
 0x21d   : > { %v1713_v32 = vpop.f32.mrf.mxu0  ;;  %2462 = vmatpush.bf16.msra.mxu2 %v7735_v63  ;;  %v2342_v46 = vmax.f32 %v2104_v39, %v2239_v12 }
 0x21e   : > { %v1714_v59 = vadd.f32 %v1713_v32, %v6521_v33  ;;  %v6799_v22 = vpop.f32.mrf.mxu1 }
 0x220   : > { %v2108_v51 = vmax.f32 %v1714_v59, 0.0  ;;  %1968 = vmatmul.bf16.gmra.mxu0 %v7736_v47  ;;  %v1735_v47 = vadd.f32 %v6575_v26, %v6559_v42 }
 0x221   : > { %2037 = vmatmul.bf16.gmra.mxu1 %v6509_v20  ;;  %2463 = vmatpush.bf16.msra.mxu2 %v7737_v31 }
 0x222   : > { %v2242_v57 = vrot.slane %v2108_v51, 1 }
 0x224   : > { %v2243_v49 = vsel %vm544_vm0, %v2238_v18, %v2242_v57 }
 0x225   : > { %v1715_v27 = vpop.f32.mrf.mxu0  ;;  %2464 = vmatpush.bf16.msra.mxu2 %v7738_v13  ;;  %v2344_v33 = vmax.f32 %v2106_v54, %v2243_v49 }
 0x226   : > { %v1716_v25 = vadd.f32 %v1715_v27, %v6540_v4  ;;  %v6811_v14 = vpop.f32.mrf.mxu1  ;;  %v1804_v27 = vadd.f32 %v6590_v62, %v1735_v47 }
 0x227   : > { %v2372_v24 = vpack.c.bf16 %v2344_v33, %v2342_v46  ;;  %v7740_v33 = vld [vmem:[#allocation26_spill] sm:$0xff] }
 0x228   : > { %v2110_v39 = vmax.f32 %v1716_v25, 0.0 }
 0x22a   : > { %v2246_v20 = vrot.slane %v2110_v39, 1 }
 0x22c   : > { %v2247_v60 = vsel %vm544_vm0, %v2242_v57, %v2246_v20 }
 0x22d   : > { %v1718_v10 = vpop.f32.mrf.mxu0  ;;  %v2346_v17 = vmax.f32 %v2108_v51, %v2247_v60 }
 0x22e   : > { %v1719_v2 = vadd.f32 %v1718_v10, %v6549_v29  ;;  %v6815_v5 = vpop.f32.mrf.mxu1  ;;  %v5406_v29 = vmov 65535  }
 0x22f   : > { %v2449_v63 = vsel %vm688_vm2, 4294967295, %v5406_v29 }
 0x230   : > { %v2112_v23 = vmax.f32 %v1719_v2, 0.0  ;;  %1973 = vmatmul.bf16.gmra.mxu0 %v7739_v45  ;;  %v1740_v45 = vadd.f32 %v6620_v19, %v6559_v42 }
 0x231   : > { %2042 = vmatmul.bf16.gmra.mxu1 %v6531_v8 }
 0x232   : > { %v2250_v7 = vrot.slane %v2112_v23, 1 }
 0x234   : > { %v2251_v4 = vsel %vm544_vm0, %v2246_v20, %v2250_v7 }
 0x235   : > { %v1720_v0 = vpop.f32.mrf.mxu0  ;;  %v2348_v1 = vmax.f32 %v2110_v39, %v2251_v4  ;;  %v1873_v39 = vadd.f32 %v6595_v37, %v1804_v27 }
 0x236   : > { %v1721_v54 = vadd.f32 %v1720_v0, %v6556_v34  ;;  %v6821_v56 = vpop.f32.mrf.mxu1  ;;  %v6829_v34 = vsel %vm616_vm1, %v2449_v63, 0  ;;  %v1809_v0 = vadd.f32 %v6652_v11, %v1740_v45 }
 0x237   : > { %v2374_v18 = vpack.c.bf16 %v2348_v1, %v2346_v17  ;;  %v7741_v1 = vld [vmem:[#allocation33_spill] sm:$0xff] }
 0x238   : > { %v2114_v12 = vmax.f32 %v1721_v54, 0.0  ;;  %v1878_v19 = vadd.f32 %v6660_v15, %v1809_v0 }
 0x23a   : > { %v2254_v32 = vrot.slane %v2114_v12, 1 }
 0x23c   : > { %v2255_v46 = vsel %vm544_vm0, %v2250_v7, %v2254_v32  ;;  %v2352_v59 = vmax.f32 %v2114_v12, %v2254_v32 }
 0x23d   : > { %v2350_v51 = vmax.f32 %v2112_v23, %v2255_v46  ;;  %v1939_v8 = vpop.f32.mrf.mxu0 }
 0x23e   : > { %v1940_v31 = vadd.f32 %v1939_v8, %v6583_v40  ;;  %v2008_v57 = vpop.f32.mrf.mxu1 }
 0x23f   : > { %v2376_v49 = vpack.c.bf16 %v2352_v59, %v2350_v51 }
 0x240   : > { %v2009_v13 = vadd.f32 %v2008_v57, %v1940_v31  ;;  %1978 = vmatmul.bf16.gmra.mxu0 %v7740_v33  ;;  %v7742_v57 = vld [vmem:[#allocation39_spill] sm:$0xff] }
 0x241   : > { %2047 = vmatmul.bf16.gmra.mxu1 %v6553_v43  ;;  %v2452_v25 = vand.u32 %v6829_v34, %v2376_v49  ;;  %v7743_v49 = vld [vmem:[#allocation17_spill] sm:$0xff] }
 0x242   : > { %v2069_v60 = vmax.f32 %v2009_v13, 0.0 }
 0x243   : > { %2495 = vmatpush.bf16.msra.mxu3 %v2452_v25  ;;  %v1892_v25 = vpop.f32.mrf.mxu3 }
 0x244   : > { %v2167_v2 = vrot.slane %v2069_v60, 1 }
 0x245   : > { %v1941_v26 = vpop.f32.mrf.mxu0 }
 0x246   : > { %v1942_v20 = vadd.f32 %v1941_v26, %v1873_v39  ;;  %v2010_v40 = vpop.f32.mrf.mxu1 }
 0x247   : > { %2496 = vmatpush.bf16.msra.mxu3 %v2374_v18 }
 0x248   : > { %v2011_v10 = vadd.f32 %v2010_v40, %v1942_v20 }
 0x24a   : > { %v2071_v17 = vmax.f32 %v2011_v10, 0.0  ;;  %v1826_v10 = vpop.f32.mrf.mxu2 }
 0x24b   : > { %2497 = vmatpush.bf16.msra.mxu3 %v2372_v24 }
 0x24c   : > { %v2168_v62 = vrot.slane %v2071_v17, 1 }
 0x24d   : > { %v1944_v23 = vpop.f32.mrf.mxu0 }
 0x24e   : > { %v1945_v43 = vadd.f32 %v1944_v23, %v6624_v21  ;;  %v2013_v7 = vpop.f32.mrf.mxu1  ;;  %v2169_v4 = vsel %vm544_vm0, %v2167_v2, %v2168_v62  ;;  %v7745_v23 = vld [vmem:[#allocation21_spill] sm:$0xff] }
 0x24f   : > { %2498 = vmatpush.bf16.msra.mxu3 %v2370_v9  ;;  %v6843_v37 = vmax.f32 %v2069_v60, %v2169_v4  ;;  %v1895_v4 = vpop.f32.mrf.mxu3 }
 0x250   : > { %v2014_v24 = vadd.f32 %v2013_v7, %v1945_v43  ;;  %1983 = vmatmul.bf16.gmra.mxu0 %v7741_v1 }
 0x251   : > { %2052 = vmatmul.bf16.gmra.mxu1 %v6587_v58  ;;  %v1745_v58 = vadd.f32 %v6672_v41, %v6559_v42 }
 0x252   : > { %v2073_v54 = vmax.f32 %v2014_v24, 0.0  ;;  %v7746_v24 = vld [vmem:[#allocation29_spill] sm:$0xff] }
 0x253   : > { %v1814_v47 = vadd.f32 %v6682_v53, %v1745_v58 }
 0x254   : > { %v2172_v21 = vrot.slane %v2073_v54, 1 }
 0x255   : > { %v1946_v18 = vpop.f32.mrf.mxu0  ;;  %v1883_v13 = vadd.f32 %v6687_v28, %v1814_v47 }
 0x256   : > { %v1947_v12 = vadd.f32 %v1946_v18, %v1878_v19  ;;  %v2015_v32 = vpop.f32.mrf.mxu1  ;;  %v2173_v29 = vsel %vm544_vm0, %v2168_v62, %v2172_v21  ;;  %v7744_v62 = vld [vmem:[#allocation20_spill] sm:$0xff]  ;;  %v7747_v19 = vld [vmem:[#allocation42_spill] sm:$0xff] }
 0x257   : > { %v6850_v16 = vmax.f32 %v2071_v17, %v2173_v29  ;;  %v1750_v28 = vadd.f32 %v7744_v62, %v6559_v42 }
 0x258   : > { %v2016_v55 = vadd.f32 %v2015_v32, %v1947_v12  ;;  %v7749_v12 = vld [vmem:[#allocation22_spill] sm:$0xff] }
 0x259   : > { %v2355_v11 = vpack.c.bf16 %v6850_v16, %v6843_v37  ;;  %v1819_v1 = vadd.f32 %v7746_v24, %v1750_v28 }
 0x25a   : > { %v2075_v9 = vmax.f32 %v2016_v55, 0.0  ;;  %v1828_v55 = vpop.f32.mrf.mxu2 }
 0x25b   : > { %v1888_v32 = vadd.f32 %v7749_v12, %v1819_v1 }
 0x25c   : > { %v2176_v63 = vrot.slane %v2075_v9, 1 }
 0x25d   : > { %v1949_v46 = vpop.f32.mrf.mxu0 }
 0x25e   : > { %v1950_v15 = vadd.f32 %v1949_v46, %v6676_v36  ;;  %v2018_v59 = vpop.f32.mrf.mxu1  ;;  %v2177_v51 = vsel %vm544_vm0, %v2172_v21, %v2176_v63  ;;  %v7748_v21 = vld [vmem:[#allocation18_spill] sm:$0xff] }
 0x25f   : > { %v6858_v8 = vmax.f32 %v2073_v54, %v2177_v51  ;;  %v1897_v51 = vpop.f32.mrf.mxu3 }
 0x260   : > { %v2019_v31 = vadd.f32 %v2018_v59, %v1950_v15  ;;  %1988 = vmatmul.bf16.gmra.mxu0 %v7742_v57 }
 0x261   : > { %2057 = vmatmul.bf16.gmra.mxu1 %v7743_v49 }
 0x262   : > { %v2077_v27 = vmax.f32 %v2019_v31, 0.0 }
 0x264   : > { %v2180_v33 = vrot.slane %v2077_v27, 1 }
 0x265   : > { %v1951_v41 = vpop.f32.mrf.mxu0 }
 0x266   : > { %v1952_v39 = vadd.f32 %v1951_v41, %v1883_v13  ;;  %v2020_v36 = vpop.f32.mrf.mxu1  ;;  %v2181_v26 = vsel %vm544_vm0, %v2176_v63, %v2180_v33  ;;  %v1831_v41 = vpop.f32.mrf.mxu2 }
 0x267   : > { %v6865_v20 = vmax.f32 %v2075_v9, %v2181_v26 }
 0x268   : > { %v2021_v40 = vadd.f32 %v2020_v36, %v1952_v39 }
 0x269   : > { %v2357_v53 = vpack.c.bf16 %v6865_v20, %v6858_v8 }
 0x26a   : > { %v2079_v60 = vmax.f32 %v2021_v40, 0.0  ;;  %v1900_v40 = vpop.f32.mrf.mxu3 }
 0x26c   : > { %v2184_v17 = vrot.slane %v2079_v60, 1 }
 0x26d   : > { %v1954_v2 = vpop.f32.mrf.mxu0 }
 0x26e   : > { %v1955_v45 = vadd.f32 %v1954_v2, %v7745_v23  ;;  %v2023_v43 = vpop.f32.mrf.mxu1  ;;  %v2185_v7 = vsel %vm544_vm0, %v2180_v33, %v2184_v17  ;;  %v1893_v2 = vadd.f32 %v1892_v25, %v6727_v48  ;;  %v1758_v23 = vadd.f32 %v6730_v44, %v6559_v42  ;;  %v7750_v44 = vld [vmem:[#allocation23_spill] sm:$0xff] }
 0x26f   : > { %v6873_v0 = vmax.f32 %v2077_v27, %v2185_v7 }
 0x270   : > { %v2024_v54 = vadd.f32 %v2023_v43, %v1955_v45  ;;  %1993 = vmatmul.bf16.gmra.mxu0 %v7747_v19  ;;  %v1827_v1 = vadd.f32 %v1826_v10, %v1758_v23  ;;  %v1833_v19 = vpop.f32.mrf.mxu2 }
 0x271   : > { %2062 = vmatmul.bf16.gmra.mxu1 %v7748_v21 }
 0x272   : > { %v2081_v18 = vmax.f32 %v2024_v54, 0.0  ;;  %v1896_v21 = vadd.f32 %v1895_v4, %v1827_v1  ;;  %v1902_v12 = vpop.f32.mrf.mxu3  ;;  %v4587_v4 = vld [vmem:[%s7586_s3 + $0x10] sm:$0xf] }
 0x274   : > { %v2188_v29 = vrot.slane %v2081_v18, 1 }
 0x275   : > { %v1956_v9 = vpop.f32.mrf.mxu0 }
 0x276   : > { %v1957_v63 = vadd.f32 %v1956_v9, %v1888_v32  ;;  %v2025_v46 = vpop.f32.mrf.mxu1  ;;  %v2189_v58 = vsel %vm544_vm0, %v2184_v17, %v2188_v29  ;;  %v5182_v17 = vld [vmem:[%s7586_s3 + $0x4] sm:$0xf0] }
 0x277   : > { %v6880_v15 = vmax.f32 %v2079_v60, %v2189_v58  ;;  %v4579_v60 = vld [vmem:[%s7586_s3] sm:$0xf] }
 0x278   : > { %v2026_v59 = vadd.f32 %v2025_v46, %v1957_v63  ;;  %v6895_v62 = vor.u32 %v5182_v17, %v4579_v60  ;;  %v7751_v17 = vld [vmem:[#allocation24_spill] sm:$0xff] }
 0x279   : > { %v2359_v47 = vpack.c.bf16 %v6880_v15, %v6873_v0 }
 0x27a   : > { %v2083_v31 = vmax.f32 %v2026_v59, 0.0  ;;  %2465 = vmatmul.bf16.vlgmr.msra.gmra.mxu2 %v6895_v62  ;;  %v1905_v23 = vpop.f32.mrf.mxu3 }
 0x27c   : > { %v2192_v57 = vrot.slane %v2083_v31, 1 }
 0x27d   : > { %v1959_v49 = vpop.f32.mrf.mxu0 }
 0x27e   : > { %v1960_v27 = vadd.f32 %v1959_v49, %v6721_v50  ;;  %v2028_v13 = vpop.f32.mrf.mxu1  ;;  %v2193_v33 = vsel %vm544_vm0, %v2188_v29, %v2192_v57  ;;  %v1760_v29 = vadd.f32 %v7750_v44, %v6559_v42  ;;  %v5184_v49 = vld [vmem:[%s7586_s3 + $0x14] sm:$0xf0] }
 0x27f   : > { %v6886_v39 = vmax.f32 %v2081_v18, %v2193_v33 }
 0x280   : > { %v2029_v36 = vadd.f32 %v2028_v13, %v1960_v27  ;;  %v1829_v10 = vadd.f32 %v1828_v55, %v1760_v29  ;;  %v5181_v27 = vld [vmem:[%s7586_s3 + $0x4] sm:$0xf]  ;;  %v4581_v55 = vld [vmem:[%s7586_s3 + $0x8] sm:$0xf0] }
 0x281   : > { %v6924_v60 = vor.u32 %v5181_v27, %v4581_v55 }
 0x282   : > { %v2085_v26 = vmax.f32 %v2029_v36, 0.0  ;;  %v1898_v13 = vadd.f32 %v1897_v51, %v1829_v10  ;;  %v6919_v36 = vor.u32 %v5184_v49, %v4587_v4  ;;  %v5186_v49 = vld [vmem:[%s7586_s3 + $0x24] sm:$0xf0] }
 0x283   : > { %4617 = vmatmul.msk.bf16.vlgmr.msra.gmra.mxu3 %vm2433_vm4, %v6924_v60 }
 0x284   : > { %v2196_v50 = vrot.slane %v2085_v26, 1 }
 0x285   : > { %v1961_v28 = vpop.f32.mrf.mxu0 }
 0x286   : > { %v1962_v45 = vadd.f32 %v1961_v28, %v1893_v2  ;;  %v2030_v43 = vpop.f32.mrf.mxu1  ;;  %v2197_v7 = vsel %vm544_vm0, %v2192_v57, %v2196_v50  ;;  %v1836_v57 = vpop.f32.mrf.mxu2  ;;  %v1763_v2 = vadd.f32 %v7751_v17, %v6559_v42 }
 0x287   : > { %v6901_v24 = vmax.f32 %v2083_v31, %v2197_v7 }
 0x288   : > { %v2031_v54 = vadd.f32 %v2030_v43, %v1962_v45  ;;  %v1832_v43 = vadd.f32 %v1831_v41, %v1763_v2 }
 0x289   : > { %v2361_v48 = vpack.c.bf16 %v6901_v24, %v6886_v39 }
 0x28a   : > { %v2087_v25 = vmax.f32 %v2031_v54, 0.0  ;;  %2470 = vmatmul.bf16.gmra.mxu2 %v6919_v36 }
 0x28c   : > { %v2200_v18 = vrot.slane %v2087_v25, 1 }
 0x28d   : > { %v1964_v32 = vpop.f32.mrf.mxu0 }
 0x28e   : > { %v1965_v9 = vadd.f32 %v1964_v32, %v1896_v21  ;;  %v2033_v63 = vpop.f32.mrf.mxu1  ;;  %v2201_v46 = vsel %vm544_vm0, %v2196_v50, %v2200_v18  ;;  %v1901_v21 = vadd.f32 %v1900_v40, %v1832_v43  ;;  %v1838_v44 = vpop.f32.mrf.mxu2  ;;  %v4595_v40 = vld [vmem:[%s7586_s3 + $0x20] sm:$0xf] }
 0x28f   : > { %v6908_v58 = vmax.f32 %v2085_v26, %v2201_v46 }
 0x290   : > { %v2034_v59 = vadd.f32 %v2033_v63, %v1965_v9  ;;  %v1765_v9 = vadd.f32 %v6750_v35, %v6559_v42  ;;  %v5183_v35 = vld [vmem:[%s7586_s3 + $0x14] sm:$0xf] }
 0x292   : > { %v2089_v31 = vmax.f32 %v2034_v59, 0.0  ;;  %v1907_v59 = vpop.f32.mrf.mxu3 }
 0x294   : > { %v2204_v33 = vrot.slane %v2089_v31, 1 }
 0x295   : > { %v1966_v26 = vpop.f32.mrf.mxu0 }
 0x296   : > { %v1967_v50 = vadd.f32 %v1966_v26, %v1898_v13  ;;  %v2035_v28 = vpop.f32.mrf.mxu1  ;;  %v2205_v51 = vsel %vm544_vm0, %v2200_v18, %v2204_v33  ;;  %v1768_v26 = vadd.f32 %v6754_v61, %v6559_v42 }
 0x297   : > { %v6932_v45 = vmax.f32 %v2087_v25, %v2205_v51  ;;  %v1834_v25 = vadd.f32 %v1833_v19, %v1765_v9  ;;  %v4589_v19 = vld [vmem:[%s7586_s3 + $0x18] sm:$0xf0] }
 0x298   : > { %v2036_v7 = vadd.f32 %v2035_v28, %v1967_v50  ;;  %v6955_v55 = vor.u32 %v5183_v35, %v4589_v19  ;;  %v1837_v51 = vadd.f32 %v1836_v57, %v1768_v26  ;;  %v4603_v35 = vld [vmem:[%s7586_s3 + $0x30] sm:$0xf] }
 0x299   : > { %v2363_v1 = vpack.c.bf16 %v6932_v45, %v6908_v58  ;;  %v1903_v27 = vadd.f32 %v1902_v12, %v1834_v25  ;;  %v1841_v12 = vpop.f32.mrf.mxu2 }
 0x29a   : > { %v2091_v54 = vmax.f32 %v2036_v7, 0.0  ;;  %4618 = vmatmul.msk.bf16.gmra.mxu3 %vm2433_vm4, %v6955_v55  ;;  %v1906_v61 = vadd.f32 %v1905_v23, %v1837_v51  ;;  %v5188_v23 = vld [vmem:[%s7586_s3 + $0x34] sm:$0xf0] }
 0x29c   : > { %v2208_v32 = vrot.slane %v2091_v54, 1 }
 0x29d   : > { %v1969_v29 = vpop.f32.mrf.mxu0 }
 0x29e   : > { %v1970_v18 = vadd.f32 %v1969_v29, %v1901_v21  ;;  %v2038_v63 = vpop.f32.mrf.mxu1  ;;  %v2209_v46 = vsel %vm544_vm0, %v2204_v33, %v2208_v32  ;;  %v1910_v29 = vpop.f32.mrf.mxu3 }
 0x29f   : > { %v6939_v10 = vmax.f32 %v2089_v31, %v2209_v46  ;;  %v6950_v31 = vor.u32 %v5186_v49, %v4595_v40 }
 0x2a0   : > { %v2039_v41 = vadd.f32 %v2038_v63, %v1970_v18  ;;  %v1770_v63 = vadd.f32 %v6760_v30, %v6559_v42  ;;  %v5185_v30 = vld [vmem:[%s7586_s3 + $0x24] sm:$0xf] }
 0x2a1   : > { %2475 = vmatmul.bf16.gmra.mxu2 %v6950_v31  ;;  %v1843_v40 = vpop.f32.mrf.mxu2 }
 0x2a2   : > { %v2093_v4 = vmax.f32 %v2039_v41, 0.0 }
 0x2a4   : > { %v2212_v13 = vrot.slane %v2093_v4, 1 }
 0x2a5   : > { %v1971_v33 = vpop.f32.mrf.mxu0 }
 0x2a6   : > { %v1972_v17 = vadd.f32 %v1971_v33, %v1903_v27  ;;  %v2040_v2 = vpop.f32.mrf.mxu1  ;;  %v2213_v50 = vsel %vm544_vm0, %v2208_v32, %v2212_v13  ;;  %v1912_v19 = vpop.f32.mrf.mxu3 }
 0x2a7   : > { %v6963_v28 = vmax.f32 %v2091_v54, %v2213_v50  ;;  %v1839_v54 = vadd.f32 %v1838_v44, %v1770_v63  ;;  %v4597_v44 = vld [vmem:[%s7586_s3 + $0x28] sm:$0xf0] }
 0x2a8   : > { %v2041_v43 = vadd.f32 %v2040_v2, %v1972_v17  ;;  %v6986_v26 = vor.u32 %v5185_v30, %v4597_v44  ;;  %v1773_v17 = vadd.f32 %v6764_v52, %v6559_v42  ;;  %v1775_v52 = vadd.f32 %v6770_v3, %v6559_v42  ;;  %v5187_v3 = vld [vmem:[%s7586_s3 + $0x34] sm:$0xf] }
 0x2a9   : > { %v2365_v7 = vpack.c.bf16 %v6963_v28, %v6939_v10  ;;  %v1908_v27 = vadd.f32 %v1907_v59, %v1839_v54 }
 0x2aa   : > { %v2095_v21 = vmax.f32 %v2041_v43, 0.0  ;;  %4619 = vmatmul.msk.bf16.gmra.mxu3 %vm2433_vm4, %v6986_v26  ;;  %v1842_v43 = vadd.f32 %v1841_v12, %v1773_v17  ;;  %v1844_v30 = vadd.f32 %v1843_v40, %v1775_v52  ;;  %v4605_v40 = vld [vmem:[%s7586_s3 + $0x38] sm:$0xf0] }
 0x2ac   : > { %v2216_v9 = vrot.slane %v2095_v21, 1 }
 0x2ad   : > { %v1974_v18 = vpop.f32.mrf.mxu0 }
 0x2ae   : > { %v1975_v32 = vadd.f32 %v1974_v18, %v1906_v61  ;;  %v2043_v46 = vpop.f32.mrf.mxu1  ;;  %v2217_v25 = vsel %vm544_vm0, %v2212_v13, %v2216_v9 }
 0x2af   : > { %v6970_v41 = vmax.f32 %v2093_v4, %v2217_v25  ;;  %v6981_v4 = vor.u32 %v5188_v23, %v4603_v35 }
 0x2b0   : > { %v2044_v57 = vadd.f32 %v2043_v46, %v1975_v32  ;;  %v1846_v32 = vpop.f32.mrf.mxu2  ;;  %v1911_v46 = vadd.f32 %v1910_v29, %v1842_v43  ;;  %v5190_v29 = vld [vmem:[%s7586_s3 + $0x44] sm:$0xf0] }
 0x2b1   : > { %2480 = vmatmul.bf16.gmra.mxu2 %v6981_v4 }
 0x2b2   : > { %v2097_v49 = vmax.f32 %v2044_v57, 0.0 }
 0x2b4   : > { %v2220_v13 = vrot.slane %v2097_v49, 1 }
 0x2b5   : > { %v1976_v33 = vpop.f32.mrf.mxu0 }
 0x2b6   : > { %v1977_v2 = vadd.f32 %v1976_v33, %v1908_v27  ;;  %v2045_v50 = vpop.f32.mrf.mxu1  ;;  %v2221_v51 = vsel %vm544_vm0, %v2216_v9, %v2220_v13 }
 0x2b7   : > { %v2333_v59 = vmax.f32 %v2095_v21, %v2221_v51  ;;  %v1915_v21 = vpop.f32.mrf.mxu3 }
 0x2b8   : > { %v2046_v61 = vadd.f32 %v2045_v50, %v1977_v2  ;;  %v7012_v2 = vor.u32 %v5187_v3, %v4605_v40  ;;  %v1778_v50 = vadd.f32 %v6776_v38, %v6559_v42  ;;  %v1780_v38 = vadd.f32 %v6787_v6, %v6559_v42  ;;  %v5189_v6 = vld [vmem:[%s7586_s3 + $0x44] sm:$0xf] }
 0x2b9   : > { %v2367_v18 = vpack.c.bf16 %v2333_v59, %v6970_v41  ;;  %v4611_v41 = vld [vmem:[%s7586_s3 + $0x40] sm:$0xf] }
 0x2ba   : > { %v2099_v63 = vmax.f32 %v2046_v61, 0.0  ;;  %v7007_v33 = vor.u32 %v5190_v29, %v4611_v41  ;;  %4620 = vmatmul.msk.bf16.gmra.mxu3 %vm2433_vm4, %v7012_v2  ;;  %v1847_v61 = vadd.f32 %v1846_v32, %v1778_v50 }
 0x2bc   : > { %v2224_v25 = vrot.slane %v2099_v63, 1 }
 0x2bd   : > { %v1979_v54 = vpop.f32.mrf.mxu0 }
 0x2be   : > { %v2225_v9 = vsel %vm544_vm0, %v2220_v13, %v2224_v25  ;;  %v1980_v57 = vadd.f32 %v1979_v54, %v1911_v46  ;;  %v2048_v35 = vpop.f32.mrf.mxu1  ;;  %v1913_v13 = vadd.f32 %v1912_v19, %v1844_v30 }
 0x2bf   : > { %v2335_v23 = vmax.f32 %v2097_v49, %v2225_v9  ;;  %v1848_v49 = vpop.f32.mrf.mxu2  ;;  %v1917_v54 = vpop.f32.mrf.mxu3 }
 0x2c0   : > { %v2049_v27 = vadd.f32 %v2048_v35, %v1980_v57  ;;  %v1916_v57 = vadd.f32 %v1915_v21, %v1847_v61  ;;  %v1849_v32 = vadd.f32 %v1848_v49, %v1780_v38  ;;  %v4613_v21 = vld [vmem:[%s7586_s3 + $0x48] sm:$0xf0]  ;;  %v1783_v49 = vadd.f32 %v6799_v22, %v6559_v42 }
 0x2c1   : > { %2485 = vmatmul.bf16.gmra.mxu2 %v7007_v33  ;;  %v1788_v38 = vadd.f32 %v6815_v5, %v6559_v42 }
 0x2c2   : > { %v2101_v12 = vmax.f32 %v2049_v27, 0.0 }
 0x2c4   : > { %v2228_v44 = vrot.slane %v2101_v12, 1 }
 0x2c5   : > { %v1981_v17 = vpop.f32.mrf.mxu0 }
 0x2c6   : > { %v2229_v51 = vsel %vm544_vm0, %v2224_v25, %v2228_v44  ;;  %v1982_v59 = vadd.f32 %v1981_v17, %v1913_v13  ;;  %v2050_v43 = vpop.f32.mrf.mxu1 }
 0x2c7   : > { %v2337_v19 = vmax.f32 %v2099_v63, %v2229_v51  ;;  %v1851_v63 = vpop.f32.mrf.mxu2 }
 0x2c8   : > { %v2051_v46 = vadd.f32 %v2050_v43, %v1982_v59 }
 0x2c9   : > { %v2369_v52 = vpack.c.bf16 %v2337_v19, %v2335_v23  ;;  %v1920_v23 = vpop.f32.mrf.mxu3 }
 0x2ca   : > { %v2103_v9 = vmax.f32 %v2051_v46, 0.0 }
 0x2cb   : > { %2525 = vmatpush.bf16.msrb.mxu2 %v2369_v52 }
 0x2cc   : > { %v2232_v35 = vrot.slane %v2103_v9, 1 }
 0x2cd   : > { %v1984_v30 = vpop.f32.mrf.mxu0 }
 0x2ce   : > { %v1985_v25 = vadd.f32 %v1984_v30, %v1916_v57  ;;  %v2053_v27 = vpop.f32.mrf.mxu1  ;;  %v2233_v41 = vsel %vm544_vm0, %v2228_v44, %v2232_v35  ;;  %v1918_v44 = vadd.f32 %v1917_v54, %v1849_v32 }
 0x2cf   : > { %2526 = vmatpush.bf16.msrb.mxu2 %v2367_v18  ;;  %v7023_v29 = vmax.f32 %v2101_v12, %v2233_v41  ;;  %v7034_v12 = vor.u32 %v5189_v6, %v4613_v21  ;;  %v1853_v59 = vpop.f32.mrf.mxu2 }
 0x2d0   : > { %v2054_v3 = vadd.f32 %v2053_v27, %v1985_v25 }
 0x2d1   : > { %4621 = vmatmul.msk.bf16.gmra.mxu3 %vm2433_vm4, %v7034_v12  ;;  %v1922_v58 = vpop.f32.mrf.mxu3 }
 0x2d2   : > { %v2105_v13 = vmax.f32 %v2054_v3, 0.0 }
 0x2d3   : > { %2527 = vmatpush.bf16.msrb.mxu2 %v2365_v7  ;;  %v1852_v7 = vadd.f32 %v1851_v63, %v1783_v49 }
 0x2d4   : > { %v2236_v18 = vrot.slane %v2105_v13, 1 }
 0x2d5   : > { %v1986_v40 = vpop.f32.mrf.mxu0  ;;  %v1921_v19 = vadd.f32 %v1920_v23, %v1852_v7 }
 0x2d6   : > { %v1987_v17 = vadd.f32 %v1986_v40, %v1918_v44  ;;  %v2055_v50 = vpop.f32.mrf.mxu1  ;;  %v2237_v10 = vsel %vm544_vm0, %v2232_v35, %v2236_v18 }
 0x2d7   : > { %2528 = vmatpush.bf16.msrb.mxu2 %v2363_v1  ;;  %v7044_v28 = vmax.f32 %v2103_v9, %v2237_v10  ;;  %v1785_v1 = vadd.f32 %v6811_v14, %v6559_v42 }
 0x2d8   : > { %v2056_v51 = vadd.f32 %v2055_v50, %v1987_v17 }
 0x2d9   : > { %v2371_v43 = vpack.c.bf16 %v7044_v28, %v7023_v29  ;;  %v1854_v57 = vadd.f32 %v1853_v59, %v1785_v1  ;;  %v1925_v15 = vpop.f32.mrf.mxu3  ;;  %v5198_v1 = vld [vmem:[%s7587_s4 + $0x38] sm:$0xff]  ;;  %v5204_v29 = vld [vmem:[%s7587_s4 + $0x68] sm:$0xff]  ;;  %v5193_v28 = vld [vmem:[%s7587_s4 + $0x10] sm:$0xff] }
 0x2da   : > { %v2107_v22 = vmax.f32 %v2056_v51, 0.0 }
 0x2db   : > { %2529 = vmatpush.bf16.msrb.mxu2 %v2361_v48  ;;  %v1856_v48 = vpop.f32.mrf.mxu2  ;;  %v1923_v35 = vadd.f32 %v1922_v58, %v1854_v57  ;;  %v5206_v57 = vld [vmem:[%s7587_s4 + $0x78] sm:$0xff] }
 0x2dc   : > { %v2240_v61 = vrot.slane %v2107_v22, 1  ;;  %v1857_v41 = vadd.f32 %v1856_v48, %v1788_v38 }
 0x2dd   : > { %v1989_v45 = vpop.f32.mrf.mxu0 }
 0x2de   : > { %v1990_v46 = vadd.f32 %v1989_v45, %v1921_v19  ;;  %v2058_v54 = vpop.f32.mrf.mxu1  ;;  %v2241_v52 = vsel %vm544_vm0, %v2236_v18, %v2240_v61 }
 0x2df   : > { %2530 = vmatpush.bf16.msrb.mxu2 %v2359_v47  ;;  %v7057_v9 = vmax.f32 %v2105_v13, %v2241_v52  ;;  %v1790_v13 = vadd.f32 %v6821_v56, %v6559_v42  ;;  %v5197_v52 = vld [vmem:[%s7587_s4 + $0x30] sm:$0xff] }
 0x2e0   : > { %v2059_v39 = vadd.f32 %v2058_v54, %v1990_v46  ;;  %v5208_v46 = vld [vmem:[%s7587_s4 + $0x88] sm:$0xff]  ;;  %v5207_v54 = vld [vmem:[%s7587_s4 + $0x80] sm:$0xff] }
 0x2e1   : > { %v1927_v44 = vpop.f32.mrf.mxu3  ;;  %2848 = vmatpush.bf16.msrb.mxu0 %v5208_v46 }
 0x2e2   : > { %v2109_v24 = vmax.f32 %v2059_v39, 0.0  ;;  %v5196_v39 = vld [vmem:[%s7587_s4 + $0x28] sm:$0xff] }
 0x2e3   : > { %2531 = vmatpush.bf16.msrb.mxu2 %v2357_v53  ;;  %v1926_v53 = vadd.f32 %v1925_v15, %v1857_v41  ;;  %v1858_v5 = vpop.f32.mrf.mxu2 }
 0x2e4   : > { %v2244_v14 = vrot.slane %v2109_v24, 1 }
 0x2e5   : > { %v1991_v30 = vpop.f32.mrf.mxu0  ;;  %2849 = vmatpush.bf16.msrb.mxu0 %v5207_v54 }
 0x2e6   : > { %v1992_v25 = vadd.f32 %v1991_v30, %v1923_v35  ;;  %v2060_v27 = vpop.f32.mrf.mxu1  ;;  %v2245_v0 = vsel %vm544_vm0, %v2240_v61, %v2244_v14  ;;  %v5194_v35 = vld [vmem:[%s7587_s4 + $0x18] sm:$0xff] }
 0x2e7   : > { %2532 = vmatpush.bf16.msrb.mxu2 %v2355_v11  ;;  %v2345_v47 = vmax.f32 %v2107_v22, %v2245_v0  ;;  %v1859_v11 = vadd.f32 %v1858_v5, %v1790_v13  ;;  %v5202_v30 = vld [vmem:[%s7587_s4 + $0x58] sm:$0xff] }
 0x2e8   : > { %v2061_v63 = vadd.f32 %v2060_v27, %v1992_v25  ;;  %v5191_v27 = vld [vmem:[%s7587_s4] sm:$0xff] }
 0x2e9   : > { %v2373_v8 = vpack.c.bf16 %v2345_v47, %v7057_v9  ;;  %v1928_v40 = vadd.f32 %v1927_v44, %v1859_v11  ;;  %2850 = vmatpush.bf16.msrb.mxu0 %v5206_v57 }
 0x2ea   : > { %v2111_v20 = vmax.f32 %v2061_v63, 0.0  ;;  %2533 = vmatmul.bf16.vlgmr.msrb.gmra.mxu2 %v6895_v62 }
 0x2eb   : > { %2699 = vmatpush.bf16.msra.mxu2 %v5198_v1 }
 0x2ec   : > { %v2248_v32 = vrot.slane %v2111_v20, 1 }
 0x2ed   : > { %v1994_v3 = vpop.f32.mrf.mxu0 }
 0x2ee   : > { %v1995_v23 = vadd.f32 %v1994_v3, %v1926_v53  ;;  %v2063_v6 = vpop.f32.mrf.mxu1  ;;  %v2249_v37 = vsel %vm544_vm0, %v2244_v14, %v2248_v32  ;;  %v5192_v14 = vld [vmem:[%s7587_s4 + $0x8] sm:$0xff] }
 0x2ef   : > { %v2347_v16 = vmax.f32 %v2109_v24, %v2249_v37  ;;  %2700 = vmatpush.bf16.msra.mxu2 %v5197_v52  ;;  %v5205_v24 = vld [vmem:[%s7587_s4 + $0x70] sm:$0xff] }
 0x2f0   : > { %v2064_v21 = vadd.f32 %v2063_v6, %v1995_v23  ;;  %2851 = vmatpush.bf16.msrb.mxu0 %v5205_v24 }
 0x2f2   : > { %v2113_v18 = vmax.f32 %v2064_v21, 0.0 }
 0x2f3   : > { %2701 = vmatpush.bf16.msra.mxu2 %v5196_v39 }
 0x2f4   : > { %v2252_v49 = vrot.slane %v2113_v18, 1  ;;  %2852 = vmatpush.bf16.msrb.mxu0 %v5204_v29 }
 0x2f5   : > { %v1996_v17 = vpop.f32.mrf.mxu0 }
 0x2f6   : > { %v1997_v62 = vadd.f32 %v1996_v17, %v1928_v40  ;;  %v2253_v50 = vsel %vm544_vm0, %v2248_v32, %v2252_v49  ;;  %v2065_v10 = vpop.f32.mrf.mxu1 }
 0x2f7   : > { %v2349_v7 = vmax.f32 %v2111_v20, %v2253_v50 }
 0x2f8   : > { %v2066_v51 = vadd.f32 %v2065_v10, %v1997_v62 }
 0x2f9   : > { %v2375_v59 = vpack.c.bf16 %v2349_v7, %v2347_v16 }
 0x2fa   : > { %v2115_v42 = vmax.f32 %v2066_v51, 0.0  ;;  %2538 = vmatmul.bf16.gmra.mxu2 %v6919_v36  ;;  %v5210_v36 = vld [vmem:[%s7587_s4 + $0x98] sm:$0xff]  ;;  %v5200_v51 = vld [vmem:[%s7587_s4 + $0x48] sm:$0xff] }
 0x2fb   : > { %2888 = vmatpush.bf16.msrb.mxu1 %v5210_v36 }
 0x2fc   : > { %v2256_v56 = vrot.slane %v2115_v42, 1 }
 0x2fd   : > { %v2466_v9 = vpop.f32.mrf.mxu2 }
 0x2fe   : > { %v2257_v22 = vsel %vm544_vm0, %v2252_v49, %v2256_v56  ;;  %v2353_v19 = vmax.f32 %v2115_v42, %v2256_v56 }
 0x2ff   : > { %v2351_v61 = vmax.f32 %v2113_v18, %v2257_v22 }
 0x301   : > { %v2377_v58 = vpack.c.bf16 %v2353_v19, %v2351_v61 }
 0x303   : > { %v2455_v45 = vand.u32 %v6829_v34, %v2377_v58 }
 0x305   : > { %2563 = vmatpush.bf16.msrb.mxu3 %v2455_v45  ;;  %v2468_v48 = vpop.f32.mrf.mxu2 }
 0x309   : > { %2564 = vmatpush.bf16.msrb.mxu3 %v2375_v59 }
 0x30a   : > { %2543 = vmatmul.bf16.gmra.mxu2 %v6950_v31  ;;  %v5195_v31 = vld [vmem:[%s7587_s4 + $0x20] sm:$0xff] }
 0x30b   : > { %2702 = vmatpush.bf16.msra.mxu2 %v5195_v31 }
 0x30d   : > { %2565 = vmatpush.bf16.msrb.mxu3 %v2373_v8  ;;  %v2471_v38 = vpop.f32.mrf.mxu2 }
 0x30f   : > { %2703 = vmatpush.bf16.msra.mxu2 %v5194_v35 }
 0x311   : > { %2566 = vmatpush.bf16.msrb.mxu3 %v2371_v43  ;;  %v5203_v43 = vld [vmem:[%s7587_s4 + $0x60] sm:$0xff] }
 0x312   : > { %2853 = vmatpush.bf16.msrb.mxu0 %v5203_v43 }
 0x313   : > { %2704 = vmatpush.bf16.msra.mxu2 %v5193_v28 }
 0x314   : > { %4622 = vmatmul.msk.bf16.vlgmr.msrb.gmra.mxu3 %vm2433_vm4, %v6924_v60  ;;  %v2500_v60 = vpop.f32.mrf.mxu3 }
 0x315   : > { %v2501_v25 = vadd.f32 %v2500_v60, %v2466_v9  ;;  %v2473_v41 = vpop.f32.mrf.mxu2  ;;  %2739 = vmatpush.bf16.msra.mxu3 %v5200_v51  ;;  %v5229_v51 = vld [vmem:[%s7588_s5 + $0x90] sm:$0xff] }
 0x316   : > { %2854 = vmatpush.bf16.msrb.mxu0 %v5202_v30 }
 0x317   : > { %2705 = vmatpush.bf16.msra.mxu2 %v5192_v14 }
 0x31a   : > { %2548 = vmatmul.bf16.gmra.mxu2 %v6981_v4  ;;  %v5201_v4 = vld [vmem:[%s7587_s4 + $0x50] sm:$0xff] }
 0x31b   : > { %2706 = vmatpush.bf16.msra.mxu2 %v5191_v27  ;;  %2855 = vmatpush.bf16.msrb.mxu0 %v5201_v4 }
 0x31c   : > { %v2502_v0 = vpop.f32.mrf.mxu3 }
 0x31d   : > { %v2503_v15 = vadd.f32 %v2502_v0, %v2468_v48 }
 0x31f   : > { %v2593_v47 = vpack.c.bf16 %v2503_v15, %v2501_v25 }
 0x321   : > { %2856 = vmatmul.bf16.vlgmr.msrb.gmra.mxu0 %v2593_v47 }
 0x324   : > { %4623 = vmatmul.msk.bf16.gmra.mxu3 %vm2433_vm4, %v6955_v55  ;;  %v2505_v63 = vpop.f32.mrf.mxu3  ;;  %v2476_v8 = vpop.f32.mrf.mxu2 }
 0x325   : > { %v2506_v20 = vadd.f32 %v2505_v63, %v2471_v38 }
 0x32a   : > { %2553 = vmatmul.bf16.gmra.mxu2 %v7007_v33 }
 0x32c   : > { %v2507_v53 = vpop.f32.mrf.mxu3  ;;  %v2478_v3 = vpop.f32.mrf.mxu2 }
 0x32d   : > { %v2508_v32 = vadd.f32 %v2507_v53, %v2473_v41  ;;  %v5216_v53 = vld [vmem:[%s7588_s5 + $0x28] sm:$0xff] }
 0x32f   : > { %v2595_v5 = vpack.c.bf16 %v2508_v32, %v2506_v20  ;;  %v5217_v20 = vld [vmem:[%s7588_s5 + $0x30] sm:$0xff]  ;;  %v5226_v32 = vld [vmem:[%s7588_s5 + $0x78] sm:$0xff] }
 0x331   : > { %2861 = vmatmul.bf16.gmra.mxu0 %v2595_v5 }
 0x334   : > { %4624 = vmatmul.msk.bf16.gmra.mxu3 %vm2433_vm4, %v6986_v26  ;;  %v2510_v13 = vpop.f32.mrf.mxu3  ;;  %v2481_v33 = vpop.f32.mrf.mxu2 }
 0x335   : > { %v2511_v23 = vadd.f32 %v2510_v13, %v2476_v8  ;;  %v5218_v8 = vld [vmem:[%s7588_s5 + $0x38] sm:$0xff]  ;;  %v5215_v13 = vld [vmem:[%s7588_s5 + $0x20] sm:$0xff] }
 0x336   : > { %3401 = vmatpush.bf16.msrb.mxu2 %v5218_v8 }
 0x33a   : > { %2707 = vmatmul.bf16.vlgmr.msra.gmra.mxu2 %v2593_v47 }
 0x33b   : > { %3402 = vmatpush.bf16.msrb.mxu2 %v5217_v20 }
 0x33c   : > { %v2512_v55 = vpop.f32.mrf.mxu3  ;;  %v2483_v11 = vpop.f32.mrf.mxu2 }
 0x33d   : > { %v2513_v6 = vadd.f32 %v2512_v55, %v2478_v3  ;;  %v5242_v3 = vld [vmem:[%s7588_s5 + $0xf8] sm:$0xff]  ;;  %v5233_v55 = vld [vmem:[%s7588_s5 + $0xb0] sm:$0xff] }
 0x33f   : > { %v2597_v37 = vpack.c.bf16 %v2513_v6, %v2511_v23  ;;  %3403 = vmatpush.bf16.msrb.mxu2 %v5216_v53  ;;  %v5225_v23 = vld [vmem:[%s7588_s5 + $0x70] sm:$0xff] }
 0x340   : > { %v5241_v6 = vld [vmem:[%s7588_s5 + $0xf0] sm:$0xff] }
 0x341   : > { %2866 = vmatmul.bf16.gmra.mxu0 %v2597_v37 }
 0x343   : > { %3404 = vmatpush.bf16.msrb.mxu2 %v5215_v13 }
 0x344   : > { %4625 = vmatmul.msk.bf16.gmra.mxu3 %vm2433_vm4, %v7012_v2  ;;  %v2515_v16 = vpop.f32.mrf.mxu3  ;;  %v2486_v40 = vpop.f32.mrf.mxu2  ;;  %v5209_v2 = vld [vmem:[%s7587_s4 + $0x90] sm:$0xff] }
 0x345   : > { %v2516_v21 = vadd.f32 %v2515_v16, %v2481_v33  ;;  %2889 = vmatpush.bf16.msrb.mxu1 %v5209_v2  ;;  %v5214_v33 = vld [vmem:[%s7588_s5 + $0x18] sm:$0xff]  ;;  %v5232_v16 = vld [vmem:[%s7588_s5 + $0xa8] sm:$0xff] }
 0x346   : > { %v5230_v2 = vld [vmem:[%s7588_s5 + $0x98] sm:$0xff] }
 0x347   : > { %3405 = vmatpush.bf16.msrb.mxu2 %v5214_v33 }
 0x349   : > { %3503 = vmatpush.bf16.msra.mxu1 %v5242_v3 }
 0x34a   : > { %2712 = vmatmul.bf16.gmra.mxu2 %v2595_v5  ;;  %v5234_v5 = vld [vmem:[%s7588_s5 + $0xb8] sm:$0xff] }
 0x34b   : > { %3469 = vmatpush.bf16.msra.mxu0 %v5234_v5 }
 0x34c   : > { %v2517_v44 = vpop.f32.mrf.mxu3  ;;  %v2488_v62 = vpop.f32.mrf.mxu2 }
 0x34d   : > { %v2518_v26 = vadd.f32 %v2517_v44, %v2483_v11  ;;  %3504 = vmatpush.bf16.msra.mxu1 %v5241_v6  ;;  %v5240_v11 = vld [vmem:[%s7588_s5 + $0xe8] sm:$0xff]  ;;  %v5223_v44 = vld [vmem:[%s7588_s5 + $0x60] sm:$0xff] }
 0x34f   : > { %v2599_v18 = vpack.c.bf16 %v2518_v26, %v2516_v21  ;;  %3470 = vmatpush.bf16.msra.mxu0 %v5233_v55  ;;  %v5213_v21 = vld [vmem:[%s7588_s5 + $0x10] sm:$0xff]  ;;  %v5231_v26 = vld [vmem:[%s7588_s5 + $0xa0] sm:$0xff] }
 0x350   : > { %3406 = vmatpush.bf16.msrb.mxu2 %v5213_v21 }
 0x351   : > { %2871 = vmatmul.bf16.gmra.mxu0 %v2599_v18  ;;  %3505 = vmatpush.bf16.msra.mxu1 %v5240_v11 }
 0x353   : > { %3471 = vmatpush.bf16.msra.mxu0 %v5232_v16 }
 0x354   : > { %4626 = vmatmul.msk.bf16.gmra.mxu3 %vm2433_vm4, %v7034_v12  ;;  %v2520_v49 = vpop.f32.mrf.mxu3  ;;  %v5199_v12 = vld [vmem:[%s7587_s4 + $0x40] sm:$0xff] }
 0x355   : > { %v2521_v17 = vadd.f32 %v2520_v49, %v2486_v40  ;;  %2740 = vmatpush.bf16.msra.mxu3 %v5199_v12  ;;  %v5212_v40 = vld [vmem:[%s7588_s5 + $0x8] sm:$0xff]  ;;  %v5222_v49 = vld [vmem:[%s7588_s5 + $0x58] sm:$0xff]  ;;  %v5237_v12 = vld [vmem:[%s7588_s5 + $0xd0] sm:$0xff] }
 0x356   : > { %3407 = vmatpush.bf16.msrb.mxu2 %v5212_v40 }
 0x357   : > { %3472 = vmatpush.bf16.msra.mxu0 %v5231_v26 }
 0x359   : > { %3435 = vmatpush.bf16.msrb.mxu3 %v5226_v32 }
 0x35a   : > { %2717 = vmatmul.bf16.gmra.mxu2 %v2597_v37  ;;  %v5224_v37 = vld [vmem:[%s7588_s5 + $0x68] sm:$0xff] }
 0x35b   : > { %3473 = vmatpush.bf16.msra.mxu0 %v5230_v2 }
 0x35c   : > { %v2522_v50 = vpop.f32.mrf.mxu3 }
 0x35d   : > { %v2523_v10 = vadd.f32 %v2522_v50, %v2488_v62  ;;  %3436 = vmatpush.bf16.msrb.mxu3 %v5225_v23  ;;  %v5211_v62 = vld [vmem:[%s7588_s5] sm:$0xff] }
 0x35e   : > { %3408 = vmatpush.bf16.msrb.mxu2 %v5211_v62 }
 0x35f   : > { %v2601_v7 = vpack.c.bf16 %v2523_v10, %v2521_v17  ;;  %v5238_v17 = vld [vmem:[%s7588_s5 + $0xd8] sm:$0xff]  ;;  %3474 = vmatpush.bf16.msra.mxu0 %v5229_v51 }
 0x361   : > { %2876 = vmatmul.bf16.gmra.mxu0 %v2601_v7  ;;  %3437 = vmatpush.bf16.msrb.mxu3 %v5224_v37 }
 0x365   : > { %3438 = vmatpush.bf16.msrb.mxu3 %v5223_v44 }
 0x369   : > { %3439 = vmatpush.bf16.msrb.mxu3 %v5222_v49 }
 0x36a   : > { %2722 = vmatmul.bf16.gmra.mxu2 %v2599_v18  ;;  %v5239_v18 = vld [vmem:[%s7588_s5 + $0xe0] sm:$0xff] }
 0x36b   : > { %3506 = vmatpush.bf16.msra.mxu1 %v5239_v18 }
 0x36d   : > { %v2534_v59 = vpop.f32.mrf.mxu2 }
 0x36f   : > { %3507 = vmatpush.bf16.msra.mxu1 %v5238_v17 }
 0x373   : > { %3508 = vmatpush.bf16.msra.mxu1 %v5237_v12 }
 0x375   : > { %v2536_v42 = vpop.f32.mrf.mxu2 }
 0x37a   : > { %2727 = vmatmul.bf16.gmra.mxu2 %v2601_v7  ;;  %v5221_v7 = vld [vmem:[%s7588_s5 + $0x50] sm:$0xff] }
 0x37b   : > { %3440 = vmatpush.bf16.msrb.mxu3 %v5221_v7 }
 0x37d   : > { %v2539_v22 = vpop.f32.mrf.mxu2 }
 0x385   : > { %v2541_v1 = vpop.f32.mrf.mxu2 }
 0x38d   : > { %v2544_v36 = vpop.f32.mrf.mxu2 }
 0x395   : > { %v2546_v39 = vpop.f32.mrf.mxu2 }
 0x397   : > { %v2568_v56 = vpop.f32.mrf.mxu3 }
 0x398   : > { %v2569_v61 = vadd.f32 %v2568_v56, %v2534_v59  ;;  %v5220_v59 = vld [vmem:[%s7588_s5 + $0x48] sm:$0xff] }
 0x399   : > { %v5236_v56 = vld [vmem:[%s7588_s5 + $0xc8] sm:$0xff]  ;;  %3441 = vmatpush.bf16.msrb.mxu3 %v5220_v59 }
 0x39a   : > { %3509 = vmatpush.bf16.msra.mxu1 %v5236_v56  ;;  %v5250_v56 = vld [vmem:[%s7588_s5 + $0x138] sm:$0xff] }
 0x39b   : > { %3537 = vmatpush.bf16.msra.mxu2 %v5250_v56 }
 0x39d   : > { %v2549_v29 = vpop.f32.mrf.mxu2 }
 0x39e   : > { %v2857_v50 = vpop.f32.mrf.mxu0 }
 0x39f   : > { %v2570_v19 = vpop.f32.mrf.mxu3 }
 0x3a0   : > { %v2571_v58 = vadd.f32 %v2570_v19, %v2536_v42  ;;  %v5228_v42 = vld [vmem:[%s7588_s5 + $0x88] sm:$0xff]  ;;  %v5227_v19 = vld [vmem:[%s7588_s5 + $0x80] sm:$0xff] }
 0x3a1   : > { %3475 = vmatpush.bf16.msra.mxu0 %v5228_v42 }
 0x3a2   : > { %v2594_v45 = vpack.c.bf16 %v2571_v58, %v2569_v61  ;;  %v5235_v61 = vld [vmem:[%s7588_s5 + $0xc0] sm:$0xff] }
 0x3a3   : > { %3510 = vmatpush.bf16.msra.mxu1 %v5235_v61 }
 0x3a4   : > { %4667 = vmatmul.msk.bf16.vlgmr.msra.gmra.mxu3 %vm2683_vm5, %v2594_v45  ;;  %4732 = vmatmul.msk.bf16.vlgmr.msrb.gmra.mxu1 %vm2683_vm5, %v2594_v45 }
 0x3a5   : > { %v2551_v60 = vpop.f32.mrf.mxu2  ;;  %3476 = vmatpush.bf16.msra.mxu0 %v5227_v19 }
 0x3a6   : > { %v2859_v58 = vpop.f32.mrf.mxu0 }
 0x3a7   : > { %v2573_v46 = vpop.f32.mrf.mxu3 }
 0x3a8   : > { %v2574_v52 = vadd.f32 %v2573_v46, %v2539_v22  ;;  %v5219_v22 = vld [vmem:[%s7588_s5 + $0x40] sm:$0xff] }
 0x3a9   : > { %3442 = vmatpush.bf16.msrb.mxu3 %v5219_v22 }
 0x3ad   : > { %v2554_v27 = vpop.f32.mrf.mxu2 }
 0x3af   : > { %v2575_v54 = vpop.f32.mrf.mxu3 }
 0x3b0   : > { %v2576_v9 = vadd.f32 %v2575_v54, %v2541_v1 }
 0x3b2   : > { %v2596_v57 = vpack.c.bf16 %v2576_v9, %v2574_v52 }
 0x3b4   : > { %4668 = vmatmul.msk.bf16.gmra.mxu3 %vm2683_vm5, %v2596_v57  ;;  %4733 = vmatmul.msk.bf16.gmra.mxu1 %vm2683_vm5, %v2596_v57 }
 0x3b5   : > { %v2556_v0 = vpop.f32.mrf.mxu2 }
 0x3b7   : > { %v2578_v31 = vpop.f32.mrf.mxu3 }
 0x3b8   : > { %v2579_v48 = vadd.f32 %v2578_v31, %v2544_v36  ;;  %v2862_v36 = vpop.f32.mrf.mxu0 }
 0x3bd   : > { %v2708_v10 = vpop.f32.mrf.mxu2 }
 0x3bf   : > { %v2580_v24 = vpop.f32.mrf.mxu3 }
 0x3c0   : > { %v2581_v35 = vadd.f32 %v2580_v24, %v2546_v39 }
 0x3c2   : > { %v2598_v28 = vpack.c.bf16 %v2581_v35, %v2579_v48 }
 0x3c4   : > { %4669 = vmatmul.msk.bf16.gmra.mxu3 %vm2683_vm5, %v2598_v28  ;;  %4734 = vmatmul.msk.bf16.gmra.mxu1 %vm2683_vm5, %v2598_v28 }
 0x3c5   : > { %v2710_v45 = vpop.f32.mrf.mxu2 }
 0x3c7   : > { %v2583_v43 = vpop.f32.mrf.mxu3 }
 0x3c8   : > { %v2584_v30 = vadd.f32 %v2583_v43, %v2549_v29  ;;  %v2864_v29 = vpop.f32.mrf.mxu0 }
 0x3cd   : > { %v2713_v54 = vpop.f32.mrf.mxu2 }
 0x3cf   : > { %v2585_v14 = vpop.f32.mrf.mxu3 }
 0x3d0   : > { %v2586_v38 = vadd.f32 %v2585_v14, %v2551_v60  ;;  %v2867_v32 = vpop.f32.mrf.mxu0 }
 0x3d2   : > { %v2600_v25 = vpack.c.bf16 %v2586_v38, %v2584_v30 }
 0x3d4   : > { %4670 = vmatmul.msk.bf16.gmra.mxu3 %vm2683_vm5, %v2600_v25  ;;  %4735 = vmatmul.msk.bf16.gmra.mxu1 %vm2683_vm5, %v2600_v25 }
 0x3d5   : > { %v2715_v43 = vpop.f32.mrf.mxu2 }
 0x3d7   : > { %v2588_v4 = vpop.f32.mrf.mxu3 }
 0x3d8   : > { %v2589_v47 = vadd.f32 %v2588_v4, %v2554_v27  ;;  %v2869_v12 = vpop.f32.mrf.mxu0 }
 0x3dd   : > { %v2718_v55 = vpop.f32.mrf.mxu2 }
 0x3df   : > { %v2590_v15 = vpop.f32.mrf.mxu3 }
 0x3e0   : > { %v2591_v41 = vadd.f32 %v2590_v15, %v2556_v0 }
 0x3e2   : > { %v2602_v63 = vpack.c.bf16 %v2591_v41, %v2589_v47 }
 0x3e4   : > { %4671 = vmatmul.msk.bf16.gmra.mxu3 %vm2683_vm5, %v2602_v63  ;;  %4736 = vmatmul.msk.bf16.gmra.mxu1 %vm2683_vm5, %v2602_v63 }
 0x3e5   : > { %v2720_v59 = vpop.f32.mrf.mxu2 }
 0x421   : > { %v2891_v1 = vpop.f32.mrf.mxu1 }
 0x422   : > { %v2892_v57 = vadd.f32 %v2891_v1, %v2857_v50 }
 0x427   : > { %v2742_v46 = vpop.f32.mrf.mxu3 }
 0x428   : > { %v2743_v9 = vadd.f32 %v2742_v46, %v2708_v10 }
 0x429   : > { %v2893_v52 = vpop.f32.mrf.mxu1 }
 0x42a   : > { %v2916_v31 = vmax.f32 %v2743_v9, %v2892_v57  ;;  %v2894_v24 = vadd.f32 %v2893_v52, %v2859_v58 }
 0x42c   : > { %v3023_v60 = vrot.slane %v2916_v31, 4  ;;  %v2936_v8 = vrot.slane %v2916_v31, 1  ;;  %v2965_v20 = vrot.slane %v2916_v31, 2  ;;  %v2994_v53 = vrot.slane %v2916_v31, 3 }
 0x42f   : > { %v2744_v39 = vpop.f32.mrf.mxu3 }
 0x430   : > { %v2745_v48 = vadd.f32 %v2744_v39, %v2710_v45 }
 0x431   : > { %v2896_v35 = vpop.f32.mrf.mxu1 }
 0x432   : > { %v2917_v28 = vmax.f32 %v2745_v48, %v2894_v24  ;;  %v2897_v27 = vadd.f32 %v2896_v35, %v2862_v36 }
 0x434   : > { %v3024_v14 = vrot.slane %v2917_v28, 4  ;;  %v3052_v30 = vpack.c.bf16 %v2917_v28, %v2916_v31  ;;  %v2937_v0 = vrot.slane %v2917_v28, 1  ;;  %v2966_v15 = vrot.slane %v2917_v28, 2 }
 0x435   : > { %v2995_v47 = vrot.slane %v2917_v28, 3 }
 0x436   : > { %v7260_v38 = vsel %vm760_vm3, %v3023_v60, %v3024_v14  ;;  %3409 = vmatmul.bf16.vlgmr.msrb.gmra.mxu2 %v3052_v30  ;;  %v2938_v6 = vsel %vm544_vm0, %v2936_v8, %v2937_v0  ;;  %v2967_v33 = vsel %vm616_vm1, %v2965_v20, %v2966_v15  ;;  %v5247_v20 = vld [vmem:[%s7588_s5 + $0x120] sm:$0xff] }
 0x437   : > { %v2747_v25 = vpop.f32.mrf.mxu3  ;;  %v2996_v37 = vsel %vm688_vm2, %v2994_v53, %v2995_v47 }
 0x438   : > { %v2748_v4 = vadd.f32 %v2747_v25, %v2713_v54  ;;  %v5249_v54 = vld [vmem:[%s7588_s5 + $0x130] sm:$0xff] }
 0x439   : > { %v2898_v41 = vpop.f32.mrf.mxu1  ;;  %3538 = vmatpush.bf16.msra.mxu2 %v5249_v54 }
 0x43a   : > { %v2918_v63 = vmax.f32 %v2748_v4, %v2897_v27  ;;  %v2899_v17 = vadd.f32 %v2898_v41, %v2864_v29  ;;  %v5248_v27 = vld [vmem:[%s7588_s5 + $0x128] sm:$0xff]  ;;  %v2723_v41 = vpop.f32.mrf.mxu2 }
 0x43c   : > { %v2939_v5 = vrot.slane %v2918_v63, 1  ;;  %v2968_v3 = vrot.slane %v2918_v63, 2  ;;  %v2997_v13 = vrot.slane %v2918_v63, 3  ;;  %v3026_v23 = vrot.slane %v2918_v63, 4 }
 0x43d   : > { %3539 = vmatpush.bf16.msra.mxu2 %v5248_v27 }
 0x43e   : > { %v2940_v16 = vsel %vm544_vm0, %v2937_v0, %v2939_v5  ;;  %v2969_v11 = vsel %vm616_vm1, %v2966_v15, %v2968_v3  ;;  %v2998_v21 = vsel %vm688_vm2, %v2995_v47, %v2997_v13  ;;  %v7269_v44 = vsel %vm760_vm3, %v3024_v14, %v3026_v23  ;;  %v2872_v0 = vpop.f32.mrf.mxu0 }
 0x43f   : > { %v2749_v26 = vpop.f32.mrf.mxu3  ;;  %v3053_v18 = vpack.c.bf16 %v2940_v16, %v2938_v6  ;;  %v3054_v40 = vpack.c.bf16 %v2969_v11, %v2967_v33  ;;  %v3055_v49 = vpack.c.bf16 %v2998_v21, %v2996_v37  ;;  %v3056_v2 = vpack.c.bf16 %v7269_v44, %v7260_v38 }
 0x440   : > { %v2750_v62 = vadd.f32 %v2749_v26, %v2715_v43  ;;  %v5245_v26 = vld [vmem:[%s7588_s5 + $0x110] sm:$0xff] }
 0x441   : > { %v2901_v50 = vpop.f32.mrf.mxu1  ;;  %3443 = vmatmul.bf16.vlgmr.msrb.gmra.mxu3 %v3053_v18  ;;  %3477 = vmatmul.bf16.vlgmr.msra.gmra.mxu0 %v3054_v40 }
 0x442   : > { %v2919_v10 = vmax.f32 %v2750_v62, %v2899_v17  ;;  %3511 = vmatmul.bf16.vlgmr.msra.gmra.mxu1 %v3055_v49  ;;  %v2902_v19 = vadd.f32 %v2901_v50, %v2867_v32  ;;  %3540 = vmatpush.bf16.msra.mxu2 %v5247_v20  ;;  %v2725_v18 = vpop.f32.mrf.mxu2 }
 0x444   : > { %v3057_v7 = vpack.c.bf16 %v2919_v10, %v2918_v63  ;;  %v3028_v51 = vrot.slane %v2919_v10, 4  ;;  %v2941_v45 = vrot.slane %v2919_v10, 1  ;;  %v2970_v1 = vrot.slane %v2919_v10, 2 }
 0x445   : > { %v2999_v46 = vrot.slane %v2919_v10, 3 }
 0x446   : > { %3414 = vmatmul.bf16.gmra.mxu2 %v3057_v7  ;;  %v7277_v22 = vsel %vm760_vm3, %v3026_v23, %v3028_v51  ;;  %v2942_v31 = vsel %vm544_vm0, %v2939_v5, %v2941_v45  ;;  %v2971_v24 = vsel %vm616_vm1, %v2968_v3, %v2970_v1  ;;  %v5246_v3 = vld [vmem:[%s7588_s5 + $0x118] sm:$0xff]  ;;  %v2874_v11 = vpop.f32.mrf.mxu0 }
 0x447   : > { %v2752_v42 = vpop.f32.mrf.mxu3  ;;  %v3000_v48 = vsel %vm688_vm2, %v2997_v13, %v2999_v46  ;;  %3541 = vmatpush.bf16.msra.mxu2 %v5246_v3 }
 0x448   : > { %v2753_v61 = vadd.f32 %v2752_v42, %v2718_v55  ;;  %v5244_v42 = vld [vmem:[%s7588_s5 + $0x108] sm:$0xff] }
 0x449   : > { %v2903_v58 = vpop.f32.mrf.mxu1 }
 0x44a   : > { %v2920_v36 = vmax.f32 %v2753_v61, %v2902_v19  ;;  %v2904_v15 = vadd.f32 %v2903_v58, %v2869_v12 }
 0x44b   : > { %3542 = vmatpush.bf16.msra.mxu2 %v5245_v26 }
 0x44c   : > { %v2943_v52 = vrot.slane %v2920_v36, 1  ;;  %v2972_v9 = vrot.slane %v2920_v36, 2  ;;  %v3001_v57 = vrot.slane %v2920_v36, 3  ;;  %v3030_v39 = vrot.slane %v2920_v36, 4 }
 0x44e   : > { %v2944_v35 = vsel %vm544_vm0, %v2941_v45, %v2943_v52  ;;  %v2973_v29 = vsel %vm616_vm1, %v2970_v1, %v2972_v9  ;;  %v3002_v28 = vsel %vm688_vm2, %v2999_v46, %v3001_v57  ;;  %v7289_v43 = vsel %vm760_vm3, %v3028_v51, %v3030_v39 }
 0x44f   : > { %v2754_v60 = vpop.f32.mrf.mxu3  ;;  %v3058_v14 = vpack.c.bf16 %v2944_v35, %v2942_v31  ;;  %v3059_v30 = vpack.c.bf16 %v2973_v29, %v2971_v24  ;;  %v3060_v25 = vpack.c.bf16 %v3002_v28, %v3000_v48  ;;  %v3061_v4 = vpack.c.bf16 %v7289_v43, %v7277_v22  ;;  %3543 = vmatpush.bf16.msra.mxu2 %v5244_v42  ;;  %v2728_v31 = vpop.f32.mrf.mxu2 }
 0x450   : > { %v2755_v47 = vadd.f32 %v2754_v60, %v2720_v59 }
 0x451   : > { %v2906_v63 = vpop.f32.mrf.mxu1  ;;  %3448 = vmatmul.bf16.gmra.mxu3 %v3058_v14  ;;  %3482 = vmatmul.bf16.gmra.mxu0 %v3059_v30 }
 0x452   : > { %v2921_v8 = vmax.f32 %v2755_v47, %v2904_v15  ;;  %3516 = vmatmul.bf16.gmra.mxu1 %v3060_v25  ;;  %v2907_v23 = vadd.f32 %v2906_v63, %v2872_v0 }
 0x454   : > { %v3062_v53 = vpack.c.bf16 %v2921_v8, %v2920_v36  ;;  %v3032_v32 = vrot.slane %v2921_v8, 4  ;;  %v2945_v33 = vrot.slane %v2921_v8, 1  ;;  %v2974_v37 = vrot.slane %v2921_v8, 2 }
 0x455   : > { %v3003_v16 = vrot.slane %v2921_v8, 3 }
 0x456   : > { %3419 = vmatmul.bf16.gmra.mxu2 %v3062_v53  ;;  %v7303_v13 = vsel %vm760_vm3, %v3030_v39, %v3032_v32  ;;  %v2946_v50 = vsel %vm544_vm0, %v2943_v52, %v2945_v33  ;;  %v2975_v10 = vsel %vm616_vm1, %v2972_v9, %v2974_v37  ;;  %v5243_v52 = vld [vmem:[%s7588_s5 + $0x100] sm:$0xff] }
 0x457   : > { %v2757_v5 = vpop.f32.mrf.mxu3  ;;  %v3004_v7 = vsel %vm688_vm2, %v3001_v57, %v3003_v16  ;;  %v2877_v57 = vpop.f32.mrf.mxu0  ;;  %3544 = vmatpush.bf16.msra.mxu2 %v5243_v52 }
 0x458   : > { %v2758_v55 = vadd.f32 %v2757_v5, %v2723_v41 }
 0x459   : > { %v2908_v6 = vpop.f32.mrf.mxu1 }
 0x45a   : > { %v2922_v21 = vmax.f32 %v2758_v55, %v2907_v23  ;;  %v2909_v46 = vadd.f32 %v2908_v6, %v2874_v11  ;;  %v2730_v55 = vpop.f32.mrf.mxu2 }
 0x45c   : > { %v2947_v40 = vrot.slane %v2922_v21, 1  ;;  %v2976_v49 = vrot.slane %v2922_v21, 2  ;;  %v3005_v17 = vrot.slane %v2922_v21, 3  ;;  %v3034_v62 = vrot.slane %v2922_v21, 4 }
 0x45e   : > { %v2948_v51 = vsel %vm544_vm0, %v2945_v33, %v2947_v40  ;;  %v2977_v12 = vsel %vm616_vm1, %v2974_v37, %v2976_v49  ;;  %v3006_v59 = vsel %vm688_vm2, %v3003_v16, %v3005_v17  ;;  %v7318_v56 = vsel %vm760_vm3, %v3032_v32, %v3034_v62 }
 0x45f   : > { %v2759_v19 = vpop.f32.mrf.mxu3  ;;  %v3063_v61 = vpack.c.bf16 %v2948_v51, %v2946_v50  ;;  %v3064_v58 = vpack.c.bf16 %v2977_v12, %v2975_v10  ;;  %v3065_v45 = vpack.c.bf16 %v3006_v59, %v3004_v7  ;;  %v3066_v1 = vpack.c.bf16 %v7318_v56, %v7303_v13  ;;  %v2879_v53 = vpop.f32.mrf.mxu0 }
 0x460   : > { %v2760_v36 = vadd.f32 %v2759_v19, %v2725_v18 }
 0x461   : > { %3453 = vmatmul.bf16.gmra.mxu3 %v3063_v61  ;;  %3487 = vmatmul.bf16.gmra.mxu0 %v3064_v58  ;;  %v2911_v9 = vpop.f32.mrf.mxu1 }
 0x462   : > { %v2923_v54 = vmax.f32 %v2760_v36, %v2909_v46  ;;  %3521 = vmatmul.bf16.gmra.mxu1 %v3065_v45  ;;  %v2912_v29 = vadd.f32 %v2911_v9, %v2877_v57  ;;  %v7349_v45 = vld [vmem:[%s7589_s6] ss:$0 sm:$0xff] }
 0x464   : > { %v3067_v39 = vpack.c.bf16 %v2923_v54, %v2922_v21  ;;  %v3036_v24 = vrot.slane %v2923_v54, 4  ;;  %v2949_v60 = vrot.slane %v2923_v54, 1  ;;  %v2978_v14 = vrot.slane %v2923_v54, 2 }
 0x465   : > { %v3007_v30 = vrot.slane %v2923_v54, 3 }
 0x466   : > { %3424 = vmatmul.bf16.gmra.mxu2 %v3067_v39  ;;  %v3037_v35 = vsel %vm760_vm3, %v3034_v62, %v3036_v24  ;;  %v2950_v63 = vsel %vm544_vm0, %v2947_v40, %v2949_v60  ;;  %v2979_v8 = vsel %vm616_vm1, %v2976_v49, %v2978_v14 }
 0x467   : > { %v2762_v48 = vpop.f32.mrf.mxu3  ;;  %v3008_v20 = vsel %vm688_vm2, %v3005_v17, %v3007_v30 }
 0x468   : > { %v2763_v28 = vadd.f32 %v2762_v48, %v2728_v31 }
 0x469   : > { %v2913_v41 = vpop.f32.mrf.mxu1 }
 0x46a   : > { %v2924_v25 = vmax.f32 %v2763_v28, %v2912_v29  ;;  %v2914_v21 = vadd.f32 %v2913_v41, %v2879_v53 }
 0x46c   : > { %v2951_v27 = vrot.slane %v2924_v25, 1  ;;  %v2980_v0 = vrot.slane %v2924_v25, 2  ;;  %v3009_v15 = vrot.slane %v2924_v25, 3  ;;  %v3038_v47 = vrot.slane %v2924_v25, 4 }
 0x46e   : > { %v2952_v32 = vsel %vm544_vm0, %v2949_v60, %v2951_v27  ;;  %v2981_v5 = vsel %vm616_vm1, %v2978_v14, %v2980_v0  ;;  %v3010_v3 = vsel %vm688_vm2, %v3007_v30, %v3009_v15  ;;  %v3039_v23 = vsel %vm760_vm3, %v3036_v24, %v3038_v47 }
 0x46f   : > { %v2764_v6 = vpop.f32.mrf.mxu3  ;;  %v3068_v33 = vpack.c.bf16 %v2952_v32, %v2950_v63  ;;  %v3069_v37 = vpack.c.bf16 %v2981_v5, %v2979_v8  ;;  %v3070_v16 = vpack.c.bf16 %v3010_v3, %v3008_v20  ;;  %v3071_v11 = vpack.c.bf16 %v3039_v23, %v3037_v35 }
 0x470   : > { %v2765_v26 = vadd.f32 %v2764_v6, %v2730_v55 }
 0x471   : > { %3458 = vmatmul.bf16.gmra.mxu3 %v3068_v33  ;;  %3492 = vmatmul.bf16.gmra.mxu0 %v3069_v37 }
 0x472   : > { %v2925_v18 = vmax.f32 %v2765_v26, %v2914_v21  ;;  %3526 = vmatmul.bf16.gmra.mxu1 %v3070_v16 }
 0x474   : > { %v3072_v40 = vpack.c.bf16 %v2925_v18, %v2924_v25  ;;  %v3040_v49 = vrot.slane %v2925_v18, 4  ;;  %v2953_v62 = vrot.slane %v2925_v18, 1  ;;  %v2982_v50 = vrot.slane %v2925_v18, 2 }
 0x475   : > { %v3011_v7 = vrot.slane %v2925_v18, 3 }
 0x476   : > { %3429 = vmatmul.bf16.gmra.mxu2 %v3072_v40  ;;  %v3041_v17 = vsel %vm760_vm3, %v3038_v47, %v3040_v49  ;;  %v2954_v51 = vsel %vm544_vm0, %v2951_v27, %v2953_v62  ;;  %v2983_v12 = vsel %vm616_vm1, %v2980_v0, %v2982_v50 }
 0x477   : > { %v3076_v10 = vpack.c.bf16 %v3040_v49, %v3041_v17  ;;  %v3012_v59 = vsel %vm688_vm2, %v3009_v15, %v3011_v7  ;;  %v3073_v42 = vpack.c.bf16 %v2953_v62, %v2954_v51  ;;  %v3074_v19 = vpack.c.bf16 %v2982_v50, %v2983_v12 }
 0x478   : > { %v3075_v61 = vpack.c.bf16 %v3011_v7, %v3012_v59 }
 0x481   : > { %3463 = vmatmul.bf16.gmra.mxu3 %v3073_v42  ;;  %3497 = vmatmul.bf16.gmra.mxu0 %v3074_v19 }
 0x482   : > { %3531 = vmatmul.bf16.gmra.mxu1 %v3075_v61 }
 0x486   : > { %3545 = vmatmul.bf16.vlgmr.msra.gmra.mxu2 %v3056_v2 }
 0x496   : > { %3550 = vmatmul.bf16.gmra.mxu2 %v3061_v4 }
 0x4a6   : > { %3555 = vmatmul.bf16.gmra.mxu2 %v3066_v1 }
 0x4b6   : > { %3560 = vmatmul.bf16.gmra.mxu2 %v3071_v11 }
 0x4b9   : > { %v3410_v58 = vpop.f32.mrf.mxu2 }
 0x4ba   : > { %v3411_v38 = vadd.f32 %v7349_v45, %v3410_v58 }
 0x4be   : > { %v3478_v46 = vpop.f32.mrf.mxu0 }
 0x4bf   : > { %v3512_v44 = vpop.f32.mrf.mxu1 }
 0x4c1   : > { %v3412_v36 = vpop.f32.mrf.mxu2 }
 0x4c2   : > { %v3413_v13 = vadd.f32 %v7349_v45, %v3412_v36 }
 0x4c4   : > { %v3444_v2 = vpop.f32.mrf.mxu3 }
 0x4c5   : > { %v3445_v54 = vadd.f32 %v3444_v2, %v3411_v38 }
 0x4c6   : > { %3565 = vmatmul.bf16.gmra.mxu2 %v3076_v10  ;;  %v3480_v56 = vpop.f32.mrf.mxu0 }
 0x4c7   : > { %v3479_v22 = vadd.f32 %v3478_v46, %v3445_v54  ;;  %v3514_v9 = vpop.f32.mrf.mxu1 }
 0x4c9   : > { %v3513_v43 = vadd.f32 %v3512_v44, %v3479_v22  ;;  %v3415_v4 = vpop.f32.mrf.mxu2 }
 0x4ca   : > { %v3416_v24 = vadd.f32 %v7349_v45, %v3415_v4 }
 0x4cc   : > { %v3446_v1 = vpop.f32.mrf.mxu3 }
 0x4cd   : > { %v3447_v52 = vadd.f32 %v3446_v1, %v3413_v13 }
 0x4ce   : > { %v3483_v29 = vpop.f32.mrf.mxu0 }
 0x4cf   : > { %v3481_v57 = vadd.f32 %v3480_v56, %v3447_v52  ;;  %v3517_v60 = vpop.f32.mrf.mxu1 }
 0x4d1   : > { %v3515_v39 = vadd.f32 %v3514_v9, %v3481_v57  ;;  %v3417_v31 = vpop.f32.mrf.mxu2 }
 0x4d2   : > { %v3418_v6 = vadd.f32 %v7349_v45, %v3417_v31 }
 0x4d4   : > { %v3449_v48 = vpop.f32.mrf.mxu3 }
 0x4d5   : > { %v3450_v35 = vadd.f32 %v3449_v48, %v3416_v24 }
 0x4d6   : > { %v3485_v20 = vpop.f32.mrf.mxu0 }
 0x4d7   : > { %v3484_v28 = vadd.f32 %v3483_v29, %v3450_v35  ;;  %v3519_v32 = vpop.f32.mrf.mxu1 }
 0x4d9   : > { %v3518_v14 = vadd.f32 %v3517_v60, %v3484_v28  ;;  %v3420_v30 = vpop.f32.mrf.mxu2 }
 0x4da   : > { %v3421_v10 = vadd.f32 %v7349_v45, %v3420_v30 }
 0x4dc   : > { %v3451_v41 = vpop.f32.mrf.mxu3 }
 0x4dd   : > { %v3452_v16 = vadd.f32 %v3451_v41, %v3418_v6 }
 0x4de   : > { %v3488_v21 = vpop.f32.mrf.mxu0 }
 0x4df   : > { %v3486_v49 = vadd.f32 %v3485_v20, %v3452_v16  ;;  %v3522_v17 = vpop.f32.mrf.mxu1 }
 0x4e1   : > { %v3422_v25 = vpop.f32.mrf.mxu2  ;;  %v3520_v12 = vadd.f32 %v3519_v32, %v3486_v49 }
 0x4e2   : > { %v3423_v44 = vadd.f32 %v7349_v45, %v3422_v25 }
 0x4e4   : > { %v3454_v23 = vpop.f32.mrf.mxu3 }
 0x4e5   : > { %v3455_v51 = vadd.f32 %v3454_v23, %v3421_v10 }
 0x4e6   : > { %v3490_v58 = vpop.f32.mrf.mxu0 }
 0x4e7   : > { %v3489_v36 = vadd.f32 %v3488_v21, %v3455_v51  ;;  %v3524_v2 = vpop.f32.mrf.mxu1 }
 0x4e9   : > { %v3425_v27 = vpop.f32.mrf.mxu2  ;;  %v3523_v4 = vadd.f32 %v3522_v17, %v3489_v36 }
 0x4ea   : > { %v3426_v31 = vadd.f32 %v7349_v45, %v3425_v27 }
 0x4ec   : > { %v3456_v50 = vpop.f32.mrf.mxu3 }
 0x4ef   : > { %v3527_v48 = vpop.f32.mrf.mxu1 }
 0x4f1   : > { %v7354_v0 = vpop.f32.mrf.mxu2 }
 0x4f2   : > { %v3428_v20 = vadd.f32 %v7349_v45, %v7354_v0 }
 0x4f4   : > { %v3459_v22 = vpop.f32.mrf.mxu3 }
 0x4f5   : > { %v3460_v35 = vadd.f32 %v3459_v22, %v3426_v31 }
 0x4f9   : > { %v7356_v15 = vpop.f32.mrf.mxu2 }
 0x4fa   : > { %v3431_v21 = vadd.f32 %v7349_v45, %v7356_v15 }
 0x4fc   : > { %v3461_v60 = vpop.f32.mrf.mxu3 }
 0x4fd   : > { %v3462_v32 = vadd.f32 %v3461_v60, %v3428_v20  ;;  %v3637_v20 = vld [vmem:[%s7590_s7 + $0x8] sm:$0xf] }
 0x501   : > { %v7358_v47 = vpop.f32.mrf.mxu2 }
 0x509   : > { %v3546_v63 = vpop.f32.mrf.mxu2 }
 0x50a   : > { %v3547_v8 = vadd.f32 %v3546_v63, %v3513_v43  ;;  %v3457_v43 = vadd.f32 %v3456_v50, %v3423_v44 }
 0x50c   : > { %v3571_v5 = vmax.f32 %v3547_v8, 0.0  ;;  %v3491_v9 = vadd.f32 %v3490_v58, %v3457_v43 }
 0x50e   : > { %v3591_v33 = vrot.slane %v3571_v5, 1  ;;  %v3525_v29 = vadd.f32 %v3524_v2, %v3491_v9 }
 0x511   : > { %v3548_v53 = vpop.f32.mrf.mxu2 }
 0x512   : > { %v3549_v3 = vadd.f32 %v3548_v53, %v3515_v39  ;;  %v3493_v39 = vpop.f32.mrf.mxu0 }
 0x513   : > { %v3494_v63 = vadd.f32 %v3493_v39, %v3460_v35 }
 0x514   : > { %v3572_v55 = vmax.f32 %v3549_v3, 0.0 }
 0x516   : > { %v3592_v37 = vrot.slane %v3572_v55, 1 }
 0x518   : > { %v3593_v11 = vsel %vm544_vm0, %v3591_v33, %v3592_v37  ;;  %v3529_v33 = vpop.f32.mrf.mxu1 }
 0x519   : > { %v3551_v26 = vpop.f32.mrf.mxu2  ;;  %v7362_v18 = vmax.f32 %v3571_v5, %v3593_v11  ;;  %v3528_v5 = vadd.f32 %v3527_v48, %v3494_v63  ;;  %v5253_v63 = vld [vmem:[%s7591_s8 + $0x8] sm:$0xff] }
 0x51a   : > { %v3552_v40 = vadd.f32 %v3551_v26, %v3518_v14  ;;  %v3495_v53 = vpop.f32.mrf.mxu0 }
 0x51b   : > { %v3496_v16 = vadd.f32 %v3495_v53, %v3462_v32  ;;  %v5272_v32 = vld [vmem:[%s7592_s9 + $0x70] sm:$0xff] }
 0x51c   : > { %v3573_v62 = vmax.f32 %v3552_v40, 0.0 }
 0x51d   : > { %v3530_v49 = vadd.f32 %v3529_v33, %v3496_v16  ;;  %v5262_v33 = vld [vmem:[%s7592_s9 + $0x20] sm:$0xff] }
 0x51e   : > { %v3594_v7 = vrot.slane %v3573_v62, 1 }
 0x520   : > { %v3595_v59 = vsel %vm544_vm0, %v3592_v37, %v3594_v7  ;;  %v3464_v37 = vpop.f32.mrf.mxu3 }
 0x521   : > { %v3553_v42 = vpop.f32.mrf.mxu2  ;;  %v7366_v19 = vmax.f32 %v3572_v55, %v3595_v59  ;;  %v3465_v40 = vadd.f32 %v3464_v37, %v3431_v21  ;;  %v3532_v59 = vpop.f32.mrf.mxu1 }
 0x522   : > { %v3554_v61 = vadd.f32 %v3553_v42, %v3520_v12  ;;  %v3498_v17 = vpop.f32.mrf.mxu0 }
 0x523   : > { %v3630_v46 = vpack.c.bf16 %v7366_v19, %v7362_v18  ;;  %v3499_v51 = vadd.f32 %v3498_v17, %v3465_v40  ;;  %v5265_v18 = vld [vmem:[%s7592_s9 + $0x38] sm:$0xff]  ;;  %v5259_v17 = vld [vmem:[%s7592_s9 + $0x8] sm:$0xff] }
 0x524   : > { %v3574_v38 = vmax.f32 %v3554_v61, 0.0  ;;  %v3433_v61 = vadd.f32 %v7349_v45, %v7358_v47  ;;  %v5273_v19 = vld [vmem:[%s7592_s9 + $0x78] sm:$0xff] }
 0x525   : > { %v3533_v15 = vadd.f32 %v3532_v59, %v3499_v51  ;;  %v5277_v51 = vld [vmem:[%s7592_s9 + $0x98] sm:$0xff]  ;;  %v5276_v59 = vld [vmem:[%s7592_s9 + $0x90] sm:$0xff] }
 0x526   : > { %v3596_v54 = vrot.slane %v3574_v38, 1 }
 0x528   : > { %v3597_v13 = vsel %vm544_vm0, %v3594_v7, %v3596_v54  ;;  %v3466_v42 = vpop.f32.mrf.mxu3 }
 0x529   : > { %v3556_v56 = vpop.f32.mrf.mxu2  ;;  %v7372_v1 = vmax.f32 %v3573_v62, %v3597_v13  ;;  %v3467_v36 = vadd.f32 %v3466_v42, %v3433_v61  ;;  %v5266_v42 = vld [vmem:[%s7592_s9 + $0x40] sm:$0xff]  ;;  %v5275_v61 = vld [vmem:[%s7592_s9 + $0x88] sm:$0xff] }
 0x52a   : > { %v3557_v52 = vadd.f32 %v3556_v56, %v3523_v4  ;;  %v3500_v22 = vpop.f32.mrf.mxu0  ;;  %v3534_v56 = vpop.f32.mrf.mxu1 }
 0x52b   : > { %v3501_v43 = vadd.f32 %v3500_v22, %v3467_v36  ;;  %v5289_v36 = vld [vmem:[%s7594_s11 + $0x38] sm:$0xff]  ;;  %v5286_v22 = vld [vmem:[%s7594_s11 + $0x20] sm:$0xff] }
 0x52c   : > { %v3575_v57 = vmax.f32 %v3557_v52, 0.0 }
 0x52d   : > { %v3535_v52 = vadd.f32 %v3534_v56, %v3501_v43 }
 0x52e   : > { %v3598_v24 = vrot.slane %v3575_v57, 1 }
 0x530   : > { %v3599_v28 = vsel %vm544_vm0, %v3596_v54, %v3598_v24 }
 0x531   : > { %v3558_v14 = vpop.f32.mrf.mxu2  ;;  %v7376_v30 = vmax.f32 %v3574_v38, %v3599_v28 }
 0x532   : > { %v3559_v25 = vadd.f32 %v3558_v14, %v3525_v29  ;;  %v5254_v14 = vld [vmem:[%s7591_s8 + $0x10] sm:$0xff] }
 0x533   : > { %v3631_v41 = vpack.c.bf16 %v7376_v30, %v7372_v1  ;;  %3712 = vmatpush.bf16.msrb.mxu0 %v5254_v14  ;;  %v5252_v1 = vld [vmem:[%s7591_s8] sm:$0xff]  ;;  %v5255_v30 = vld [vmem:[%s7591_s8 + $0x18] sm:$0xff]  ;;  %v5295_v14 = vld [vmem:[%s7596_s13 + $0x28] sm:$0xff] }
 0x534   : > { %v3576_v8 = vmax.f32 %v3559_v25, 0.0  ;;  %v5257_v25 = vld [vmem:[%s7591_s8 + $0x28] sm:$0xff] }
 0x535   : > { %3755 = vmatpush.bf16.msrb.mxu1 %v5257_v25  ;;  %v5294_v25 = vld [vmem:[%s7596_s13 + $0x20] sm:$0xff] }
 0x536   : > { %v3600_v27 = vrot.slane %v3576_v8, 1 }
 0x537   : > { %3713 = vmatpush.bf16.msrb.mxu0 %v5253_v63 }
 0x538   : > { %v3601_v3 = vsel %vm544_vm0, %v3598_v24, %v3600_v27 }
 0x539   : > { %v3561_v23 = vpop.f32.mrf.mxu2  ;;  %v3624_v55 = vmax.f32 %v3575_v57, %v3601_v3 }
 0x53a   : > { %v3562_v6 = vadd.f32 %v3561_v23, %v3528_v5  ;;  %v5280_v5 = vld [vmem:[%s7592_s9 + $0xb0] sm:$0xff]  ;;  %v5263_v23 = vld [vmem:[%s7592_s9 + $0x28] sm:$0xff] }
 0x53b   : > { %3714 = vmatpush.bf16.msrb.mxu0 %v5252_v1 }
 0x53c   : > { %v3577_v11 = vmax.f32 %v3562_v6, 0.0  ;;  %v5279_v6 = vld [vmem:[%s7592_s9 + $0xa8] sm:$0xff] }
 0x53e   : > { %v3602_v26 = vrot.slane %v3577_v11, 1 }
 0x53f   : > { %3983 = vmatpush.bf16.msra.mxu0 %v5273_v19 }
 0x540   : > { %v3603_v0 = vsel %vm544_vm0, %v3600_v27, %v3602_v26  ;;  %v3643_v27 = vunpack.c.l.b16 %v3637_v20 }
 0x541   : > { %v3563_v62 = vpop.f32.mrf.mxu2  ;;  %v3625_v50 = vmax.f32 %v3576_v8, %v3603_v0  ;;  %v5251_v8 = vld [vmem:[%s7590_s7] sm:$0xff] }
 0x542   : > { %v3564_v10 = vadd.f32 %v3563_v62, %v3530_v49  ;;  %v3645_v53 = vpack.c.b16 %v3643_v27, %v3643_v27  ;;  %v5260_v49 = vld [vmem:[%s7592_s9 + $0x10] sm:$0xff]  ;;  %v5270_v0 = vld [vmem:[%s7592_s9 + $0x60] sm:$0xff]  ;;  %v5269_v62 = vld [vmem:[%s7592_s9 + $0x58] sm:$0xff] }
 0x543   : > { %v3632_v7 = vpack.c.bf16 %v3625_v50, %v3624_v55  ;;  %3984 = vmatpush.bf16.msra.mxu0 %v5272_v32  ;;  %v5271_v55 = vld [vmem:[%s7592_s9 + $0x68] sm:$0xff]  ;;  %v5278_v50 = vld [vmem:[%s7592_s9 + $0xa0] sm:$0xff]  ;;  %v5292_v27 = vld [vmem:[%s7596_s13 + $0x10] sm:$0xff] }
 0x544   : > { %v3578_v12 = vmax.f32 %v3564_v10, 0.0  ;;  %v5258_v10 = vld [vmem:[%s7592_s9] sm:$0xff] }
 0x546   : > { %v3604_v58 = vrot.slane %v3578_v12, 1 }
 0x547   : > { %3985 = vmatpush.bf16.msra.mxu0 %v5271_v55  ;;  %v5340_v55 = vld [vmem:[%s7595_s12] ss:$0 sm:$0xff] }
 0x548   : > { %v3605_v38 = vsel %vm544_vm0, %v3602_v26, %v3604_v58 }
 0x549   : > { %v3566_v44 = vpop.f32.mrf.mxu2  ;;  %v3626_v2 = vmax.f32 %v3577_v11, %v3605_v38  ;;  %v5261_v11 = vld [vmem:[%s7592_s9 + $0x18] sm:$0xff]  ;;  %v5287_v38 = vld [vmem:[%s7594_s11 + $0x28] sm:$0xff] }
 0x54a   : > { %v3567_v54 = vadd.f32 %v3566_v44, %v3533_v15  ;;  %v5288_v15 = vld [vmem:[%s7594_s11 + $0x30] sm:$0xff] }
 0x54b   : > { %3986 = vmatpush.bf16.msra.mxu0 %v5270_v0 }
 0x54c   : > { %v3579_v4 = vmax.f32 %v3567_v54, 0.0 }
 0x54e   : > { %v3606_v13 = vrot.slane %v3579_v4, 1 }
 0x54f   : > { %3987 = vmatpush.bf16.msra.mxu0 %v5269_v62 }
 0x550   : > { %v3607_v9 = vsel %vm544_vm0, %v3604_v58, %v3606_v13  ;;  %v5274_v58 = vld [vmem:[%s7592_s9 + $0x80] sm:$0xff] }
 0x551   : > { %v3568_v57 = vpop.f32.mrf.mxu2  ;;  %v3627_v39 = vmax.f32 %v3578_v12, %v3607_v9  ;;  %v5267_v12 = vld [vmem:[%s7592_s9 + $0x48] sm:$0xff] }
 0x552   : > { %v3569_v31 = vadd.f32 %v3568_v57, %v3535_v52 }
 0x553   : > { %v3633_v45 = vpack.c.bf16 %v3627_v39, %v3626_v2 }
 0x554   : > { %v3580_v47 = vmax.f32 %v3569_v31, 0.0 }
 0x556   : > { %v3608_v24 = vrot.slane %v3580_v47, 1 }
 0x558   : > { %v3609_v48 = vsel %vm544_vm0, %v3606_v13, %v3608_v24  ;;  %v3629_v35 = vmax.f32 %v3580_v47, %v3608_v24 }
 0x559   : > { %v3628_v29 = vmax.f32 %v3579_v4, %v3609_v48  ;;  %v5285_v4 = vld [vmem:[%s7594_s11 + $0x18] sm:$0xff]  ;;  %v5284_v48 = vld [vmem:[%s7594_s11 + $0x10] sm:$0xff] }
 0x55b   : > { %v3634_v28 = vpack.c.bf16 %v3629_v35, %v3628_v29  ;;  %v5283_v35 = vld [vmem:[%s7594_s11 + $0x8] sm:$0xff]  ;;  %v5282_v29 = vld [vmem:[%s7594_s11] sm:$0xff] }
 0x55d   : > { %v3654_v60 = vand.u32 %v3634_v28, %v6829_v34  ;;  %v5256_v34 = vld [vmem:[%s7591_s8 + $0x20] sm:$0xff]  ;;  %v5297_v28 = vld [vmem:[%s7596_s13 + $0x38] sm:$0xff] }
 0x55e   : > { %3756 = vmatpush.bf16.msrb.mxu1 %v5256_v34  ;;  %4162 = vmatpush.bf16.msrb.mxu2 %v5297_v28  ;;  %v5293_v34 = vld [vmem:[%s7596_s13 + $0x18] sm:$0xff] }
 0x55f   : > { %3659 = vmatpush.bf16.msra.mxu3 %v3654_v60  ;;  %v5296_v60 = vld [vmem:[%s7596_s13 + $0x30] sm:$0xff] }
 0x562   : > { %3757 = vmatpush.bf16.msrb.mxu1 %v5255_v30  ;;  %4163 = vmatpush.bf16.msrb.mxu2 %v5296_v60 }
 0x563   : > { %3660 = vmatpush.bf16.msra.mxu3 %v3633_v45 }
 0x566   : > { %4164 = vmatpush.bf16.msrb.mxu2 %v5295_v14 }
 0x567   : > { %3661 = vmatpush.bf16.msra.mxu3 %v3632_v7  ;;  %v5268_v7 = vld [vmem:[%s7592_s9 + $0x50] sm:$0xff] }
 0x568   : > { %3988 = vmatpush.bf16.msra.mxu0 %v5268_v7 }
 0x56a   : > { %4165 = vmatpush.bf16.msrb.mxu2 %v5294_v25 }
 0x56b   : > { %3662 = vmatpush.bf16.msra.mxu3 %v3631_v41  ;;  %v5264_v41 = vld [vmem:[%s7592_s9 + $0x30] sm:$0xff] }
 0x56c   : > { %3989 = vmatpush.bf16.msra.mxu0 %v5267_v12 }
 0x56e   : > { %4166 = vmatpush.bf16.msrb.mxu2 %v5293_v34 }
 0x56f   : > { %3663 = vmatpush.bf16.msra.mxu3 %v3630_v46  ;;  %v5281_v46 = vld [vmem:[%s7592_s9 + $0xb8] sm:$0xff] }
 0x570   : > { %3996 = vmatpush.bf16.msra.mxu1 %v5281_v46  ;;  %3990 = vmatpush.bf16.msra.mxu0 %v5266_v42 }
 0x572   : > { %4901 = vmatmul.msk.bf16.vlgmr.msra.gmra.mxu3 %vm3646_vm6, %v5251_v8  ;;  %v5339_v8 = vld [vmem:[%s7593_s10] ss:$0 sm:$0xff]  ;;  %4167 = vmatpush.bf16.msrb.mxu2 %v5292_v27 }
 0x573   : > { %3970 = vmatpush.bf16.msrb.mxu3 %v5265_v18 }
 0x574   : > { %3997 = vmatpush.bf16.msra.mxu1 %v5280_v5 }
 0x577   : > { %3971 = vmatpush.bf16.msrb.mxu3 %v5264_v41 }
 0x578   : > { %3998 = vmatpush.bf16.msra.mxu1 %v5279_v6 }
 0x57b   : > { %3972 = vmatpush.bf16.msrb.mxu3 %v5263_v23  ;;  %v5290_v23 = vld [vmem:[%s7596_s13] sm:$0xff] }
 0x57c   : > { %3999 = vmatpush.bf16.msra.mxu1 %v5278_v50 }
 0x57f   : > { %3973 = vmatpush.bf16.msrb.mxu3 %v5262_v33 }
 0x580   : > { %4000 = vmatpush.bf16.msra.mxu1 %v5277_v51 }
 0x582   : > { %4902 = vmatmul.msk.bf16.gmra.mxu3 %vm3646_vm6, %v3645_v53 }
 0x583   : > { %3974 = vmatpush.bf16.msrb.mxu3 %v5261_v11 }
 0x584   : > { %4001 = vmatpush.bf16.msra.mxu1 %v5276_v59 }
 0x587   : > { %3975 = vmatpush.bf16.msrb.mxu3 %v5260_v49 }
 0x588   : > { %4002 = vmatpush.bf16.msra.mxu1 %v5275_v61 }
 0x58b   : > { %3976 = vmatpush.bf16.msrb.mxu3 %v5259_v17 }
 0x58c   : > { %4003 = vmatpush.bf16.msra.mxu1 %v5274_v58 }
 0x58f   : > { %3977 = vmatpush.bf16.msrb.mxu3 %v5258_v10 }
 0x593   : > { %4079 = vmatpush.bf16.msra.mxu3 %v5289_v36 }
 0x597   : > { %4080 = vmatpush.bf16.msra.mxu3 %v5288_v15 }
 0x59b   : > { %4081 = vmatpush.bf16.msra.mxu3 %v5287_v38 }
 0x59f   : > { %4082 = vmatpush.bf16.msra.mxu3 %v5286_v22 }
 0x5a3   : > { %4083 = vmatpush.bf16.msra.mxu3 %v5285_v4 }
 0x5a7   : > { %4084 = vmatpush.bf16.msra.mxu3 %v5284_v48 }
 0x5ab   : > { %4085 = vmatpush.bf16.msra.mxu3 %v5283_v35 }
 0x5af   : > { %4086 = vmatpush.bf16.msra.mxu3 %v5282_v29 }
 0x5f5   : > { %v3665_v3 = vpop.f32.mrf.mxu3 }
 0x5fd   : > { %v3667_v37 = vpop.f32.mrf.mxu3 }
 0x5fe   : > { %v3674_v16 = vpack.c.bf16 %v3667_v37, %v3665_v3  ;;  %v5291_v3 = vld [vmem:[%s7596_s13 + $0x8] sm:$0xff] }
 0x5ff   : > { %4168 = vmatpush.bf16.msrb.mxu2 %v5291_v3 }
 0x600   : > { %4915 = vmatmul.msk.bf16.vlgmr.msrb.gmra.mxu0 %vm3700_vm7, %v3674_v16  ;;  %4935 = vmatmul.msk.bf16.vlgmr.msrb.gmra.mxu1 %vm3700_vm7, %v3674_v16 }
 0x603   : > { %4169 = vmatpush.bf16.msrb.mxu2 %v5290_v23 }
 0x605   : > { %v3670_v21 = vpop.f32.mrf.mxu3 }
 0x606   : > { %v3675_v26 = vpack.c.bf16 %v3670_v21, %v3670_v21  ;;  %v5341_v21 = vld [vmem:[%s7597_s14] ss:$0 sm:$0xff] }
 0x60d   : > { %v3672_v40 = vpop.f32.mrf.mxu3 }
 0x610   : > { %4916 = vmatmul.msk.bf16.gmra.mxu0 %vm3700_vm7, %v3675_v26  ;;  %4936 = vmatmul.msk.bf16.gmra.mxu1 %vm3700_vm7, %v3675_v26 }
 0x67d   : > { %v3716_v44 = vpop.f32.mrf.mxu0  ;;  %v3759_v2 = vpop.f32.mrf.mxu1 }
 0x67e   : > { %v3768_v54 = vmax.f32 %v3716_v44, %v3759_v2 }
 0x680   : > { %v3771_v43 = vpack.c.bf16 %v3768_v54, %v3768_v54 }
 0x682   : > { %3978 = vmatmul.bf16.vlgmr.msrb.gmra.mxu3 %v3771_v43 }
 0x685   : > { %v3718_v13 = vpop.f32.mrf.mxu0  ;;  %v3761_v56 = vpop.f32.mrf.mxu1 }
 0x686   : > { %v3769_v52 = vmax.f32 %v3718_v13, %v3761_v56 }
 0x688   : > { %v3772_v9 = vpack.c.bf16 %v3769_v52, %v3769_v52 }
 0x68a   : > { %3991 = vmatmul.bf16.vlgmr.msra.gmra.mxu0 %v3772_v9 }
 0x68d   : > { %v3721_v57 = vpop.f32.mrf.mxu0  ;;  %v3764_v39 = vpop.f32.mrf.mxu1 }
 0x68e   : > { %v3770_v31 = vmax.f32 %v3721_v57, %v3764_v39 }
 0x690   : > { %v3773_v45 = vpack.c.bf16 %v3770_v31, %v3770_v31 }
 0x692   : > { %4004 = vmatmul.bf16.vlgmr.msra.gmra.mxu1 %v3773_v45 }
 0x695   : > { %v3723_v47 = vpop.f32.mrf.mxu0  ;;  %v3766_v24 = vpop.f32.mrf.mxu1 }
 0x705   : > { %v3979_v63 = vpop.f32.mrf.mxu3 }
 0x706   : > { %v3980_v53 = vadd.f32 %v5339_v8, %v3979_v63 }
 0x707   : > { %v3992_v20 = vpop.f32.mrf.mxu0 }
 0x708   : > { %v3993_v30 = vadd.f32 %v3992_v20, %v3980_v53 }
 0x70d   : > { %v3981_v1 = vpop.f32.mrf.mxu3 }
 0x70f   : > { %v4005_v18 = vpop.f32.mrf.mxu1  ;;  %v3994_v19 = vpop.f32.mrf.mxu0 }
 0x710   : > { %v4006_v46 = vadd.f32 %v4005_v18, %v3993_v30 }
 0x712   : > { %v4009_v41 = vmax.f32 %v4006_v46, 0.0 }
 0x714   : > { %v4010_v32 = vpack.c.bf16 %v4009_v41, %v4009_v41 }
 0x716   : > { %4087 = vmatmul.bf16.vlgmr.msra.gmra.mxu3 %v4010_v32 }
 0x717   : > { %v4007_v5 = vpop.f32.mrf.mxu1 }
 0x799   : > { %v4088_v6 = vpop.f32.mrf.mxu3 }
 0x79a   : > { %v4089_v33 = vadd.f32 %v5340_v55, %v4088_v6 }
 0x79c   : > { %v4092_v37 = vmax.f32 %v4089_v33, 0.0 }
 0x79e   : > { %v4093_v16 = vpack.c.bf16 %v4092_v37, %v4092_v37 }
 0x7a0   : > { %4170 = vmatmul.bf16.vlgmr.msrb.gmra.mxu2 %v4093_v16 }
 0x7a1   : > { %v4090_v11 = vpop.f32.mrf.mxu3 }
 0x823   : > { %v4171_v26 = vpop.f32.mrf.mxu2 }
 0x824   : > { %v4172_v40 = vadd.f32 %v5341_v21, %v4171_v26 }
 0x826   : > { %4175 = vst [vmem:[%s488_s20] sm:$0xff] %v4172_v40 }
 0x827   : > { %5369 = shalt.err (!%p5366_p3)
}
 0x828   : > { %5298 = dma.vmem_to_hbm [thread:$0]  (%p5525_p5), %s4190_s27, 128, %s4192_s24, %s4177_s0  }
 0x82b   : > { %v4173_v49 = vpop.f32.mrf.mxu2 }
 0x82c PF: > { %s7752_s29 = sld [smem:[#allocation5_spill]]  ;;  %p5304_p4 = scmp.ge.s32.totalorder %s5404_s21, 2 }
 0x82e   : > { %p5301_p7 = pnand %p5304_p4, %p5529_p6 }
 0x830   : > { %p5302_p8 = pneg %p5301_p7 }
 0x832   : > { %s4203_s25 = sand.u32 1, %s7752_s29  }
 0x833   : > { %s4204_s20 = scalar_lea.sflag [#allocation3], %s4203_s25 }
 0x834   : > { %5387 = dma.done.wait (%p5302_p8), %s4204_s20, 128  }
 0x835   : > { %5389 = vsyncadd (%p5302_p8), %s4204_s20, 4294967168  ;;  %s7754_s21 = sld [smem:[#allocation7_spill]]  ;;  %s7757_s18 = smov %s5396_s19 }
 0x836   : > { %s7755_s1 = sld [smem:[#allocation6_spill]] }
 0x837   : > { %s7756_s20 = sld [smem:[#allocation8_spill]] }
 0x83b   : > { %p25_p9 = scmp.ge.s32.totalorder %s7754_s21, 4  }
 0x83c   : > { %s7758_s19 = smov %s7755_s1 }
 0x83d   :  { %27 = sbr.rel (!%p25_p9) target bundleno = 6 (0x6), region = 117 }
 0x842   :  { %4210 = vsyncpa [#allocation3], 1 }
 0x843   :  { %4212 = vsyncpa [#allocation3 + $0x1], 1 }

</bundles_post_ra>
